<compile_context>
chip_gen: v5e
topology: v5e:2x2
jax: 0.10.0
libtpu: 0.0.40
codegen_flags: <defaults>
</compile_context>

<pallas_src>
import numpy as np

import jax
import jax.numpy as jnp
from jax.experimental import pallas as pl
from jax.experimental.pallas import tpu as pltpu

LEAKY_SLOPE = 0.2
BN_EPS = 1e-5
K = 4  # every conv in the Discriminator uses a 4x4 kernel


def _conv_out_hw(h, w, k, stride, pad):
    return (h + 2 * pad - k) // stride + 1, (w + 2 * pad - k) // stride + 1


# --------------------------------------------------------------------------- kernel --
def _fused_disc_kernel(p1_ref, w1_ref, b1_ref,
                       s2_ref, w2_ref, b2_ref, gm2_ref, bt2_ref,
                       s3_ref, w3_ref, b3_ref, gm3_ref, bt3_ref,
                       s4_ref, w4_ref, b4_ref,
                       o_ref):
    """Whole Discriminator forward; everything resident in VMEM.

    Intermediates are (rows = N*H*W raster, lanes = channels) slabs; matmuls are
    bf16 x bf16 -> f32 on the MXU; epilogues (bias / BN / LeakyReLU) are f32."""
    f32 = jnp.float32
    bf16 = jnp.bfloat16

    def leaky(z):
        return jnp.where(z > 0, z, LEAKY_SLOPE * z)

    def batchnorm(z, gamma, beta):
        # nn.BatchNorm2d training-mode stats: biased mean/var over (N, H, W) == axis 0
        # of the (M, C) slab.  Exact because the full M extent is resident here.
        mu = jnp.mean(z, axis=0, keepdims=True)
        var = jnp.mean((z - mu) * (z - mu), axis=0, keepdims=True)
        return (z - mu) * jax.lax.rsqrt(var + BN_EPS) * gamma + beta

    def conv_taps(y_bf16, sel_ref, w_ref):
        # y_bf16 : (M_in, C_in) bf16 resident activation (channels on lanes).
        # sel_ref: (T, M_out, M_in) constant 0/1 gather matrices (one per kernel tap;
        #          all-zero rows encode the zero padding).
        # w_ref  : (T, C_in, C_out) per-tap weight slices.
        acc = None
        for t in range(sel_ref.shape[0]):
            # Gather-on-MXU: selecting bf16 rows through a 0/1 matrix is exact, so the
            # cast back to bf16 before the weight GEMM is lossless.
            patch = jnp.dot(sel_ref[t], y_bf16, preferred_element_type=f32)
            part = jnp.dot(patch.astype(bf16), w_ref[t], preferred_element_type=f32)
            acc = part if acc is None else acc + part
        return acc

    # Layer 1: im2col GEMM + bias + LeakyReLU.  Cout pre-padded 64 -> 128 (lane dense).
    z = jnp.dot(p1_ref[...], w1_ref[...], preferred_element_type=f32) + b1_ref[...]
    y = leaky(z).astype(bf16)

    # Layer 2: conv + BatchNorm + LeakyReLU.
    z = conv_taps(y, s2_ref, w2_ref) + b2_ref[...]
    y = leaky(batchnorm(z, gm2_ref[...], bt2_ref[...])).astype(bf16)

    # Layer 3: conv + BatchNorm + LeakyReLU.
    z = conv_taps(y, s3_ref, w3_ref) + b3_ref[...]
    y = leaky(batchnorm(z, gm3_ref[...], bt3_ref[...])).astype(bf16)

    # Layer 4 (Cout = 1): VPU multiply + lane reduction per tap instead of burning an
    # MXU pass with a single output column.
    acc = jnp.zeros((s4_ref.shape[1], 1), f32)
    for t in range(s4_ref.shape[0]):
        patch = jnp.dot(s4_ref[t], y, preferred_element_type=f32)        # (M4, C3)
        acc = acc + jnp.sum(patch * w4_ref[t].astype(f32), axis=-1, keepdims=True)
    o_ref[...] = (acc + b4_ref[...]).astype(o_ref.dtype)


# ------------------------------------------------------------------ host-side plumbing
def _im2col_nchw(x, k, stride, pad):
    # x: (N, C, H, W) -> patches (N*Ho*Wo, C*k*k), K ordered as (c, ki, kj) to match
    # PyTorch's w.reshape(Cout, Cin*k*k).  Only used for layer 1 (the raw network
    # input, emitted in bf16); layers 2-4 gather their patches inside the kernel.
    n, c, h, w = x.shape
    xp = jnp.pad(x, ((0, 0), (0, 0), (pad, pad), (pad, pad)))
    ho, wo = _conv_out_hw(h, w, k, stride, pad)
    cols = [xp[:, :, i:i + stride * ho:stride, j:j + stride * wo:stride]
            for i in range(k) for j in range(k)]
    patches = jnp.stack(cols, axis=2)                       # (N, C, k*k, Ho, Wo)
    return patches.transpose(0, 3, 4, 1, 2).reshape(n * ho * wo, c * k * k)


def _selection_matrices(n, h, w, k, stride, pad):
    # One (M_out, M_in) 0/1 matrix per kernel tap (ki, kj), tap order t = ki*k + kj.
    # Row r = output raster index (n, oh, ow); its single 1 selects the input raster
    # index feeding tap (ki, kj); all-zero rows encode zero padding.
    ho, wo = _conv_out_hw(h, w, k, stride, pad)
    m_out, m_in = n * ho * wo, n * h * w
    mats = []
    for ki in range(k):
        for kj in range(k):
            g = np.zeros((m_out, m_in), np.float32)
            for b in range(n):
                for oh in range(ho):
                    ih = stride * oh + ki - pad
                    if not 0 <= ih < h:
                        continue
                    for ow in range(wo):
                        iw = stride * ow + kj - pad
                        if not 0 <= iw < w:
                            continue
                        g[(b * ho + oh) * wo + ow, (b * h + ih) * w + iw] = 1.0
            mats.append(g)
    return mats


def prepare_discriminator(params, input_shape):
    """One-time conversion of PyTorch-layout params into kernel-ready constants
    (outside the jitted hot path): pre-transposed bf16 per-tap weight slices,
    lane-dense (padded) layer-1 weights, f32 bias/BN rows and the constant 0/1
    gather matrices derived from the static input shape."""
    n, cin, h_in, w_in = input_shape

    # Layer 1: (Cout, Cin, k, k) OIHW -> (Cin*k*k, Cout) GEMM weight, Cout -> 128.
    w1 = np.asarray(params["w1"], np.float32)
    c1 = w1.shape[0]
    c1p = ((c1 + 127) // 128) * 128
    w1m = np.pad(w1.reshape(c1, cin * K * K).T, ((0, 0), (0, c1p - c1)))
    b1 = np.pad(np.asarray(params["b1"], np.float32), (0, c1p - c1)).reshape(1, c1p)

    ho1, wo1 = _conv_out_hw(h_in, w_in, K, 2, 1)
    ho2, wo2 = _conv_out_hw(ho1, wo1, K, 2, 1)
    ho3, wo3 = _conv_out_hw(ho2, wo2, K, 2, 1)

    def layer_consts(wt, hi, wi, stride, cin_pad=None):
        wt = np.asarray(wt, np.float32)                       # (Cout, Cin, k, k)
        _, cin_, k, _ = wt.shape
        mats = _selection_matrices(n, hi, wi, k, stride, 1)
        keep = [t for t in range(k * k) if mats[t].any()]     # drop pure-padding taps
        sel = np.stack([mats[t] for t in keep], 0)
        wtt = np.stack([wt[:, :, t // k, t % k].T for t in keep], 0)  # (T, Cin, Cout)
        if cin_pad is not None and cin_pad > cin_:
            wtt = np.pad(wtt, ((0, 0), (0, cin_pad - cin_), (0, 0)))
        return jnp.asarray(sel, jnp.bfloat16), jnp.asarray(wtt, jnp.bfloat16)

    s2, w2t = layer_consts(params["w2"], ho1, wo1, 2, cin_pad=c1p)
    s3, w3t = layer_consts(params["w3"], ho2, wo2, 2)
    s4, w4t = layer_consts(params["w4"], ho3, wo3, 1)
    # Final conv has Cout == 1: store per-tap weights as (T, 1, Cin) rows for the
    # in-kernel VPU multiply + lane reduction.
    w4t = jnp.transpose(w4t, (0, 2, 1))

    row = lambda a: jnp.asarray(np.asarray(a, np.float32).reshape(1, -1))
    return {
        "w1": jnp.asarray(w1m, jnp.bfloat16), "b1": jnp.asarray(b1),
        "s2": s2, "w2": w2t, "b2": row(params["b2"]),
        "gm2": row(params["g2"]), "bt2": row(params["be2"]),
        "s3": s3, "w3": w3t, "b3": row(params["b3"]),
        "gm3": row(params["g3"]), "bt3": row(params["be3"]),
        "s4": s4, "w4": w4t, "b4": row(params["b4"]),
    }


def discriminator_forward(x, prep):
    """x: (N, Cin, H, W) f32 NCHW (PyTorch layout) -> (N, 1, Ho, Wo) f32 NCHW."""
    n, _, h, w = x.shape
    h1, w1 = _conv_out_hw(h, w, K, 2, 1)
    h2, w2 = _conv_out_hw(h1, w1, K, 2, 1)
    h3, w3 = _conv_out_hw(h2, w2, K, 2, 1)
    h4, w4 = _conv_out_hw(h3, w3, K, 1, 1)
    assert prep["s2"].shape[2] == n * h1 * w1, "prep was built for a different shape"

    # Layer-1 patches only (tiny, bf16); all other im2col happens inside the kernel.
    patches1 = _im2col_nchw(x.astype(jnp.bfloat16), K, 2, 1)   # (N*H1*W1, Cin*16)

    vmem = pl.BlockSpec(memory_space=pltpu.MemorySpace.VMEM)
    out = pl.pallas_call(
        _fused_disc_kernel,
        out_shape=jax.ShapeDtypeStruct((n * h4 * w4, 1), jnp.float32),
        in_specs=[vmem] * 16,
        out_specs=vmem,
    )(patches1, prep["w1"], prep["b1"],
      prep["s2"], prep["w2"], prep["b2"], prep["gm2"], prep["bt2"],
      prep["s3"], prep["w3"], prep["b3"], prep["gm3"], prep["bt3"],
      prep["s4"], prep["w4"], prep["b4"])

    return out.reshape(n, h4, w4, 1).transpose(0, 3, 1, 2)


# ----------------------------------------------------------------------- init / refs --
def init_params(key, in_channels=1):
    ks = jax.random.split(key, 8)

    def w_init(k, shape, scale=0.05):
        return scale * jax.random.normal(k, shape, jnp.float32)

    return {
        "w1": w_init(ks[0], (64, in_channels, 4, 4)), "b1": w_init(ks[1], (64,)),
        "w2": w_init(ks[2], (128, 64, 4, 4)), "b2": w_init(ks[3], (128,)),
        "g2": jnp.ones((128,), jnp.float32), "be2": jnp.zeros((128,), jnp.float32),
        "w3": w_init(ks[4], (256, 128, 4, 4)), "b3": w_init(ks[5], (256,)),
        "g3": jnp.ones((256,), jnp.float32), "be3": jnp.zeros((256,), jnp.float32),
        "w4": w_init(ks[6], (1, 256, 4, 4)), "b4": w_init(ks[7], (1,)),
    }


def _ref_forward(x, p, matmul_dtype):
    # Pure-XLA reference.  matmul_dtype=bfloat16 reproduces the kernel's dtype policy
    # (bf16 conv operands, f32 accumulation, f32 epilogues); float32 is the exact
    # full-precision PyTorch-style forward.
    def conv(y, wt, b, stride, pad):
        out = jax.lax.conv_general_dilated(
            y.astype(matmul_dtype), wt.astype(matmul_dtype),
            (stride, stride), [(pad, pad), (pad, pad)],
            dimension_numbers=("NCHW", "OIHW", "NCHW"),
            preferred_element_type=jnp.float32,
            precision=jax.lax.Precision.HIGHEST)
        return out + b[None, :, None, None]

    def bn(y, g, bt):
        mu = y.mean(axis=(0, 2, 3), keepdims=True)
        var = ((y - mu) ** 2).mean(axis=(0, 2, 3), keepdims=True)
        return (y - mu) / jnp.sqrt(var + BN_EPS) * g[None, :, None, None] \
            + bt[None, :, None, None]

    lrelu = lambda z: jnp.where(z > 0, z, LEAKY_SLOPE * z)

    y = lrelu(conv(x, p["w1"], p["b1"], 2, 1))
    y = lrelu(bn(conv(y, p["w2"], p["b2"], 2, 1), p["g2"], p["be2"]))
    y = lrelu(bn(conv(y, p["w3"], p["b3"], 2, 1), p["g3"], p["be3"]))
    return conv(y, p["w4"], p["b4"], 1, 1)


if __name__ == "__main__":
    key = jax.random.PRNGKey(0)
    kx, kp = jax.random.split(key)

    # Small but consistent shapes: batch=2, in_channels=1, spatial 16x16.
    # 16 -> 8 -> 4 -> 2 (stride-2 convs) -> 1x1 final conv, output (2, 1, 1, 1).
    x = jax.random.normal(kx, (2, 1, 16, 16), jnp.float32)
    params = init_params(kp, in_channels=1)

    # One-time, outside the jitted hot path: pre-transposed bf16 weights, lane padding,
    # and the constant gather matrices.
    prep = prepare_discriminator(params, x.shape)

    fwd = jax.jit(discriminator_forward)
    out = jax.block_until_ready(fwd(x, prep))
    assert out.shape == (2, 1, 1, 1), out.shape

    # Tight check against an XLA reference with the SAME dtype policy as the kernel
    # (bf16 operands, f32 accumulation/epilogue); only f32 summation-order noise plus
    # rare bf16 rounding-boundary flips remain, hence 2e-3.
    ref_mixed = jax.block_until_ready(_ref_forward(x, params, jnp.bfloat16))
    assert jnp.allclose(out, ref_mixed, rtol=2e-3, atol=2e-3), (out, ref_mixed)

    # Looser sanity check against the full-f32 reference (bounds the bf16-vs-f32 gap).
    ref_f32 = jax.block_until_ready(_ref_forward(x, params, jnp.float32))
    assert jnp.allclose(out, ref_f32, rtol=5e-2, atol=1e-1), (out, ref_f32)

    print("KERNEL_OK")
</pallas_src>

<mosaic_0001>
module attributes {stable_mosaic.version = 11 : i64} {
  func.func @_fused_disc_kernel(%arg0: memref<128x16xbf16, #tpu.memory_space<vmem>>, %arg1: memref<16x128xbf16, #tpu.memory_space<vmem>>, %arg2: memref<1x128xf32, #tpu.memory_space<vmem>>, %arg3: memref<16x32x128xbf16, #tpu.memory_space<vmem>>, %arg4: memref<16x128x128xbf16, #tpu.memory_space<vmem>>, %arg5: memref<1x128xf32, #tpu.memory_space<vmem>>, %arg6: memref<1x128xf32, #tpu.memory_space<vmem>>, %arg7: memref<1x128xf32, #tpu.memory_space<vmem>>, %arg8: memref<16x8x32xbf16, #tpu.memory_space<vmem>>, %arg9: memref<16x128x256xbf16, #tpu.memory_space<vmem>>, %arg10: memref<1x256xf32, #tpu.memory_space<vmem>>, %arg11: memref<1x256xf32, #tpu.memory_space<vmem>>, %arg12: memref<1x256xf32, #tpu.memory_space<vmem>>, %arg13: memref<4x2x8xbf16, #tpu.memory_space<vmem>>, %arg14: memref<4x1x256xbf16, #tpu.memory_space<vmem>>, %arg15: memref<1x1xf32, #tpu.memory_space<vmem>>, %arg16: memref<2x1xf32, #tpu.memory_space<vmem>>) attributes {dimension_semantics = [], scalar_prefetch = 0 : i64, scratch_operands = 0 : i64, tpu.core_type = #tpu.core_type<tc>} {
    %c0 = arith.constant 0 : index
    %c0_0 = arith.constant 0 : index
    %0 = vector.load %arg0[%c0, %c0_0] : memref<128x16xbf16, #tpu.memory_space<vmem>>, vector<128x16xbf16>
    %c0_1 = arith.constant 0 : index
    %c0_2 = arith.constant 0 : index
    %1 = vector.load %arg1[%c0_1, %c0_2] : memref<16x128xbf16, #tpu.memory_space<vmem>>, vector<16x128xbf16>
    %cst = arith.constant dense<0.000000e+00> : vector<128x128xf32>
    %2 = tpu.matmul %0, %1, %cst {dimension_numbers = #tpu.dot_dimension_numbers<[1], [0], [0], [1], [0, 0, 1, 1], [], []>} : vector<128x16xbf16>, vector<16x128xbf16>, vector<128x128xf32> -> vector<128x128xf32>
    %c0_3 = arith.constant 0 : index
    %c0_4 = arith.constant 0 : index
    %3 = vector.load %arg2[%c0_3, %c0_4] : memref<1x128xf32, #tpu.memory_space<vmem>>, vector<1x128xf32>
    %4 = vector.broadcast %3 : vector<1x128xf32> to vector<128x128xf32>
    %5 = arith.addf %2, %4 : vector<128x128xf32>
    %cst_5 = arith.constant 0.000000e+00 : f32
    %6 = vector.broadcast %cst_5 : f32 to vector<128x128xf32>
    %7 = arith.cmpf ogt, %5, %6 : vector<128x128xf32>
    %cst_6 = arith.constant 2.000000e-01 : f32
    %8 = vector.broadcast %cst_6 : f32 to vector<128x128xf32>
    %9 = arith.mulf %8, %5 : vector<128x128xf32>
    %10 = arith.select %7, %5, %9 : vector<128x128xi1>, vector<128x128xf32>
    %11 = arith.truncf %10 : vector<128x128xf32> to vector<128x128xbf16>
    %c0_7 = arith.constant 0 : index
    %c0_8 = arith.constant 0 : index
    %c0_9 = arith.constant 0 : index
    %12 = vector.load %arg3[%c0_7, %c0_8, %c0_9] : memref<16x32x128xbf16, #tpu.memory_space<vmem>>, vector<1x32x128xbf16>
    %13 = vector.shape_cast %12 : vector<1x32x128xbf16> to vector<32x128xbf16>
    %cst_10 = arith.constant dense<0.000000e+00> : vector<32x128xf32>
    %14 = tpu.matmul %13, %11, %cst_10 {dimension_numbers = #tpu.dot_dimension_numbers<[1], [0], [0], [1], [0, 0, 1, 1], [], []>} : vector<32x128xbf16>, vector<128x128xbf16>, vector<32x128xf32> -> vector<32x128xf32>
    %15 = arith.truncf %14 : vector<32x128xf32> to vector<32x128xbf16>
    %c0_11 = arith.constant 0 : index
    %c0_12 = arith.constant 0 : index
    %c0_13 = arith.constant 0 : index
    %16 = vector.load %arg4[%c0_11, %c0_12, %c0_13] : memref<16x128x128xbf16, #tpu.memory_space<vmem>>, vector<1x128x128xbf16>
    %17 = vector.shape_cast %16 : vector<1x128x128xbf16> to vector<128x128xbf16>
    %cst_14 = arith.constant dense<0.000000e+00> : vector<32x128xf32>
    %18 = tpu.matmul %15, %17, %cst_14 {dimension_numbers = #tpu.dot_dimension_numbers<[1], [0], [0], [1], [0, 0, 1, 1], [], []>} : vector<32x128xbf16>, vector<128x128xbf16>, vector<32x128xf32> -> vector<32x128xf32>
    %c1 = arith.constant 1 : index
    %c0_15 = arith.constant 0 : index
    %c0_16 = arith.constant 0 : index
    %19 = vector.load %arg3[%c1, %c0_15, %c0_16] : memref<16x32x128xbf16, #tpu.memory_space<vmem>>, vector<1x32x128xbf16>
    %20 = vector.shape_cast %19 : vector<1x32x128xbf16> to vector<32x128xbf16>
    %cst_17 = arith.constant dense<0.000000e+00> : vector<32x128xf32>
    %21 = tpu.matmul %20, %11, %cst_17 {dimension_numbers = #tpu.dot_dimension_numbers<[1], [0], [0], [1], [0, 0, 1, 1], [], []>} : vector<32x128xbf16>, vector<128x128xbf16>, vector<32x128xf32> -> vector<32x128xf32>
    %22 = arith.truncf %21 : vector<32x128xf32> to vector<32x128xbf16>
    %c1_18 = arith.constant 1 : index
    %c0_19 = arith.constant 0 : index
    %c0_20 = arith.constant 0 : index
    %23 = vector.load %arg4[%c1_18, %c0_19, %c0_20] : memref<16x128x128xbf16, #tpu.memory_space<vmem>>, vector<1x128x128xbf16>
    %24 = vector.shape_cast %23 : vector<1x128x128xbf16> to vector<128x128xbf16>
    %cst_21 = arith.constant dense<0.000000e+00> : vector<32x128xf32>
    %25 = tpu.matmul %22, %24, %cst_21 {dimension_numbers = #tpu.dot_dimension_numbers<[1], [0], [0], [1], [0, 0, 1, 1], [], []>} : vector<32x128xbf16>, vector<128x128xbf16>, vector<32x128xf32> -> vector<32x128xf32>
    %26 = arith.addf %18, %25 : vector<32x128xf32>
    %c2 = arith.constant 2 : index
    %c0_22 = arith.constant 0 : index
    %c0_23 = arith.constant 0 : index
    %27 = vector.load %arg3[%c2, %c0_22, %c0_23] : memref<16x32x128xbf16, #tpu.memory_space<vmem>>, vector<1x32x128xbf16>
    %28 = vector.shape_cast %27 : vector<1x32x128xbf16> to vector<32x128xbf16>
    %cst_24 = arith.constant dense<0.000000e+00> : vector<32x128xf32>
    %29 = tpu.matmul %28, %11, %cst_24 {dimension_numbers = #tpu.dot_dimension_numbers<[1], [0], [0], [1], [0, 0, 1, 1], [], []>} : vector<32x128xbf16>, vector<128x128xbf16>, vector<32x128xf32> -> vector<32x128xf32>
    %30 = arith.truncf %29 : vector<32x128xf32> to vector<32x128xbf16>
    %c2_25 = arith.constant 2 : index
    %c0_26 = arith.constant 0 : index
    %c0_27 = arith.constant 0 : index
    %31 = vector.load %arg4[%c2_25, %c0_26, %c0_27] : memref<16x128x128xbf16, #tpu.memory_space<vmem>>, vector<1x128x128xbf16>
    %32 = vector.shape_cast %31 : vector<1x128x128xbf16> to vector<128x128xbf16>
    %cst_28 = arith.constant dense<0.000000e+00> : vector<32x128xf32>
    %33 = tpu.matmul %30, %32, %cst_28 {dimension_numbers = #tpu.dot_dimension_numbers<[1], [0], [0], [1], [0, 0, 1, 1], [], []>} : vector<32x128xbf16>, vector<128x128xbf16>, vector<32x128xf32> -> vector<32x128xf32>
    %34 = arith.addf %26, %33 : vector<32x128xf32>
    %c3 = arith.constant 3 : index
    %c0_29 = arith.constant 0 : index
    %c0_30 = arith.constant 0 : index
    %35 = vector.load %arg3[%c3, %c0_29, %c0_30] : memref<16x32x128xbf16, #tpu.memory_space<vmem>>, vector<1x32x128xbf16>
    %36 = vector.shape_cast %35 : vector<1x32x128xbf16> to vector<32x128xbf16>
    %cst_31 = arith.constant dense<0.000000e+00> : vector<32x128xf32>
    %37 = tpu.matmul %36, %11, %cst_31 {dimension_numbers = #tpu.dot_dimension_numbers<[1], [0], [0], [1], [0, 0, 1, 1], [], []>} : vector<32x128xbf16>, vector<128x128xbf16>, vector<32x128xf32> -> vector<32x128xf32>
    %38 = arith.truncf %37 : vector<32x128xf32> to vector<32x128xbf16>
    %c3_32 = arith.constant 3 : index
    %c0_33 = arith.constant 0 : index
    %c0_34 = arith.constant 0 : index
    %39 = vector.load %arg4[%c3_32, %c0_33, %c0_34] : memref<16x128x128xbf16, #tpu.memory_space<vmem>>, vector<1x128x128xbf16>
    %40 = vector.shape_cast %39 : vector<1x128x128xbf16> to vector<128x128xbf16>
    %cst_35 = arith.constant dense<0.000000e+00> : vector<32x128xf32>
    %41 = tpu.matmul %38, %40, %cst_35 {dimension_numbers = #tpu.dot_dimension_numbers<[1], [0], [0], [1], [0, 0, 1, 1], [], []>} : vector<32x128xbf16>, vector<128x128xbf16>, vector<32x128xf32> -> vector<32x128xf32>
    %42 = arith.addf %34, %41 : vector<32x128xf32>
    %c4 = arith.constant 4 : index
    %c0_36 = arith.constant 0 : index
    %c0_37 = arith.constant 0 : index
    %43 = vector.load %arg3[%c4, %c0_36, %c0_37] : memref<16x32x128xbf16, #tpu.memory_space<vmem>>, vector<1x32x128xbf16>
    %44 = vector.shape_cast %43 : vector<1x32x128xbf16> to vector<32x128xbf16>
    %cst_38 = arith.constant dense<0.000000e+00> : vector<32x128xf32>
    %45 = tpu.matmul %44, %11, %cst_38 {dimension_numbers = #tpu.dot_dimension_numbers<[1], [0], [0], [1], [0, 0, 1, 1], [], []>} : vector<32x128xbf16>, vector<128x128xbf16>, vector<32x128xf32> -> vector<32x128xf32>
    %46 = arith.truncf %45 : vector<32x128xf32> to vector<32x128xbf16>
    %c4_39 = arith.constant 4 : index
    %c0_40 = arith.constant 0 : index
    %c0_41 = arith.constant 0 : index
    %47 = vector.load %arg4[%c4_39, %c0_40, %c0_41] : memref<16x128x128xbf16, #tpu.memory_space<vmem>>, vector<1x128x128xbf16>
    %48 = vector.shape_cast %47 : vector<1x128x128xbf16> to vector<128x128xbf16>
    %cst_42 = arith.constant dense<0.000000e+00> : vector<32x128xf32>
    %49 = tpu.matmul %46, %48, %cst_42 {dimension_numbers = #tpu.dot_dimension_numbers<[1], [0], [0], [1], [0, 0, 1, 1], [], []>} : vector<32x128xbf16>, vector<128x128xbf16>, vector<32x128xf32> -> vector<32x128xf32>
    %50 = arith.addf %42, %49 : vector<32x128xf32>
    %c5 = arith.constant 5 : index
    %c0_43 = arith.constant 0 : index
    %c0_44 = arith.constant 0 : index
    %51 = vector.load %arg3[%c5, %c0_43, %c0_44] : memref<16x32x128xbf16, #tpu.memory_space<vmem>>, vector<1x32x128xbf16>
    %52 = vector.shape_cast %51 : vector<1x32x128xbf16> to vector<32x128xbf16>
    %cst_45 = arith.constant dense<0.000000e+00> : vector<32x128xf32>
    %53 = tpu.matmul %52, %11, %cst_45 {dimension_numbers = #tpu.dot_dimension_numbers<[1], [0], [0], [1], [0, 0, 1, 1], [], []>} : vector<32x128xbf16>, vector<128x128xbf16>, vector<32x128xf32> -> vector<32x128xf32>
    %54 = arith.truncf %53 : vector<32x128xf32> to vector<32x128xbf16>
    %c5_46 = arith.constant 5 : index
    %c0_47 = arith.constant 0 : index
    %c0_48 = arith.constant 0 : index
    %55 = vector.load %arg4[%c5_46, %c0_47, %c0_48] : memref<16x128x128xbf16, #tpu.memory_space<vmem>>, vector<1x128x128xbf16>
    %56 = vector.shape_cast %55 : vector<1x128x128xbf16> to vector<128x128xbf16>
    %cst_49 = arith.constant dense<0.000000e+00> : vector<32x128xf32>
    %57 = tpu.matmul %54, %56, %cst_49 {dimension_numbers = #tpu.dot_dimension_numbers<[1], [0], [0], [1], [0, 0, 1, 1], [], []>} : vector<32x128xbf16>, vector<128x128xbf16>, vector<32x128xf32> -> vector<32x128xf32>
    %58 = arith.addf %50, %57 : vector<32x128xf32>
    %c6 = arith.constant 6 : index
    %c0_50 = arith.constant 0 : index
    %c0_51 = arith.constant 0 : index
    %59 = vector.load %arg3[%c6, %c0_50, %c0_51] : memref<16x32x128xbf16, #tpu.memory_space<vmem>>, vector<1x32x128xbf16>
    %60 = vector.shape_cast %59 : vector<1x32x128xbf16> to vector<32x128xbf16>
    %cst_52 = arith.constant dense<0.000000e+00> : vector<32x128xf32>
    %61 = tpu.matmul %60, %11, %cst_52 {dimension_numbers = #tpu.dot_dimension_numbers<[1], [0], [0], [1], [0, 0, 1, 1], [], []>} : vector<32x128xbf16>, vector<128x128xbf16>, vector<32x128xf32> -> vector<32x128xf32>
    %62 = arith.truncf %61 : vector<32x128xf32> to vector<32x128xbf16>
    %c6_53 = arith.constant 6 : index
    %c0_54 = arith.constant 0 : index
    %c0_55 = arith.constant 0 : index
    %63 = vector.load %arg4[%c6_53, %c0_54, %c0_55] : memref<16x128x128xbf16, #tpu.memory_space<vmem>>, vector<1x128x128xbf16>
    %64 = vector.shape_cast %63 : vector<1x128x128xbf16> to vector<128x128xbf16>
    %cst_56 = arith.constant dense<0.000000e+00> : vector<32x128xf32>
    %65 = tpu.matmul %62, %64, %cst_56 {dimension_numbers = #tpu.dot_dimension_numbers<[1], [0], [0], [1], [0, 0, 1, 1], [], []>} : vector<32x128xbf16>, vector<128x128xbf16>, vector<32x128xf32> -> vector<32x128xf32>
    %66 = arith.addf %58, %65 : vector<32x128xf32>
    %c7 = arith.constant 7 : index
    %c0_57 = arith.constant 0 : index
    %c0_58 = arith.constant 0 : index
    %67 = vector.load %arg3[%c7, %c0_57, %c0_58] : memref<16x32x128xbf16, #tpu.memory_space<vmem>>, vector<1x32x128xbf16>
    %68 = vector.shape_cast %67 : vector<1x32x128xbf16> to vector<32x128xbf16>
    %cst_59 = arith.constant dense<0.000000e+00> : vector<32x128xf32>
    %69 = tpu.matmul %68, %11, %cst_59 {dimension_numbers = #tpu.dot_dimension_numbers<[1], [0], [0], [1], [0, 0, 1, 1], [], []>} : vector<32x128xbf16>, vector<128x128xbf16>, vector<32x128xf32> -> vector<32x128xf32>
    %70 = arith.truncf %69 : vector<32x128xf32> to vector<32x128xbf16>
    %c7_60 = arith.constant 7 : index
    %c0_61 = arith.constant 0 : index
    %c0_62 = arith.constant 0 : index
    %71 = vector.load %arg4[%c7_60, %c0_61, %c0_62] : memref<16x128x128xbf16, #tpu.memory_space<vmem>>, vector<1x128x128xbf16>
    %72 = vector.shape_cast %71 : vector<1x128x128xbf16> to vector<128x128xbf16>
    %cst_63 = arith.constant dense<0.000000e+00> : vector<32x128xf32>
    %73 = tpu.matmul %70, %72, %cst_63 {dimension_numbers = #tpu.dot_dimension_numbers<[1], [0], [0], [1], [0, 0, 1, 1], [], []>} : vector<32x128xbf16>, vector<128x128xbf16>, vector<32x128xf32> -> vector<32x128xf32>
    %74 = arith.addf %66, %73 : vector<32x128xf32>
    %c8 = arith.constant 8 : index
    %c0_64 = arith.constant 0 : index
    %c0_65 = arith.constant 0 : index
    %75 = vector.load %arg3[%c8, %c0_64, %c0_65] : memref<16x32x128xbf16, #tpu.memory_space<vmem>>, vector<1x32x128xbf16>
    %76 = vector.shape_cast %75 : vector<1x32x128xbf16> to vector<32x128xbf16>
    %cst_66 = arith.constant dense<0.000000e+00> : vector<32x128xf32>
    %77 = tpu.matmul %76, %11, %cst_66 {dimension_numbers = #tpu.dot_dimension_numbers<[1], [0], [0], [1], [0, 0, 1, 1], [], []>} : vector<32x128xbf16>, vector<128x128xbf16>, vector<32x128xf32> -> vector<32x128xf32>
    %78 = arith.truncf %77 : vector<32x128xf32> to vector<32x128xbf16>
    %c8_67 = arith.constant 8 : index
    %c0_68 = arith.constant 0 : index
    %c0_69 = arith.constant 0 : index
    %79 = vector.load %arg4[%c8_67, %c0_68, %c0_69] : memref<16x128x128xbf16, #tpu.memory_space<vmem>>, vector<1x128x128xbf16>
    %80 = vector.shape_cast %79 : vector<1x128x128xbf16> to vector<128x128xbf16>
    %cst_70 = arith.constant dense<0.000000e+00> : vector<32x128xf32>
    %81 = tpu.matmul %78, %80, %cst_70 {dimension_numbers = #tpu.dot_dimension_numbers<[1], [0], [0], [1], [0, 0, 1, 1], [], []>} : vector<32x128xbf16>, vector<128x128xbf16>, vector<32x128xf32> -> vector<32x128xf32>
    %82 = arith.addf %74, %81 : vector<32x128xf32>
    %c9 = arith.constant 9 : index
    %c0_71 = arith.constant 0 : index
    %c0_72 = arith.constant 0 : index
    %83 = vector.load %arg3[%c9, %c0_71, %c0_72] : memref<16x32x128xbf16, #tpu.memory_space<vmem>>, vector<1x32x128xbf16>
    %84 = vector.shape_cast %83 : vector<1x32x128xbf16> to vector<32x128xbf16>
    %cst_73 = arith.constant dense<0.000000e+00> : vector<32x128xf32>
    %85 = tpu.matmul %84, %11, %cst_73 {dimension_numbers = #tpu.dot_dimension_numbers<[1], [0], [0], [1], [0, 0, 1, 1], [], []>} : vector<32x128xbf16>, vector<128x128xbf16>, vector<32x128xf32> -> vector<32x128xf32>
    %86 = arith.truncf %85 : vector<32x128xf32> to vector<32x128xbf16>
    %c9_74 = arith.constant 9 : index
    %c0_75 = arith.constant 0 : index
    %c0_76 = arith.constant 0 : index
    %87 = vector.load %arg4[%c9_74, %c0_75, %c0_76] : memref<16x128x128xbf16, #tpu.memory_space<vmem>>, vector<1x128x128xbf16>
    %88 = vector.shape_cast %87 : vector<1x128x128xbf16> to vector<128x128xbf16>
    %cst_77 = arith.constant dense<0.000000e+00> : vector<32x128xf32>
    %89 = tpu.matmul %86, %88, %cst_77 {dimension_numbers = #tpu.dot_dimension_numbers<[1], [0], [0], [1], [0, 0, 1, 1], [], []>} : vector<32x128xbf16>, vector<128x128xbf16>, vector<32x128xf32> -> vector<32x128xf32>
    %90 = arith.addf %82, %89 : vector<32x128xf32>
    %c10 = arith.constant 10 : index
    %c0_78 = arith.constant 0 : index
    %c0_79 = arith.constant 0 : index
    %91 = vector.load %arg3[%c10, %c0_78, %c0_79] : memref<16x32x128xbf16, #tpu.memory_space<vmem>>, vector<1x32x128xbf16>
    %92 = vector.shape_cast %91 : vector<1x32x128xbf16> to vector<32x128xbf16>
    %cst_80 = arith.constant dense<0.000000e+00> : vector<32x128xf32>
    %93 = tpu.matmul %92, %11, %cst_80 {dimension_numbers = #tpu.dot_dimension_numbers<[1], [0], [0], [1], [0, 0, 1, 1], [], []>} : vector<32x128xbf16>, vector<128x128xbf16>, vector<32x128xf32> -> vector<32x128xf32>
    %94 = arith.truncf %93 : vector<32x128xf32> to vector<32x128xbf16>
    %c10_81 = arith.constant 10 : index
    %c0_82 = arith.constant 0 : index
    %c0_83 = arith.constant 0 : index
    %95 = vector.load %arg4[%c10_81, %c0_82, %c0_83] : memref<16x128x128xbf16, #tpu.memory_space<vmem>>, vector<1x128x128xbf16>
    %96 = vector.shape_cast %95 : vector<1x128x128xbf16> to vector<128x128xbf16>
    %cst_84 = arith.constant dense<0.000000e+00> : vector<32x128xf32>
    %97 = tpu.matmul %94, %96, %cst_84 {dimension_numbers = #tpu.dot_dimension_numbers<[1], [0], [0], [1], [0, 0, 1, 1], [], []>} : vector<32x128xbf16>, vector<128x128xbf16>, vector<32x128xf32> -> vector<32x128xf32>
    %98 = arith.addf %90, %97 : vector<32x128xf32>
    %c11 = arith.constant 11 : index
    %c0_85 = arith.constant 0 : index
    %c0_86 = arith.constant 0 : index
    %99 = vector.load %arg3[%c11, %c0_85, %c0_86] : memref<16x32x128xbf16, #tpu.memory_space<vmem>>, vector<1x32x128xbf16>
    %100 = vector.shape_cast %99 : vector<1x32x128xbf16> to vector<32x128xbf16>
    %cst_87 = arith.constant dense<0.000000e+00> : vector<32x128xf32>
    %101 = tpu.matmul %100, %11, %cst_87 {dimension_numbers = #tpu.dot_dimension_numbers<[1], [0], [0], [1], [0, 0, 1, 1], [], []>} : vector<32x128xbf16>, vector<128x128xbf16>, vector<32x128xf32> -> vector<32x128xf32>
    %102 = arith.truncf %101 : vector<32x128xf32> to vector<32x128xbf16>
    %c11_88 = arith.constant 11 : index
    %c0_89 = arith.constant 0 : index
    %c0_90 = arith.constant 0 : index
    %103 = vector.load %arg4[%c11_88, %c0_89, %c0_90] : memref<16x128x128xbf16, #tpu.memory_space<vmem>>, vector<1x128x128xbf16>
    %104 = vector.shape_cast %103 : vector<1x128x128xbf16> to vector<128x128xbf16>
    %cst_91 = arith.constant dense<0.000000e+00> : vector<32x128xf32>
    %105 = tpu.matmul %102, %104, %cst_91 {dimension_numbers = #tpu.dot_dimension_numbers<[1], [0], [0], [1], [0, 0, 1, 1], [], []>} : vector<32x128xbf16>, vector<128x128xbf16>, vector<32x128xf32> -> vector<32x128xf32>
    %106 = arith.addf %98, %105 : vector<32x128xf32>
    %c12 = arith.constant 12 : index
    %c0_92 = arith.constant 0 : index
    %c0_93 = arith.constant 0 : index
    %107 = vector.load %arg3[%c12, %c0_92, %c0_93] : memref<16x32x128xbf16, #tpu.memory_space<vmem>>, vector<1x32x128xbf16>
    %108 = vector.shape_cast %107 : vector<1x32x128xbf16> to vector<32x128xbf16>
    %cst_94 = arith.constant dense<0.000000e+00> : vector<32x128xf32>
    %109 = tpu.matmul %108, %11, %cst_94 {dimension_numbers = #tpu.dot_dimension_numbers<[1], [0], [0], [1], [0, 0, 1, 1], [], []>} : vector<32x128xbf16>, vector<128x128xbf16>, vector<32x128xf32> -> vector<32x128xf32>
    %110 = arith.truncf %109 : vector<32x128xf32> to vector<32x128xbf16>
    %c12_95 = arith.constant 12 : index
    %c0_96 = arith.constant 0 : index
    %c0_97 = arith.constant 0 : index
    %111 = vector.load %arg4[%c12_95, %c0_96, %c0_97] : memref<16x128x128xbf16, #tpu.memory_space<vmem>>, vector<1x128x128xbf16>
    %112 = vector.shape_cast %111 : vector<1x128x128xbf16> to vector<128x128xbf16>
    %cst_98 = arith.constant dense<0.000000e+00> : vector<32x128xf32>
    %113 = tpu.matmul %110, %112, %cst_98 {dimension_numbers = #tpu.dot_dimension_numbers<[1], [0], [0], [1], [0, 0, 1, 1], [], []>} : vector<32x128xbf16>, vector<128x128xbf16>, vector<32x128xf32> -> vector<32x128xf32>
    %114 = arith.addf %106, %113 : vector<32x128xf32>
    %c13 = arith.constant 13 : index
    %c0_99 = arith.constant 0 : index
    %c0_100 = arith.constant 0 : index
    %115 = vector.load %arg3[%c13, %c0_99, %c0_100] : memref<16x32x128xbf16, #tpu.memory_space<vmem>>, vector<1x32x128xbf16>
    %116 = vector.shape_cast %115 : vector<1x32x128xbf16> to vector<32x128xbf16>
    %cst_101 = arith.constant dense<0.000000e+00> : vector<32x128xf32>
    %117 = tpu.matmul %116, %11, %cst_101 {dimension_numbers = #tpu.dot_dimension_numbers<[1], [0], [0], [1], [0, 0, 1, 1], [], []>} : vector<32x128xbf16>, vector<128x128xbf16>, vector<32x128xf32> -> vector<32x128xf32>
    %118 = arith.truncf %117 : vector<32x128xf32> to vector<32x128xbf16>
    %c13_102 = arith.constant 13 : index
    %c0_103 = arith.constant 0 : index
    %c0_104 = arith.constant 0 : index
    %119 = vector.load %arg4[%c13_102, %c0_103, %c0_104] : memref<16x128x128xbf16, #tpu.memory_space<vmem>>, vector<1x128x128xbf16>
    %120 = vector.shape_cast %119 : vector<1x128x128xbf16> to vector<128x128xbf16>
    %cst_105 = arith.constant dense<0.000000e+00> : vector<32x128xf32>
    %121 = tpu.matmul %118, %120, %cst_105 {dimension_numbers = #tpu.dot_dimension_numbers<[1], [0], [0], [1], [0, 0, 1, 1], [], []>} : vector<32x128xbf16>, vector<128x128xbf16>, vector<32x128xf32> -> vector<32x128xf32>
    %122 = arith.addf %114, %121 : vector<32x128xf32>
    %c14 = arith.constant 14 : index
    %c0_106 = arith.constant 0 : index
    %c0_107 = arith.constant 0 : index
    %123 = vector.load %arg3[%c14, %c0_106, %c0_107] : memref<16x32x128xbf16, #tpu.memory_space<vmem>>, vector<1x32x128xbf16>
    %124 = vector.shape_cast %123 : vector<1x32x128xbf16> to vector<32x128xbf16>
    %cst_108 = arith.constant dense<0.000000e+00> : vector<32x128xf32>
    %125 = tpu.matmul %124, %11, %cst_108 {dimension_numbers = #tpu.dot_dimension_numbers<[1], [0], [0], [1], [0, 0, 1, 1], [], []>} : vector<32x128xbf16>, vector<128x128xbf16>, vector<32x128xf32> -> vector<32x128xf32>
    %126 = arith.truncf %125 : vector<32x128xf32> to vector<32x128xbf16>
    %c14_109 = arith.constant 14 : index
    %c0_110 = arith.constant 0 : index
    %c0_111 = arith.constant 0 : index
    %127 = vector.load %arg4[%c14_109, %c0_110, %c0_111] : memref<16x128x128xbf16, #tpu.memory_space<vmem>>, vector<1x128x128xbf16>
    %128 = vector.shape_cast %127 : vector<1x128x128xbf16> to vector<128x128xbf16>
    %cst_112 = arith.constant dense<0.000000e+00> : vector<32x128xf32>
    %129 = tpu.matmul %126, %128, %cst_112 {dimension_numbers = #tpu.dot_dimension_numbers<[1], [0], [0], [1], [0, 0, 1, 1], [], []>} : vector<32x128xbf16>, vector<128x128xbf16>, vector<32x128xf32> -> vector<32x128xf32>
    %130 = arith.addf %122, %129 : vector<32x128xf32>
    %c15 = arith.constant 15 : index
    %c0_113 = arith.constant 0 : index
    %c0_114 = arith.constant 0 : index
    %131 = vector.load %arg3[%c15, %c0_113, %c0_114] : memref<16x32x128xbf16, #tpu.memory_space<vmem>>, vector<1x32x128xbf16>
    %132 = vector.shape_cast %131 : vector<1x32x128xbf16> to vector<32x128xbf16>
    %cst_115 = arith.constant dense<0.000000e+00> : vector<32x128xf32>
    %133 = tpu.matmul %132, %11, %cst_115 {dimension_numbers = #tpu.dot_dimension_numbers<[1], [0], [0], [1], [0, 0, 1, 1], [], []>} : vector<32x128xbf16>, vector<128x128xbf16>, vector<32x128xf32> -> vector<32x128xf32>
    %134 = arith.truncf %133 : vector<32x128xf32> to vector<32x128xbf16>
    %c15_116 = arith.constant 15 : index
    %c0_117 = arith.constant 0 : index
    %c0_118 = arith.constant 0 : index
    %135 = vector.load %arg4[%c15_116, %c0_117, %c0_118] : memref<16x128x128xbf16, #tpu.memory_space<vmem>>, vector<1x128x128xbf16>
    %136 = vector.shape_cast %135 : vector<1x128x128xbf16> to vector<128x128xbf16>
    %cst_119 = arith.constant dense<0.000000e+00> : vector<32x128xf32>
    %137 = tpu.matmul %134, %136, %cst_119 {dimension_numbers = #tpu.dot_dimension_numbers<[1], [0], [0], [1], [0, 0, 1, 1], [], []>} : vector<32x128xbf16>, vector<128x128xbf16>, vector<32x128xf32> -> vector<32x128xf32>
    %138 = arith.addf %130, %137 : vector<32x128xf32>
    %c0_120 = arith.constant 0 : index
    %c0_121 = arith.constant 0 : index
    %139 = vector.load %arg5[%c0_120, %c0_121] : memref<1x128xf32, #tpu.memory_space<vmem>>, vector<1x128xf32>
    %140 = vector.broadcast %139 : vector<1x128xf32> to vector<32x128xf32>
    %141 = arith.addf %138, %140 : vector<32x128xf32>
    %c0_122 = arith.constant 0 : index
    %c0_123 = arith.constant 0 : index
    %142 = vector.load %arg6[%c0_122, %c0_123] : memref<1x128xf32, #tpu.memory_space<vmem>>, vector<1x128xf32>
    %c0_124 = arith.constant 0 : index
    %c0_125 = arith.constant 0 : index
    %143 = vector.load %arg7[%c0_124, %c0_125] : memref<1x128xf32, #tpu.memory_space<vmem>>, vector<1x128xf32>
    %cst_126 = arith.constant dense<0.000000e+00> : vector<128xf32>
    %144 = vector.multi_reduction <add>, %141, %cst_126 [0] : vector<32x128xf32> to vector<128xf32>
    %145 = vector.shape_cast %144 : vector<128xf32> to vector<1x128xf32>
    %cst_127 = arith.constant 3.200000e+01 : f32
    %146 = vector.broadcast %cst_127 : f32 to vector<1x128xf32>
    %147 = arith.divf %145, %146 : vector<1x128xf32>
    %148 = vector.broadcast %147 : vector<1x128xf32> to vector<32x128xf32>
    %149 = arith.subf %141, %148 : vector<32x128xf32>
    %150 = vector.broadcast %147 : vector<1x128xf32> to vector<32x128xf32>
    %151 = arith.subf %141, %150 : vector<32x128xf32>
    %152 = arith.mulf %149, %151 : vector<32x128xf32>
    %cst_128 = arith.constant dense<0.000000e+00> : vector<128xf32>
    %153 = vector.multi_reduction <add>, %152, %cst_128 [0] : vector<32x128xf32> to vector<128xf32>
    %154 = vector.shape_cast %153 : vector<128xf32> to vector<1x128xf32>
    %cst_129 = arith.constant 3.200000e+01 : f32
    %155 = vector.broadcast %cst_129 : f32 to vector<1x128xf32>
    %156 = arith.divf %154, %155 : vector<1x128xf32>
    %157 = vector.broadcast %147 : vector<1x128xf32> to vector<32x128xf32>
    %158 = arith.subf %141, %157 : vector<32x128xf32>
    %cst_130 = arith.constant 9.99999974E-6 : f32
    %159 = vector.broadcast %cst_130 : f32 to vector<1x128xf32>
    %160 = arith.addf %156, %159 : vector<1x128xf32>
    %161 = math.rsqrt %160 : vector<1x128xf32>
    %162 = vector.broadcast %161 : vector<1x128xf32> to vector<32x128xf32>
    %163 = arith.mulf %158, %162 : vector<32x128xf32>
    %164 = vector.broadcast %142 : vector<1x128xf32> to vector<32x128xf32>
    %165 = arith.mulf %163, %164 : vector<32x128xf32>
    %166 = vector.broadcast %143 : vector<1x128xf32> to vector<32x128xf32>
    %167 = arith.addf %165, %166 : vector<32x128xf32>
    %cst_131 = arith.constant 0.000000e+00 : f32
    %168 = vector.broadcast %cst_131 : f32 to vector<32x128xf32>
    %169 = arith.cmpf ogt, %167, %168 : vector<32x128xf32>
    %cst_132 = arith.constant 2.000000e-01 : f32
    %170 = vector.broadcast %cst_132 : f32 to vector<32x128xf32>
    %171 = arith.mulf %170, %167 : vector<32x128xf32>
    %172 = arith.select %169, %167, %171 : vector<32x128xi1>, vector<32x128xf32>
    %173 = arith.truncf %172 : vector<32x128xf32> to vector<32x128xbf16>
    %c0_133 = arith.constant 0 : index
    %c0_134 = arith.constant 0 : index
    %c0_135 = arith.constant 0 : index
    %174 = vector.load %arg8[%c0_133, %c0_134, %c0_135] : memref<16x8x32xbf16, #tpu.memory_space<vmem>>, vector<1x8x32xbf16>
    %175 = vector.shape_cast %174 : vector<1x8x32xbf16> to vector<8x32xbf16>
    %cst_136 = arith.constant dense<0.000000e+00> : vector<8x128xf32>
    %176 = tpu.matmul %175, %173, %cst_136 {dimension_numbers = #tpu.dot_dimension_numbers<[1], [0], [0], [1], [0, 0, 1, 1], [], []>} : vector<8x32xbf16>, vector<32x128xbf16>, vector<8x128xf32> -> vector<8x128xf32>
    %177 = arith.truncf %176 : vector<8x128xf32> to vector<8x128xbf16>
    %c0_137 = arith.constant 0 : index
    %c0_138 = arith.constant 0 : index
    %c0_139 = arith.constant 0 : index
    %178 = vector.load %arg9[%c0_137, %c0_138, %c0_139] : memref<16x128x256xbf16, #tpu.memory_space<vmem>>, vector<1x128x256xbf16>
    %179 = vector.shape_cast %178 : vector<1x128x256xbf16> to vector<128x256xbf16>
    %cst_140 = arith.constant dense<0.000000e+00> : vector<8x256xf32>
    %180 = tpu.matmul %177, %179, %cst_140 {dimension_numbers = #tpu.dot_dimension_numbers<[1], [0], [0], [1], [0, 0, 1, 1], [], []>} : vector<8x128xbf16>, vector<128x256xbf16>, vector<8x256xf32> -> vector<8x256xf32>
    %c1_141 = arith.constant 1 : index
    %c0_142 = arith.constant 0 : index
    %c0_143 = arith.constant 0 : index
    %181 = vector.load %arg8[%c1_141, %c0_142, %c0_143] : memref<16x8x32xbf16, #tpu.memory_space<vmem>>, vector<1x8x32xbf16>
    %182 = vector.shape_cast %181 : vector<1x8x32xbf16> to vector<8x32xbf16>
    %cst_144 = arith.constant dense<0.000000e+00> : vector<8x128xf32>
    %183 = tpu.matmul %182, %173, %cst_144 {dimension_numbers = #tpu.dot_dimension_numbers<[1], [0], [0], [1], [0, 0, 1, 1], [], []>} : vector<8x32xbf16>, vector<32x128xbf16>, vector<8x128xf32> -> vector<8x128xf32>
    %184 = arith.truncf %183 : vector<8x128xf32> to vector<8x128xbf16>
    %c1_145 = arith.constant 1 : index
    %c0_146 = arith.constant 0 : index
    %c0_147 = arith.constant 0 : index
    %185 = vector.load %arg9[%c1_145, %c0_146, %c0_147] : memref<16x128x256xbf16, #tpu.memory_space<vmem>>, vector<1x128x256xbf16>
    %186 = vector.shape_cast %185 : vector<1x128x256xbf16> to vector<128x256xbf16>
    %cst_148 = arith.constant dense<0.000000e+00> : vector<8x256xf32>
    %187 = tpu.matmul %184, %186, %cst_148 {dimension_numbers = #tpu.dot_dimension_numbers<[1], [0], [0], [1], [0, 0, 1, 1], [], []>} : vector<8x128xbf16>, vector<128x256xbf16>, vector<8x256xf32> -> vector<8x256xf32>
    %188 = arith.addf %180, %187 : vector<8x256xf32>
    %c2_149 = arith.constant 2 : index
    %c0_150 = arith.constant 0 : index
    %c0_151 = arith.constant 0 : index
    %189 = vector.load %arg8[%c2_149, %c0_150, %c0_151] : memref<16x8x32xbf16, #tpu.memory_space<vmem>>, vector<1x8x32xbf16>
    %190 = vector.shape_cast %189 : vector<1x8x32xbf16> to vector<8x32xbf16>
    %cst_152 = arith.constant dense<0.000000e+00> : vector<8x128xf32>
    %191 = tpu.matmul %190, %173, %cst_152 {dimension_numbers = #tpu.dot_dimension_numbers<[1], [0], [0], [1], [0, 0, 1, 1], [], []>} : vector<8x32xbf16>, vector<32x128xbf16>, vector<8x128xf32> -> vector<8x128xf32>
    %192 = arith.truncf %191 : vector<8x128xf32> to vector<8x128xbf16>
    %c2_153 = arith.constant 2 : index
    %c0_154 = arith.constant 0 : index
    %c0_155 = arith.constant 0 : index
    %193 = vector.load %arg9[%c2_153, %c0_154, %c0_155] : memref<16x128x256xbf16, #tpu.memory_space<vmem>>, vector<1x128x256xbf16>
    %194 = vector.shape_cast %193 : vector<1x128x256xbf16> to vector<128x256xbf16>
    %cst_156 = arith.constant dense<0.000000e+00> : vector<8x256xf32>
    %195 = tpu.matmul %192, %194, %cst_156 {dimension_numbers = #tpu.dot_dimension_numbers<[1], [0], [0], [1], [0, 0, 1, 1], [], []>} : vector<8x128xbf16>, vector<128x256xbf16>, vector<8x256xf32> -> vector<8x256xf32>
    %196 = arith.addf %188, %195 : vector<8x256xf32>
    %c3_157 = arith.constant 3 : index
    %c0_158 = arith.constant 0 : index
    %c0_159 = arith.constant 0 : index
    %197 = vector.load %arg8[%c3_157, %c0_158, %c0_159] : memref<16x8x32xbf16, #tpu.memory_space<vmem>>, vector<1x8x32xbf16>
    %198 = vector.shape_cast %197 : vector<1x8x32xbf16> to vector<8x32xbf16>
    %cst_160 = arith.constant dense<0.000000e+00> : vector<8x128xf32>
    %199 = tpu.matmul %198, %173, %cst_160 {dimension_numbers = #tpu.dot_dimension_numbers<[1], [0], [0], [1], [0, 0, 1, 1], [], []>} : vector<8x32xbf16>, vector<32x128xbf16>, vector<8x128xf32> -> vector<8x128xf32>
    %200 = arith.truncf %199 : vector<8x128xf32> to vector<8x128xbf16>
    %c3_161 = arith.constant 3 : index
    %c0_162 = arith.constant 0 : index
    %c0_163 = arith.constant 0 : index
    %201 = vector.load %arg9[%c3_161, %c0_162, %c0_163] : memref<16x128x256xbf16, #tpu.memory_space<vmem>>, vector<1x128x256xbf16>
    %202 = vector.shape_cast %201 : vector<1x128x256xbf16> to vector<128x256xbf16>
    %cst_164 = arith.constant dense<0.000000e+00> : vector<8x256xf32>
    %203 = tpu.matmul %200, %202, %cst_164 {dimension_numbers = #tpu.dot_dimension_numbers<[1], [0], [0], [1], [0, 0, 1, 1], [], []>} : vector<8x128xbf16>, vector<128x256xbf16>, vector<8x256xf32> -> vector<8x256xf32>
    %204 = arith.addf %196, %203 : vector<8x256xf32>
    %c4_165 = arith.constant 4 : index
    %c0_166 = arith.constant 0 : index
    %c0_167 = arith.constant 0 : index
    %205 = vector.load %arg8[%c4_165, %c0_166, %c0_167] : memref<16x8x32xbf16, #tpu.memory_space<vmem>>, vector<1x8x32xbf16>
    %206 = vector.shape_cast %205 : vector<1x8x32xbf16> to vector<8x32xbf16>
    %cst_168 = arith.constant dense<0.000000e+00> : vector<8x128xf32>
    %207 = tpu.matmul %206, %173, %cst_168 {dimension_numbers = #tpu.dot_dimension_numbers<[1], [0], [0], [1], [0, 0, 1, 1], [], []>} : vector<8x32xbf16>, vector<32x128xbf16>, vector<8x128xf32> -> vector<8x128xf32>
    %208 = arith.truncf %207 : vector<8x128xf32> to vector<8x128xbf16>
    %c4_169 = arith.constant 4 : index
    %c0_170 = arith.constant 0 : index
    %c0_171 = arith.constant 0 : index
    %209 = vector.load %arg9[%c4_169, %c0_170, %c0_171] : memref<16x128x256xbf16, #tpu.memory_space<vmem>>, vector<1x128x256xbf16>
    %210 = vector.shape_cast %209 : vector<1x128x256xbf16> to vector<128x256xbf16>
    %cst_172 = arith.constant dense<0.000000e+00> : vector<8x256xf32>
    %211 = tpu.matmul %208, %210, %cst_172 {dimension_numbers = #tpu.dot_dimension_numbers<[1], [0], [0], [1], [0, 0, 1, 1], [], []>} : vector<8x128xbf16>, vector<128x256xbf16>, vector<8x256xf32> -> vector<8x256xf32>
    %212 = arith.addf %204, %211 : vector<8x256xf32>
    %c5_173 = arith.constant 5 : index
    %c0_174 = arith.constant 0 : index
    %c0_175 = arith.constant 0 : index
    %213 = vector.load %arg8[%c5_173, %c0_174, %c0_175] : memref<16x8x32xbf16, #tpu.memory_space<vmem>>, vector<1x8x32xbf16>
    %214 = vector.shape_cast %213 : vector<1x8x32xbf16> to vector<8x32xbf16>
    %cst_176 = arith.constant dense<0.000000e+00> : vector<8x128xf32>
    %215 = tpu.matmul %214, %173, %cst_176 {dimension_numbers = #tpu.dot_dimension_numbers<[1], [0], [0], [1], [0, 0, 1, 1], [], []>} : vector<8x32xbf16>, vector<32x128xbf16>, vector<8x128xf32> -> vector<8x128xf32>
    %216 = arith.truncf %215 : vector<8x128xf32> to vector<8x128xbf16>
    %c5_177 = arith.constant 5 : index
    %c0_178 = arith.constant 0 : index
    %c0_179 = arith.constant 0 : index
    %217 = vector.load %arg9[%c5_177, %c0_178, %c0_179] : memref<16x128x256xbf16, #tpu.memory_space<vmem>>, vector<1x128x256xbf16>
    %218 = vector.shape_cast %217 : vector<1x128x256xbf16> to vector<128x256xbf16>
    %cst_180 = arith.constant dense<0.000000e+00> : vector<8x256xf32>
    %219 = tpu.matmul %216, %218, %cst_180 {dimension_numbers = #tpu.dot_dimension_numbers<[1], [0], [0], [1], [0, 0, 1, 1], [], []>} : vector<8x128xbf16>, vector<128x256xbf16>, vector<8x256xf32> -> vector<8x256xf32>
    %220 = arith.addf %212, %219 : vector<8x256xf32>
    %c6_181 = arith.constant 6 : index
    %c0_182 = arith.constant 0 : index
    %c0_183 = arith.constant 0 : index
    %221 = vector.load %arg8[%c6_181, %c0_182, %c0_183] : memref<16x8x32xbf16, #tpu.memory_space<vmem>>, vector<1x8x32xbf16>
    %222 = vector.shape_cast %221 : vector<1x8x32xbf16> to vector<8x32xbf16>
    %cst_184 = arith.constant dense<0.000000e+00> : vector<8x128xf32>
    %223 = tpu.matmul %222, %173, %cst_184 {dimension_numbers = #tpu.dot_dimension_numbers<[1], [0], [0], [1], [0, 0, 1, 1], [], []>} : vector<8x32xbf16>, vector<32x128xbf16>, vector<8x128xf32> -> vector<8x128xf32>
    %224 = arith.truncf %223 : vector<8x128xf32> to vector<8x128xbf16>
    %c6_185 = arith.constant 6 : index
    %c0_186 = arith.constant 0 : index
    %c0_187 = arith.constant 0 : index
    %225 = vector.load %arg9[%c6_185, %c0_186, %c0_187] : memref<16x128x256xbf16, #tpu.memory_space<vmem>>, vector<1x128x256xbf16>
    %226 = vector.shape_cast %225 : vector<1x128x256xbf16> to vector<128x256xbf16>
    %cst_188 = arith.constant dense<0.000000e+00> : vector<8x256xf32>
    %227 = tpu.matmul %224, %226, %cst_188 {dimension_numbers = #tpu.dot_dimension_numbers<[1], [0], [0], [1], [0, 0, 1, 1], [], []>} : vector<8x128xbf16>, vector<128x256xbf16>, vector<8x256xf32> -> vector<8x256xf32>
    %228 = arith.addf %220, %227 : vector<8x256xf32>
    %c7_189 = arith.constant 7 : index
    %c0_190 = arith.constant 0 : index
    %c0_191 = arith.constant 0 : index
    %229 = vector.load %arg8[%c7_189, %c0_190, %c0_191] : memref<16x8x32xbf16, #tpu.memory_space<vmem>>, vector<1x8x32xbf16>
    %230 = vector.shape_cast %229 : vector<1x8x32xbf16> to vector<8x32xbf16>
    %cst_192 = arith.constant dense<0.000000e+00> : vector<8x128xf32>
    %231 = tpu.matmul %230, %173, %cst_192 {dimension_numbers = #tpu.dot_dimension_numbers<[1], [0], [0], [1], [0, 0, 1, 1], [], []>} : vector<8x32xbf16>, vector<32x128xbf16>, vector<8x128xf32> -> vector<8x128xf32>
    %232 = arith.truncf %231 : vector<8x128xf32> to vector<8x128xbf16>
    %c7_193 = arith.constant 7 : index
    %c0_194 = arith.constant 0 : index
    %c0_195 = arith.constant 0 : index
    %233 = vector.load %arg9[%c7_193, %c0_194, %c0_195] : memref<16x128x256xbf16, #tpu.memory_space<vmem>>, vector<1x128x256xbf16>
    %234 = vector.shape_cast %233 : vector<1x128x256xbf16> to vector<128x256xbf16>
    %cst_196 = arith.constant dense<0.000000e+00> : vector<8x256xf32>
    %235 = tpu.matmul %232, %234, %cst_196 {dimension_numbers = #tpu.dot_dimension_numbers<[1], [0], [0], [1], [0, 0, 1, 1], [], []>} : vector<8x128xbf16>, vector<128x256xbf16>, vector<8x256xf32> -> vector<8x256xf32>
    %236 = arith.addf %228, %235 : vector<8x256xf32>
    %c8_197 = arith.constant 8 : index
    %c0_198 = arith.constant 0 : index
    %c0_199 = arith.constant 0 : index
    %237 = vector.load %arg8[%c8_197, %c0_198, %c0_199] : memref<16x8x32xbf16, #tpu.memory_space<vmem>>, vector<1x8x32xbf16>
    %238 = vector.shape_cast %237 : vector<1x8x32xbf16> to vector<8x32xbf16>
    %cst_200 = arith.constant dense<0.000000e+00> : vector<8x128xf32>
    %239 = tpu.matmul %238, %173, %cst_200 {dimension_numbers = #tpu.dot_dimension_numbers<[1], [0], [0], [1], [0, 0, 1, 1], [], []>} : vector<8x32xbf16>, vector<32x128xbf16>, vector<8x128xf32> -> vector<8x128xf32>
    %240 = arith.truncf %239 : vector<8x128xf32> to vector<8x128xbf16>
    %c8_201 = arith.constant 8 : index
    %c0_202 = arith.constant 0 : index
    %c0_203 = arith.constant 0 : index
    %241 = vector.load %arg9[%c8_201, %c0_202, %c0_203] : memref<16x128x256xbf16, #tpu.memory_space<vmem>>, vector<1x128x256xbf16>
    %242 = vector.shape_cast %241 : vector<1x128x256xbf16> to vector<128x256xbf16>
    %cst_204 = arith.constant dense<0.000000e+00> : vector<8x256xf32>
    %243 = tpu.matmul %240, %242, %cst_204 {dimension_numbers = #tpu.dot_dimension_numbers<[1], [0], [0], [1], [0, 0, 1, 1], [], []>} : vector<8x128xbf16>, vector<128x256xbf16>, vector<8x256xf32> -> vector<8x256xf32>
    %244 = arith.addf %236, %243 : vector<8x256xf32>
    %c9_205 = arith.constant 9 : index
    %c0_206 = arith.constant 0 : index
    %c0_207 = arith.constant 0 : index
    %245 = vector.load %arg8[%c9_205, %c0_206, %c0_207] : memref<16x8x32xbf16, #tpu.memory_space<vmem>>, vector<1x8x32xbf16>
    %246 = vector.shape_cast %245 : vector<1x8x32xbf16> to vector<8x32xbf16>
    %cst_208 = arith.constant dense<0.000000e+00> : vector<8x128xf32>
    %247 = tpu.matmul %246, %173, %cst_208 {dimension_numbers = #tpu.dot_dimension_numbers<[1], [0], [0], [1], [0, 0, 1, 1], [], []>} : vector<8x32xbf16>, vector<32x128xbf16>, vector<8x128xf32> -> vector<8x128xf32>
    %248 = arith.truncf %247 : vector<8x128xf32> to vector<8x128xbf16>
    %c9_209 = arith.constant 9 : index
    %c0_210 = arith.constant 0 : index
    %c0_211 = arith.constant 0 : index
    %249 = vector.load %arg9[%c9_209, %c0_210, %c0_211] : memref<16x128x256xbf16, #tpu.memory_space<vmem>>, vector<1x128x256xbf16>
    %250 = vector.shape_cast %249 : vector<1x128x256xbf16> to vector<128x256xbf16>
    %cst_212 = arith.constant dense<0.000000e+00> : vector<8x256xf32>
    %251 = tpu.matmul %248, %250, %cst_212 {dimension_numbers = #tpu.dot_dimension_numbers<[1], [0], [0], [1], [0, 0, 1, 1], [], []>} : vector<8x128xbf16>, vector<128x256xbf16>, vector<8x256xf32> -> vector<8x256xf32>
    %252 = arith.addf %244, %251 : vector<8x256xf32>
    %c10_213 = arith.constant 10 : index
    %c0_214 = arith.constant 0 : index
    %c0_215 = arith.constant 0 : index
    %253 = vector.load %arg8[%c10_213, %c0_214, %c0_215] : memref<16x8x32xbf16, #tpu.memory_space<vmem>>, vector<1x8x32xbf16>
    %254 = vector.shape_cast %253 : vector<1x8x32xbf16> to vector<8x32xbf16>
    %cst_216 = arith.constant dense<0.000000e+00> : vector<8x128xf32>
    %255 = tpu.matmul %254, %173, %cst_216 {dimension_numbers = #tpu.dot_dimension_numbers<[1], [0], [0], [1], [0, 0, 1, 1], [], []>} : vector<8x32xbf16>, vector<32x128xbf16>, vector<8x128xf32> -> vector<8x128xf32>
    %256 = arith.truncf %255 : vector<8x128xf32> to vector<8x128xbf16>
    %c10_217 = arith.constant 10 : index
    %c0_218 = arith.constant 0 : index
    %c0_219 = arith.constant 0 : index
    %257 = vector.load %arg9[%c10_217, %c0_218, %c0_219] : memref<16x128x256xbf16, #tpu.memory_space<vmem>>, vector<1x128x256xbf16>
    %258 = vector.shape_cast %257 : vector<1x128x256xbf16> to vector<128x256xbf16>
    %cst_220 = arith.constant dense<0.000000e+00> : vector<8x256xf32>
    %259 = tpu.matmul %256, %258, %cst_220 {dimension_numbers = #tpu.dot_dimension_numbers<[1], [0], [0], [1], [0, 0, 1, 1], [], []>} : vector<8x128xbf16>, vector<128x256xbf16>, vector<8x256xf32> -> vector<8x256xf32>
    %260 = arith.addf %252, %259 : vector<8x256xf32>
    %c11_221 = arith.constant 11 : index
    %c0_222 = arith.constant 0 : index
    %c0_223 = arith.constant 0 : index
    %261 = vector.load %arg8[%c11_221, %c0_222, %c0_223] : memref<16x8x32xbf16, #tpu.memory_space<vmem>>, vector<1x8x32xbf16>
    %262 = vector.shape_cast %261 : vector<1x8x32xbf16> to vector<8x32xbf16>
    %cst_224 = arith.constant dense<0.000000e+00> : vector<8x128xf32>
    %263 = tpu.matmul %262, %173, %cst_224 {dimension_numbers = #tpu.dot_dimension_numbers<[1], [0], [0], [1], [0, 0, 1, 1], [], []>} : vector<8x32xbf16>, vector<32x128xbf16>, vector<8x128xf32> -> vector<8x128xf32>
    %264 = arith.truncf %263 : vector<8x128xf32> to vector<8x128xbf16>
    %c11_225 = arith.constant 11 : index
    %c0_226 = arith.constant 0 : index
    %c0_227 = arith.constant 0 : index
    %265 = vector.load %arg9[%c11_225, %c0_226, %c0_227] : memref<16x128x256xbf16, #tpu.memory_space<vmem>>, vector<1x128x256xbf16>
    %266 = vector.shape_cast %265 : vector<1x128x256xbf16> to vector<128x256xbf16>
    %cst_228 = arith.constant dense<0.000000e+00> : vector<8x256xf32>
    %267 = tpu.matmul %264, %266, %cst_228 {dimension_numbers = #tpu.dot_dimension_numbers<[1], [0], [0], [1], [0, 0, 1, 1], [], []>} : vector<8x128xbf16>, vector<128x256xbf16>, vector<8x256xf32> -> vector<8x256xf32>
    %268 = arith.addf %260, %267 : vector<8x256xf32>
    %c12_229 = arith.constant 12 : index
    %c0_230 = arith.constant 0 : index
    %c0_231 = arith.constant 0 : index
    %269 = vector.load %arg8[%c12_229, %c0_230, %c0_231] : memref<16x8x32xbf16, #tpu.memory_space<vmem>>, vector<1x8x32xbf16>
    %270 = vector.shape_cast %269 : vector<1x8x32xbf16> to vector<8x32xbf16>
    %cst_232 = arith.constant dense<0.000000e+00> : vector<8x128xf32>
    %271 = tpu.matmul %270, %173, %cst_232 {dimension_numbers = #tpu.dot_dimension_numbers<[1], [0], [0], [1], [0, 0, 1, 1], [], []>} : vector<8x32xbf16>, vector<32x128xbf16>, vector<8x128xf32> -> vector<8x128xf32>
    %272 = arith.truncf %271 : vector<8x128xf32> to vector<8x128xbf16>
    %c12_233 = arith.constant 12 : index
    %c0_234 = arith.constant 0 : index
    %c0_235 = arith.constant 0 : index
    %273 = vector.load %arg9[%c12_233, %c0_234, %c0_235] : memref<16x128x256xbf16, #tpu.memory_space<vmem>>, vector<1x128x256xbf16>
    %274 = vector.shape_cast %273 : vector<1x128x256xbf16> to vector<128x256xbf16>
    %cst_236 = arith.constant dense<0.000000e+00> : vector<8x256xf32>
    %275 = tpu.matmul %272, %274, %cst_236 {dimension_numbers = #tpu.dot_dimension_numbers<[1], [0], [0], [1], [0, 0, 1, 1], [], []>} : vector<8x128xbf16>, vector<128x256xbf16>, vector<8x256xf32> -> vector<8x256xf32>
    %276 = arith.addf %268, %275 : vector<8x256xf32>
    %c13_237 = arith.constant 13 : index
    %c0_238 = arith.constant 0 : index
    %c0_239 = arith.constant 0 : index
    %277 = vector.load %arg8[%c13_237, %c0_238, %c0_239] : memref<16x8x32xbf16, #tpu.memory_space<vmem>>, vector<1x8x32xbf16>
    %278 = vector.shape_cast %277 : vector<1x8x32xbf16> to vector<8x32xbf16>
    %cst_240 = arith.constant dense<0.000000e+00> : vector<8x128xf32>
    %279 = tpu.matmul %278, %173, %cst_240 {dimension_numbers = #tpu.dot_dimension_numbers<[1], [0], [0], [1], [0, 0, 1, 1], [], []>} : vector<8x32xbf16>, vector<32x128xbf16>, vector<8x128xf32> -> vector<8x128xf32>
    %280 = arith.truncf %279 : vector<8x128xf32> to vector<8x128xbf16>
    %c13_241 = arith.constant 13 : index
    %c0_242 = arith.constant 0 : index
    %c0_243 = arith.constant 0 : index
    %281 = vector.load %arg9[%c13_241, %c0_242, %c0_243] : memref<16x128x256xbf16, #tpu.memory_space<vmem>>, vector<1x128x256xbf16>
    %282 = vector.shape_cast %281 : vector<1x128x256xbf16> to vector<128x256xbf16>
    %cst_244 = arith.constant dense<0.000000e+00> : vector<8x256xf32>
    %283 = tpu.matmul %280, %282, %cst_244 {dimension_numbers = #tpu.dot_dimension_numbers<[1], [0], [0], [1], [0, 0, 1, 1], [], []>} : vector<8x128xbf16>, vector<128x256xbf16>, vector<8x256xf32> -> vector<8x256xf32>
    %284 = arith.addf %276, %283 : vector<8x256xf32>
    %c14_245 = arith.constant 14 : index
    %c0_246 = arith.constant 0 : index
    %c0_247 = arith.constant 0 : index
    %285 = vector.load %arg8[%c14_245, %c0_246, %c0_247] : memref<16x8x32xbf16, #tpu.memory_space<vmem>>, vector<1x8x32xbf16>
    %286 = vector.shape_cast %285 : vector<1x8x32xbf16> to vector<8x32xbf16>
    %cst_248 = arith.constant dense<0.000000e+00> : vector<8x128xf32>
    %287 = tpu.matmul %286, %173, %cst_248 {dimension_numbers = #tpu.dot_dimension_numbers<[1], [0], [0], [1], [0, 0, 1, 1], [], []>} : vector<8x32xbf16>, vector<32x128xbf16>, vector<8x128xf32> -> vector<8x128xf32>
    %288 = arith.truncf %287 : vector<8x128xf32> to vector<8x128xbf16>
    %c14_249 = arith.constant 14 : index
    %c0_250 = arith.constant 0 : index
    %c0_251 = arith.constant 0 : index
    %289 = vector.load %arg9[%c14_249, %c0_250, %c0_251] : memref<16x128x256xbf16, #tpu.memory_space<vmem>>, vector<1x128x256xbf16>
    %290 = vector.shape_cast %289 : vector<1x128x256xbf16> to vector<128x256xbf16>
    %cst_252 = arith.constant dense<0.000000e+00> : vector<8x256xf32>
    %291 = tpu.matmul %288, %290, %cst_252 {dimension_numbers = #tpu.dot_dimension_numbers<[1], [0], [0], [1], [0, 0, 1, 1], [], []>} : vector<8x128xbf16>, vector<128x256xbf16>, vector<8x256xf32> -> vector<8x256xf32>
    %292 = arith.addf %284, %291 : vector<8x256xf32>
    %c15_253 = arith.constant 15 : index
    %c0_254 = arith.constant 0 : index
    %c0_255 = arith.constant 0 : index
    %293 = vector.load %arg8[%c15_253, %c0_254, %c0_255] : memref<16x8x32xbf16, #tpu.memory_space<vmem>>, vector<1x8x32xbf16>
    %294 = vector.shape_cast %293 : vector<1x8x32xbf16> to vector<8x32xbf16>
    %cst_256 = arith.constant dense<0.000000e+00> : vector<8x128xf32>
    %295 = tpu.matmul %294, %173, %cst_256 {dimension_numbers = #tpu.dot_dimension_numbers<[1], [0], [0], [1], [0, 0, 1, 1], [], []>} : vector<8x32xbf16>, vector<32x128xbf16>, vector<8x128xf32> -> vector<8x128xf32>
    %296 = arith.truncf %295 : vector<8x128xf32> to vector<8x128xbf16>
    %c15_257 = arith.constant 15 : index
    %c0_258 = arith.constant 0 : index
    %c0_259 = arith.constant 0 : index
    %297 = vector.load %arg9[%c15_257, %c0_258, %c0_259] : memref<16x128x256xbf16, #tpu.memory_space<vmem>>, vector<1x128x256xbf16>
    %298 = vector.shape_cast %297 : vector<1x128x256xbf16> to vector<128x256xbf16>
    %cst_260 = arith.constant dense<0.000000e+00> : vector<8x256xf32>
    %299 = tpu.matmul %296, %298, %cst_260 {dimension_numbers = #tpu.dot_dimension_numbers<[1], [0], [0], [1], [0, 0, 1, 1], [], []>} : vector<8x128xbf16>, vector<128x256xbf16>, vector<8x256xf32> -> vector<8x256xf32>
    %300 = arith.addf %292, %299 : vector<8x256xf32>
    %c0_261 = arith.constant 0 : index
    %c0_262 = arith.constant 0 : index
    %301 = vector.load %arg10[%c0_261, %c0_262] : memref<1x256xf32, #tpu.memory_space<vmem>>, vector<1x256xf32>
    %302 = vector.broadcast %301 : vector<1x256xf32> to vector<8x256xf32>
    %303 = arith.addf %300, %302 : vector<8x256xf32>
    %c0_263 = arith.constant 0 : index
    %c0_264 = arith.constant 0 : index
    %304 = vector.load %arg11[%c0_263, %c0_264] : memref<1x256xf32, #tpu.memory_space<vmem>>, vector<1x256xf32>
    %c0_265 = arith.constant 0 : index
    %c0_266 = arith.constant 0 : index
    %305 = vector.load %arg12[%c0_265, %c0_266] : memref<1x256xf32, #tpu.memory_space<vmem>>, vector<1x256xf32>
    %cst_267 = arith.constant dense<0.000000e+00> : vector<256xf32>
    %306 = vector.multi_reduction <add>, %303, %cst_267 [0] : vector<8x256xf32> to vector<256xf32>
    %307 = vector.shape_cast %306 : vector<256xf32> to vector<1x256xf32>
    %cst_268 = arith.constant 8.000000e+00 : f32
    %308 = vector.broadcast %cst_268 : f32 to vector<1x256xf32>
    %309 = arith.divf %307, %308 : vector<1x256xf32>
    %310 = vector.broadcast %309 : vector<1x256xf32> to vector<8x256xf32>
    %311 = arith.subf %303, %310 : vector<8x256xf32>
    %312 = vector.broadcast %309 : vector<1x256xf32> to vector<8x256xf32>
    %313 = arith.subf %303, %312 : vector<8x256xf32>
    %314 = arith.mulf %311, %313 : vector<8x256xf32>
    %cst_269 = arith.constant dense<0.000000e+00> : vector<256xf32>
    %315 = vector.multi_reduction <add>, %314, %cst_269 [0] : vector<8x256xf32> to vector<256xf32>
    %316 = vector.shape_cast %315 : vector<256xf32> to vector<1x256xf32>
    %cst_270 = arith.constant 8.000000e+00 : f32
    %317 = vector.broadcast %cst_270 : f32 to vector<1x256xf32>
    %318 = arith.divf %316, %317 : vector<1x256xf32>
    %319 = vector.broadcast %309 : vector<1x256xf32> to vector<8x256xf32>
    %320 = arith.subf %303, %319 : vector<8x256xf32>
    %cst_271 = arith.constant 9.99999974E-6 : f32
    %321 = vector.broadcast %cst_271 : f32 to vector<1x256xf32>
    %322 = arith.addf %318, %321 : vector<1x256xf32>
    %323 = math.rsqrt %322 : vector<1x256xf32>
    %324 = vector.broadcast %323 : vector<1x256xf32> to vector<8x256xf32>
    %325 = arith.mulf %320, %324 : vector<8x256xf32>
    %326 = vector.broadcast %304 : vector<1x256xf32> to vector<8x256xf32>
    %327 = arith.mulf %325, %326 : vector<8x256xf32>
    %328 = vector.broadcast %305 : vector<1x256xf32> to vector<8x256xf32>
    %329 = arith.addf %327, %328 : vector<8x256xf32>
    %cst_272 = arith.constant 0.000000e+00 : f32
    %330 = vector.broadcast %cst_272 : f32 to vector<8x256xf32>
    %331 = arith.cmpf ogt, %329, %330 : vector<8x256xf32>
    %cst_273 = arith.constant 2.000000e-01 : f32
    %332 = vector.broadcast %cst_273 : f32 to vector<8x256xf32>
    %333 = arith.mulf %332, %329 : vector<8x256xf32>
    %334 = arith.select %331, %329, %333 : vector<8x256xi1>, vector<8x256xf32>
    %335 = arith.truncf %334 : vector<8x256xf32> to vector<8x256xbf16>
    %cst_274 = arith.constant 0.000000e+00 : f32
    %336 = vector.broadcast %cst_274 : f32 to vector<2x1xf32>
    %c0_275 = arith.constant 0 : index
    %c0_276 = arith.constant 0 : index
    %c0_277 = arith.constant 0 : index
    %337 = vector.load %arg13[%c0_275, %c0_276, %c0_277] : memref<4x2x8xbf16, #tpu.memory_space<vmem>>, vector<1x2x8xbf16>
    %338 = vector.shape_cast %337 : vector<1x2x8xbf16> to vector<2x8xbf16>
    %cst_278 = arith.constant dense<0.000000e+00> : vector<2x256xf32>
    %339 = tpu.matmul %338, %335, %cst_278 {dimension_numbers = #tpu.dot_dimension_numbers<[1], [0], [0], [1], [0, 0, 1, 1], [], []>} : vector<2x8xbf16>, vector<8x256xbf16>, vector<2x256xf32> -> vector<2x256xf32>
    %c0_279 = arith.constant 0 : index
    %c0_280 = arith.constant 0 : index
    %c0_281 = arith.constant 0 : index
    %340 = vector.load %arg14[%c0_279, %c0_280, %c0_281] : memref<4x1x256xbf16, #tpu.memory_space<vmem>>, vector<1x1x256xbf16>
    %341 = vector.shape_cast %340 : vector<1x1x256xbf16> to vector<1x256xbf16>
    %342 = arith.extf %341 : vector<1x256xbf16> to vector<1x256xf32>
    %343 = vector.broadcast %342 : vector<1x256xf32> to vector<2x256xf32>
    %344 = arith.mulf %339, %343 : vector<2x256xf32>
    %cst_282 = arith.constant dense<0.000000e+00> : vector<2xf32>
    %345 = vector.multi_reduction <add>, %344, %cst_282 [1] : vector<2x256xf32> to vector<2xf32>
    %346 = vector.shape_cast %345 : vector<2xf32> to vector<2x1xf32>
    %347 = arith.addf %336, %346 : vector<2x1xf32>
    %c1_283 = arith.constant 1 : index
    %c0_284 = arith.constant 0 : index
    %c0_285 = arith.constant 0 : index
    %348 = vector.load %arg13[%c1_283, %c0_284, %c0_285] : memref<4x2x8xbf16, #tpu.memory_space<vmem>>, vector<1x2x8xbf16>
    %349 = vector.shape_cast %348 : vector<1x2x8xbf16> to vector<2x8xbf16>
    %cst_286 = arith.constant dense<0.000000e+00> : vector<2x256xf32>
    %350 = tpu.matmul %349, %335, %cst_286 {dimension_numbers = #tpu.dot_dimension_numbers<[1], [0], [0], [1], [0, 0, 1, 1], [], []>} : vector<2x8xbf16>, vector<8x256xbf16>, vector<2x256xf32> -> vector<2x256xf32>
    %c1_287 = arith.constant 1 : index
    %c0_288 = arith.constant 0 : index
    %c0_289 = arith.constant 0 : index
    %351 = vector.load %arg14[%c1_287, %c0_288, %c0_289] : memref<4x1x256xbf16, #tpu.memory_space<vmem>>, vector<1x1x256xbf16>
    %352 = vector.shape_cast %351 : vector<1x1x256xbf16> to vector<1x256xbf16>
    %353 = arith.extf %352 : vector<1x256xbf16> to vector<1x256xf32>
    %354 = vector.broadcast %353 : vector<1x256xf32> to vector<2x256xf32>
    %355 = arith.mulf %350, %354 : vector<2x256xf32>
    %cst_290 = arith.constant dense<0.000000e+00> : vector<2xf32>
    %356 = vector.multi_reduction <add>, %355, %cst_290 [1] : vector<2x256xf32> to vector<2xf32>
    %357 = vector.shape_cast %356 : vector<2xf32> to vector<2x1xf32>
    %358 = arith.addf %347, %357 : vector<2x1xf32>
    %c2_291 = arith.constant 2 : index
    %c0_292 = arith.constant 0 : index
    %c0_293 = arith.constant 0 : index
    %359 = vector.load %arg13[%c2_291, %c0_292, %c0_293] : memref<4x2x8xbf16, #tpu.memory_space<vmem>>, vector<1x2x8xbf16>
    %360 = vector.shape_cast %359 : vector<1x2x8xbf16> to vector<2x8xbf16>
    %cst_294 = arith.constant dense<0.000000e+00> : vector<2x256xf32>
    %361 = tpu.matmul %360, %335, %cst_294 {dimension_numbers = #tpu.dot_dimension_numbers<[1], [0], [0], [1], [0, 0, 1, 1], [], []>} : vector<2x8xbf16>, vector<8x256xbf16>, vector<2x256xf32> -> vector<2x256xf32>
    %c2_295 = arith.constant 2 : index
    %c0_296 = arith.constant 0 : index
    %c0_297 = arith.constant 0 : index
    %362 = vector.load %arg14[%c2_295, %c0_296, %c0_297] : memref<4x1x256xbf16, #tpu.memory_space<vmem>>, vector<1x1x256xbf16>
    %363 = vector.shape_cast %362 : vector<1x1x256xbf16> to vector<1x256xbf16>
    %364 = arith.extf %363 : vector<1x256xbf16> to vector<1x256xf32>
    %365 = vector.broadcast %364 : vector<1x256xf32> to vector<2x256xf32>
    %366 = arith.mulf %361, %365 : vector<2x256xf32>
    %cst_298 = arith.constant dense<0.000000e+00> : vector<2xf32>
    %367 = vector.multi_reduction <add>, %366, %cst_298 [1] : vector<2x256xf32> to vector<2xf32>
    %368 = vector.shape_cast %367 : vector<2xf32> to vector<2x1xf32>
    %369 = arith.addf %358, %368 : vector<2x1xf32>
    %c3_299 = arith.constant 3 : index
    %c0_300 = arith.constant 0 : index
    %c0_301 = arith.constant 0 : index
    %370 = vector.load %arg13[%c3_299, %c0_300, %c0_301] : memref<4x2x8xbf16, #tpu.memory_space<vmem>>, vector<1x2x8xbf16>
    %371 = vector.shape_cast %370 : vector<1x2x8xbf16> to vector<2x8xbf16>
    %cst_302 = arith.constant dense<0.000000e+00> : vector<2x256xf32>
    %372 = tpu.matmul %371, %335, %cst_302 {dimension_numbers = #tpu.dot_dimension_numbers<[1], [0], [0], [1], [0, 0, 1, 1], [], []>} : vector<2x8xbf16>, vector<8x256xbf16>, vector<2x256xf32> -> vector<2x256xf32>
    %c3_303 = arith.constant 3 : index
    %c0_304 = arith.constant 0 : index
    %c0_305 = arith.constant 0 : index
    %373 = vector.load %arg14[%c3_303, %c0_304, %c0_305] : memref<4x1x256xbf16, #tpu.memory_space<vmem>>, vector<1x1x256xbf16>
    %374 = vector.shape_cast %373 : vector<1x1x256xbf16> to vector<1x256xbf16>
    %375 = arith.extf %374 : vector<1x256xbf16> to vector<1x256xf32>
    %376 = vector.broadcast %375 : vector<1x256xf32> to vector<2x256xf32>
    %377 = arith.mulf %372, %376 : vector<2x256xf32>
    %cst_306 = arith.constant dense<0.000000e+00> : vector<2xf32>
    %378 = vector.multi_reduction <add>, %377, %cst_306 [1] : vector<2x256xf32> to vector<2xf32>
    %379 = vector.shape_cast %378 : vector<2xf32> to vector<2x1xf32>
    %380 = arith.addf %369, %379 : vector<2x1xf32>
    %c0_307 = arith.constant 0 : index
    %c0_308 = arith.constant 0 : index
    %381 = vector.load %arg15[%c0_307, %c0_308] : memref<1x1xf32, #tpu.memory_space<vmem>>, vector<1x1xf32>
    %382 = vector.broadcast %381 : vector<1x1xf32> to vector<2x1xf32>
    %383 = arith.addf %380, %382 : vector<2x1xf32>
    %c0_309 = arith.constant 0 : index
    %c0_310 = arith.constant 0 : index
    %384 = vector.load %arg16[%c0_309, %c0_310] : memref<2x1xf32, #tpu.memory_space<vmem>>, vector<2x1xf32>
    tpu.vector_store %arg16[%c0_309, %c0_310], %383 {strides = array<i32>} : memref<2x1xf32, #tpu.memory_space<vmem>>, vector<2x1xf32>,
    return
  }
}

</mosaic_0001>

<bundles_post_ra>
// kernel: discriminator_forward.1
= control target key start
LH: loop header
LB: loop body
LE: loop exit
PB: predicated region body
PF: predicated region fallthrough
CT: control target
= control target key end

     0   :  { %s7955_s0 = inlined_call_operand.vmem [shape: bf16[128,16], index: 0, kind: input, shape index: {}]   ;;  %s7956_s1 = inlined_call_operand.vmem [shape: bf16[16,128], index: 1, kind: input, shape index: {}]   ;;  %s7957_s2 = inlined_call_operand.vmem [shape: f32[1,128], index: 2, kind: input, shape index: {}]   ;;  %s7958_s3 = inlined_call_operand.vmem [shape: bf16[16,32,128], index: 3, kind: input, shape index: {}]   ;;  %s7959_s4 = inlined_call_operand.hbm [shape: bf16[16,128,128], index: 4, kind: input, shape index: {}]   ;;  %s7960_s5 = inlined_call_operand.vmem [shape: f32[1,128], index: 5, kind: input, shape index: {}]   ;;  %s7961_s6 = inlined_call_operand.vmem [shape: f32[1,128], index: 6, kind: input, shape index: {}]   ;;  %s7962_s7 = inlined_call_operand.vmem [shape: f32[1,128], index: 7, kind: input, shape index: {}]   ;;  %s7963_s8 = inlined_call_operand.vmem [shape: bf16[16,8,32], index: 8, kind: input, shape index: {}]   ;;  %s7964_s9 = inlined_call_operand.hbm [shape: bf16[16,128,256], index: 9, kind: input, shape index: {}]   ;;  %s7965_s10 = inlined_call_operand.vmem [shape: f32[1,256], index: 10, kind: input, shape index: {}]   ;;  %s7966_s11 = inlined_call_operand.vmem [shape: f32[1,256], index: 11, kind: input, shape index: {}]   ;;  %s7967_s12 = inlined_call_operand.vmem [shape: f32[1,256], index: 12, kind: input, shape index: {}]   ;;  %s7968_s13 = inlined_call_operand.vmem [shape: bf16[4,2,8], index: 13, kind: input, shape index: {}]   ;;  %s7969_s14 = inlined_call_operand.vmem [shape: bf16[4,1,256], index: 14, kind: input, shape index: {}]   ;;  %s7970_s15 = inlined_call_operand.<no memory space> [shape: f32[1,1], index: 15, kind: input, shape index: {}]   ;;  %s7971_s16 = inlined_call_operand.vmem [shape: f32[2,1], index: 16, kind: output, shape index: {}]  }
   0x1   :  { %7973 = sst [smem:[#allocation9_spill]] %s7955_s0  ;;  %v21_v0 = vstv %s7970_s15 }
   0x2   :  { %22 = vst [vmem:[#allocation2] sm:$0x1] %v21_v0 }
   0x3   :  { %23 = vsyncpa [#allocation4], 0  ;;  %s37_s25 = sshll.u32 %s7959_s4, 4  ;;  %s38_s25 = int_to_ptr.hbm [resolvable:$true] %s37_s25 }
   0x4   :  { %24 = vsyncpa [#allocation6], 0  ;;  %s7303_s26 = smov [#allocation3]   ;;  %s58_s30 = sshll.u32 %s7964_s9, 4  ;;  %s59_s30 = int_to_ptr.hbm [resolvable:$true] %s58_s30 }
   0x5   :  { %s39_s27 = sshll.u32 %s7303_s26, 4  ;;  %s7304_s0 = smov 64   ;;  %s40_s27 = int_to_ptr.vmem [resolvable:$true] %s39_s27 }
   0x6   :  { %s7305_s17 = smov 4   ;;  %s7306_s15 = smov [#allocation5]  }
   0x7   :  { %45 = dma.hbm_to_vmem [thread:$0]  %s38_s25, 16384, %s40_s27, [#allocation4], %s7304_s0, %s7304_s0, %s7305_s17  }
   0x8   :  { %s60_s18 = sshll.u32 %s7306_s15, 4  ;;  %s7307_s19 = smov 128   ;;  %s61_s18 = int_to_ptr.vmem [resolvable:$true] %s60_s18 }
   0x9   :  { %s7308_s20 = smov 8  }
   0xa   :  { %66 = dma.hbm_to_vmem [thread:$0]  %s59_s30, 32768, %s61_s18, [#allocation6], %s7307_s19, %s7307_s19, %s7308_s20  }
   0xb   :  { %7299 = dma.done.wait [#allocation4], 16384  }
   0xc   :  { %7300 = vsyncadd [#allocation4], 4294950912 }
   0xd   :  { %7301 = dma.done.wait [#allocation6], 32768  }
   0xe   :  { %7302 = vsyncadd [#allocation6], 4294934528  ;;  %v6811_v1 = vld [vmem:[%s7956_s1] sm:$0xff]  ;;  %s7974_s23 = sld [smem:[#allocation9_spill]]  ;;  %vm156_vm0 = vcmask 130048  }
   0xf   :  { %188 = vmatpush.bf16.msra.mxu0 %v6811_v1  ;;  %v7451_v25 = vld [vmem:[%s7957_s2] ss:$0 sm:$0xff] }
  0x14   :  { %v6803_v2 = vld [vmem:[%s7974_s23] sm:$0xff]  ;;  %v6804_v3 = vld [vmem:[%s7974_s23 + $0x8] sm:$0xff]  ;;  %v6805_v4 = vld [vmem:[%s7974_s23 + $0x10] sm:$0xff] }
  0x15   :  { %5026 = vmatmul.msk.bf16.vlgmr.msra.gmra.mxu0 %vm156_vm0, %v6803_v2  ;;  %v6806_v5 = vld [vmem:[%s7974_s23 + $0x18] sm:$0xff]  ;;  %v6807_v6 = vld [vmem:[%s7974_s23 + $0x20] sm:$0xff]  ;;  %v6808_v7 = vld [vmem:[%s7974_s23 + $0x28] sm:$0xff] }
  0x16   :  { %v6809_v8 = vld [vmem:[%s7974_s23 + $0x30] sm:$0xff]  ;;  %v6810_v9 = vld [vmem:[%s7974_s23 + $0x38] sm:$0xff] }
  0x25   :  { %5027 = vmatmul.msk.bf16.gmra.mxu0 %vm156_vm0, %v6804_v3 }
  0x35   :  { %5028 = vmatmul.msk.bf16.gmra.mxu0 %vm156_vm0, %v6805_v4 }
  0x45   :  { %5029 = vmatmul.msk.bf16.gmra.mxu0 %vm156_vm0, %v6806_v5 }
  0x55   :  { %5030 = vmatmul.msk.bf16.gmra.mxu0 %vm156_vm0, %v6807_v6 }
  0x65   :  { %5031 = vmatmul.msk.bf16.gmra.mxu0 %vm156_vm0, %v6808_v7 }
  0x75   :  { %5032 = vmatmul.msk.bf16.gmra.mxu0 %vm156_vm0, %v6809_v8 }
  0x85   :  { %5033 = vmatmul.msk.bf16.gmra.mxu0 %vm156_vm0, %v6810_v9 }
  0x92   :  { %v7440_v10 = vpop.f32.mrf.mxu0 }
  0x93   :  { %v191_v7 = vadd.f32 %v7451_v25, %v7440_v10 }
  0x95   :  { %vm230_vm0 = vcmp.gt.f32.partialorder %v191_v7, 0.0 }
  0x9a   :  { %v7442_v11 = vpop.f32.mrf.mxu0 }
  0x9b   :  { %v193_v4 = vadd.f32 %v7451_v25, %v7442_v11  ;;  %v246_v11 = vmul.f32 0.2, %v191_v7 }
  0x9d   :  { %vm231_vm15 = vcmp.gt.f32.partialorder %v193_v4, 0.0 }
  0xa2   :  { %v7444_v12 = vpop.f32.mrf.mxu0 }
  0xa3   :  { %v196_v0 = vadd.f32 %v7451_v25, %v7444_v12 }
  0xa5   :  { %v248_v8 = vmul.f32 0.2, %v196_v0  ;;  %vm232_vm14 = vcmp.gt.f32.partialorder %v196_v0, 0.0 }
  0xaa   :  { %v7446_v13 = vpop.f32.mrf.mxu0 }
  0xab   :  { %v198_v61 = vadd.f32 %v7451_v25, %v7446_v13  ;;  %v247_v13 = vmul.f32 0.2, %v193_v4 }
  0xad   :  { %v249_v5 = vmul.f32 0.2, %v198_v61  ;;  %vm233_vm13 = vcmp.gt.f32.partialorder %v198_v61, 0.0 }
  0xb2   :  { %v200_v14 = vpop.f32.mrf.mxu0 }
  0xb3   :  { %v201_v57 = vadd.f32 %v7451_v25, %v200_v14  ;;  %v265_v14 = vsel %vm233_vm13, %v198_v61, %v249_v5  ;;  %v6838_v61 = vld [vmem:[#allocation3 + $0xa0] sm:$0xff] }
  0xb5   :  { %v250_v1 = vmul.f32 0.2, %v201_v57  ;;  %vm234_vm12 = vcmp.gt.f32.partialorder %v201_v57, 0.0 }
  0xb7   :  { %v266_v9 = vsel %vm234_vm12, %v201_v57, %v250_v1  ;;  %v6841_v57 = vld [vmem:[#allocation3 + $0xb8] sm:$0xff]  ;;  %v6834_v1 = vld [vmem:[#allocation3 + $0x80] sm:$0xff] }
  0xba   :  { %v202_v15 = vpop.f32.mrf.mxu0 }
  0xbb   :  { %v203_v54 = vadd.f32 %v7451_v25, %v202_v15  ;;  %v264_v15 = vsel %vm232_vm14, %v196_v0, %v248_v8  ;;  %v6835_v0 = vld [vmem:[#allocation3 + $0x88] sm:$0xff] }
  0xbc   :  { %v7503_v10 = vpack.c.bf16 %v265_v14, %v264_v15 }
  0xbd   :  { %v251_v62 = vmul.f32 0.2, %v203_v54  ;;  %vm235_vm11 = vcmp.gt.f32.partialorder %v203_v54, 0.0 }
  0xbf   :  { %v267_v6 = vsel %vm235_vm11, %v203_v54, %v251_v62  ;;  %v6826_v54 = vld [vmem:[#allocation3 + $0x50] sm:$0xff]  ;;  %v6837_v62 = vld [vmem:[#allocation3 + $0x98] sm:$0xff] }
  0xc0   :  { %v7498_v12 = vpack.c.bf16 %v267_v6, %v266_v9 }
  0xc2   :  { %v205_v16 = vpop.f32.mrf.mxu0 }
  0xc3   :  { %v206_v50 = vadd.f32 %v7451_v25, %v205_v16  ;;  %v263_v16 = vsel %vm231_vm15, %v193_v4, %v247_v13 }
  0xc5   :  { %v252_v58 = vmul.f32 0.2, %v206_v50  ;;  %vm236_vm10 = vcmp.gt.f32.partialorder %v206_v50, 0.0 }
  0xc7   :  { %v268_v2 = vsel %vm236_vm10, %v206_v50, %v252_v58  ;;  %v6912_v50 = vld [vmem:[%s7958_s3 + $0xa0] sm:$0xff]  ;;  %v6840_v58 = vld [vmem:[#allocation3 + $0xb0] sm:$0xff] }
  0xca   :  { %v207_v17 = vpop.f32.mrf.mxu0 }
  0xcb   :  { %v208_v47 = vadd.f32 %v7451_v25, %v207_v17  ;;  %v262_v17 = vsel %vm230_vm0, %v191_v7, %v246_v11 }
  0xcd   :  { %v253_v55 = vmul.f32 0.2, %v208_v47  ;;  %vm237_vm9 = vcmp.gt.f32.partialorder %v208_v47, 0.0 }
  0xcf   :  { %v269_v63 = vsel %vm237_vm9, %v208_v47, %v253_v55  ;;  %v6844_v47 = vld [vmem:[#allocation3 + $0xc0] sm:$0xff]  ;;  %v6825_v55 = vld [vmem:[#allocation3 + $0x48] sm:$0xff]  ;;  %vm2381_vm9 = vcmask 261120  }
  0xd0   :  { %v7489_v3 = vpack.c.bf16 %v269_v63, %v268_v2  ;;  %v6836_v63 = vld [vmem:[#allocation3 + $0x90] sm:$0xff] }
  0xd2   :  { %v210_v18 = vpop.f32.mrf.mxu0 }
  0xd3   :  { %v211_v43 = vadd.f32 %v7451_v25, %v210_v18  ;;  %v6821_v18 = vld [vmem:[#allocation3 + $0x38] sm:$0xff] }
  0xd5   :  { %v254_v51 = vmul.f32 0.2, %v211_v43  ;;  %vm238_vm8 = vcmp.gt.f32.partialorder %v211_v43, 0.0 }
  0xd7   :  { %v270_v59 = vsel %vm238_vm8, %v211_v43, %v254_v51  ;;  %v6893_v43 = vld [vmem:[%s7958_s3 + $0x88] sm:$0xff] }
  0xd8   :  { %v6828_v51 = vld [vmem:[#allocation3 + $0x60] sm:$0xff] }
  0xda   :  { %v212_v19 = vpop.f32.mrf.mxu0 }
  0xdb   :  { %v213_v40 = vadd.f32 %v7451_v25, %v212_v19  ;;  %v7508_v19 = vpack.c.bf16 %v263_v16, %v262_v17 }
  0xdd   :  { %v255_v48 = vmul.f32 0.2, %v213_v40  ;;  %vm239_vm7 = vcmp.gt.f32.partialorder %v213_v40, 0.0 }
  0xdf   :  { %v271_v56 = vsel %vm239_vm7, %v213_v40, %v255_v48  ;;  %v6847_v40 = vld [vmem:[#allocation3 + $0xd8] sm:$0xff]  ;;  %v6830_v48 = vld [vmem:[#allocation3 + $0x70] sm:$0xff] }
  0xe0   :  { %v7480_v60 = vpack.c.bf16 %v271_v56, %v270_v59  ;;  %v6824_v56 = vld [vmem:[#allocation3 + $0x40] sm:$0xff]  ;;  %v6839_v59 = vld [vmem:[#allocation3 + $0xa8] sm:$0xff] }
  0xe2   :  { %v215_v20 = vpop.f32.mrf.mxu0 }
  0xe3   :  { %v216_v35 = vadd.f32 %v7451_v25, %v215_v20  ;;  %v6812_v20 = vld [vmem:[%s7958_s3] sm:$0xff] }
  0xe5   :  { %v256_v44 = vmul.f32 0.2, %v216_v35  ;;  %vm240_vm6 = vcmp.gt.f32.partialorder %v216_v35, 0.0 }
  0xe7   :  { %v272_v52 = vsel %vm240_vm6, %v216_v35, %v256_v44  ;;  %v6832_v35 = vld [vmem:[%s7958_s3 + $0x20] sm:$0xff]  ;;  %v6845_v44 = vld [vmem:[#allocation3 + $0xc8] sm:$0xff] }
  0xea   :  { %v217_v21 = vpop.f32.mrf.mxu0 }
  0xeb   :  { %v218_v32 = vadd.f32 %v7451_v25, %v217_v21  ;;  %v6822_v21 = vld [vmem:[%s7958_s3 + $0x10] sm:$0xff] }
  0xed   :  { %v257_v41 = vmul.f32 0.2, %v218_v32  ;;  %vm241_vm5 = vcmp.gt.f32.partialorder %v218_v32, 0.0 }
  0xef   :  { %v273_v49 = vsel %vm241_vm5, %v218_v32, %v257_v41  ;;  %v6814_v32 = vld [vmem:[#allocation3] sm:$0xff]  ;;  %v6846_v41 = vld [vmem:[#allocation3 + $0xd0] sm:$0xff] }
  0xf0   :  { %v7473_v53 = vpack.c.bf16 %v273_v49, %v272_v52  ;;  %v6829_v49 = vld [vmem:[#allocation3 + $0x68] sm:$0xff]  ;;  %v6827_v52 = vld [vmem:[#allocation3 + $0x58] sm:$0xff] }
  0xf2   :  { %v220_v22 = vpop.f32.mrf.mxu0 }
  0xf3   :  { %v221_v29 = vadd.f32 %v7451_v25, %v220_v22  ;;  %v6872_v22 = vld [vmem:[%s7958_s3 + $0x60] sm:$0xff] }
  0xf5   :  { %v258_v36 = vmul.f32 0.2, %v221_v29  ;;  %vm242_vm4 = vcmp.gt.f32.partialorder %v221_v29, 0.0 }
  0xf7   :  { %v274_v45 = vsel %vm242_vm4, %v221_v29, %v258_v36  ;;  %v6873_v29 = vld [vmem:[%s7958_s3 + $0x68] sm:$0xff]  ;;  %v6892_v36 = vld [vmem:[%s7958_s3 + $0x80] sm:$0xff] }
  0xfa   :  { %v222_v23 = vpop.f32.mrf.mxu0 }
  0xfb   :  { %v223_v27 = vadd.f32 %v7451_v25, %v222_v23  ;;  %v6820_v23 = vld [vmem:[#allocation3 + $0x30] sm:$0xff] }
  0xfd   :  { %v259_v33 = vmul.f32 0.2, %v223_v27  ;;  %vm243_vm3 = vcmp.gt.f32.partialorder %v223_v27, 0.0 }
  0xff   :  { %v275_v42 = vsel %vm243_vm3, %v223_v27, %v259_v33  ;;  %v6813_v27 = vld [vmem:[%s7958_s3 + $0x8] sm:$0xff]  ;;  %v6851_v33 = vld [vmem:[#allocation3 + $0xf8] sm:$0xff] }
 0x100   :  { %v7466_v46 = vpack.c.bf16 %v275_v42, %v274_v45  ;;  %v6833_v42 = vld [vmem:[%s7958_s3 + $0x28] sm:$0xff]  ;;  %v6831_v45 = vld [vmem:[#allocation3 + $0x78] sm:$0xff] }
 0x101   :  { %442 = vmatpush.bf16.msra.mxu3 %v6831_v45  ;;  %v6857_v45 = vld [vmem:[#allocation3 + $0x118] sm:$0xff] }
 0x102   :  { %v225_v24 = vpop.f32.mrf.mxu0 }
 0x103   :  { %v226_v26 = vadd.f32 %v7451_v25, %v225_v24  ;;  %v6819_v24 = vld [vmem:[#allocation3 + $0x28] sm:$0xff] }
 0x105   :  { %v260_v30 = vmul.f32 0.2, %v226_v26  ;;  %vm244_vm1 = vcmp.gt.f32.partialorder %v226_v26, 0.0  ;;  %443 = vmatpush.bf16.msra.mxu3 %v6830_v48  ;;  %v6856_v48 = vld [vmem:[#allocation3 + $0x110] sm:$0xff] }
 0x107   :  { %v276_v37 = vsel %vm244_vm1, %v226_v26, %v260_v30  ;;  %v6817_v26 = vld [vmem:[#allocation3 + $0x18] sm:$0xff]  ;;  %v6816_v30 = vld [vmem:[#allocation3 + $0x10] sm:$0xff] }
 0x109   :  { %444 = vmatpush.bf16.msra.mxu3 %v6829_v49 }
 0x10a   :  { %v227_v28 = vpop.f32.mrf.mxu0 }
 0x10b   :  { %v228_v31 = vadd.f32 %v7451_v25, %v227_v28  ;;  %v6818_v25 = vld [vmem:[#allocation3 + $0x20] sm:$0xff]  ;;  %v6823_v28 = vld [vmem:[%s7958_s3 + $0x18] sm:$0xff] }
 0x10d   :  { %vm245_vm2 = vcmp.gt.f32.partialorder %v228_v31, 0.0  ;;  %v261_v34 = vmul.f32 0.2, %v228_v31  ;;  %445 = vmatpush.bf16.msra.mxu3 %v6828_v51 }
 0x10f   :  { %v277_v38 = vsel %vm245_vm2, %v228_v31, %v261_v34  ;;  %v6815_v31 = vld [vmem:[#allocation3 + $0x8] sm:$0xff]  ;;  %v6850_v34 = vld [vmem:[#allocation3 + $0xf0] sm:$0xff] }
 0x110   :  { %v7459_v39 = vpack.c.bf16 %v277_v38, %v276_v37  ;;  %v6849_v37 = vld [vmem:[#allocation3 + $0xe8] sm:$0xff]  ;;  %v6848_v38 = vld [vmem:[#allocation3 + $0xe0] sm:$0xff] }
 0x111   :  { %446 = vmatpush.bf16.msra.mxu3 %v6827_v52  ;;  %v6855_v52 = vld [vmem:[#allocation3 + $0x108] sm:$0xff] }
 0x112   :  { %302 = vmatpush.bf16.msra.mxu1 %v7459_v39  ;;  %356 = vmatpush.bf16.msra.mxu2 %v7459_v39 }
 0x113   :  { %1049 = vmatpush.bf16.msrb.mxu0 %v7459_v39 }
 0x115   :  { %447 = vmatpush.bf16.msra.mxu3 %v6826_v54  ;;  %v6854_v54 = vld [vmem:[#allocation3 + $0x100] sm:$0xff] }
 0x116   :  { %303 = vmatpush.bf16.msra.mxu1 %v7466_v46  ;;  %357 = vmatpush.bf16.msra.mxu2 %v7466_v46 }
 0x117   :  { %1050 = vmatpush.bf16.msrb.mxu0 %v7466_v46 }
 0x119   :  { %448 = vmatpush.bf16.msra.mxu3 %v6825_v55 }
 0x11a   :  { %304 = vmatpush.bf16.msra.mxu1 %v7473_v53  ;;  %358 = vmatpush.bf16.msra.mxu2 %v7473_v53 }
 0x11b   :  { %1051 = vmatpush.bf16.msrb.mxu0 %v7473_v53 }
 0x11d   :  { %449 = vmatpush.bf16.msra.mxu3 %v6824_v56 }
 0x11e   :  { %305 = vmatpush.bf16.msra.mxu1 %v7480_v60  ;;  %359 = vmatpush.bf16.msra.mxu2 %v7480_v60 }
 0x11f   :  { %1052 = vmatpush.bf16.msrb.mxu0 %v7480_v60 }
 0x121   :  { %631 = vmatpush.bf16.msrb.mxu3 %v6841_v57 }
 0x122   :  { %306 = vmatpush.bf16.msra.mxu1 %v7489_v3  ;;  %360 = vmatpush.bf16.msra.mxu2 %v7489_v3 }
 0x123   :  { %1053 = vmatpush.bf16.msrb.mxu0 %v7489_v3 }
 0x125   :  { %632 = vmatpush.bf16.msrb.mxu3 %v6840_v58 }
 0x126   :  { %307 = vmatpush.bf16.msra.mxu1 %v7498_v12  ;;  %361 = vmatpush.bf16.msra.mxu2 %v7498_v12 }
 0x127   :  { %1054 = vmatpush.bf16.msrb.mxu0 %v7498_v12 }
 0x129   :  { %633 = vmatpush.bf16.msrb.mxu3 %v6839_v59 }
 0x12a   :  { %308 = vmatpush.bf16.msra.mxu1 %v7503_v10  ;;  %362 = vmatpush.bf16.msra.mxu2 %v7503_v10 }
 0x12b   :  { %1055 = vmatpush.bf16.msrb.mxu0 %v7503_v10 }
 0x12d   :  { %634 = vmatpush.bf16.msrb.mxu3 %v6838_v61 }
 0x12e   :  { %309 = vmatpush.bf16.msra.mxu1 %v7508_v19  ;;  %363 = vmatpush.bf16.msra.mxu2 %v7508_v19 }
 0x12f   :  { %1056 = vmatpush.bf16.msrb.mxu0 %v7508_v19 }
 0x131   :  { %310 = vmatmul.bf16.vlgmr.msra.gmra.mxu1 %v6812_v20  ;;  %364 = vmatmul.bf16.vlgmr.msra.gmra.mxu2 %v6822_v21 }
 0x132   :  { %509 = vmatpush.bf16.msrb.mxu1 %v6821_v18  ;;  %545 = vmatpush.bf16.msrb.mxu2 %v7459_v39  ;;  %v6842_v18 = vld [vmem:[%s7958_s3 + $0x30] sm:$0xff] }
 0x133   :  { %1301 = vmatpush.bf16.msra.mxu0 %v7459_v39  ;;  %635 = vmatpush.bf16.msrb.mxu3 %v6837_v62  ;;  %v6862_v62 = vld [vmem:[%s7958_s3 + $0x50] sm:$0xff] }
 0x134   :  { %1057 = vmatmul.bf16.vlgmr.msrb.gmra.mxu0 %v6872_v22 }
 0x136   :  { %510 = vmatpush.bf16.msrb.mxu1 %v6820_v23  ;;  %546 = vmatpush.bf16.msrb.mxu2 %v7466_v46  ;;  %v6843_v23 = vld [vmem:[%s7958_s3 + $0x38] sm:$0xff] }
 0x137   :  { %1302 = vmatpush.bf16.msra.mxu0 %v7466_v46  ;;  %636 = vmatpush.bf16.msrb.mxu3 %v6836_v63 }
 0x13a   :  { %511 = vmatpush.bf16.msrb.mxu1 %v6819_v24  ;;  %547 = vmatpush.bf16.msrb.mxu2 %v7473_v53 }
 0x13b   :  { %1303 = vmatpush.bf16.msra.mxu0 %v7473_v53  ;;  %637 = vmatpush.bf16.msrb.mxu3 %v6835_v0 }
 0x13e   :  { %512 = vmatpush.bf16.msrb.mxu1 %v6818_v25  ;;  %548 = vmatpush.bf16.msrb.mxu2 %v7480_v60 }
 0x13f   :  { %1304 = vmatpush.bf16.msra.mxu0 %v7480_v60  ;;  %638 = vmatpush.bf16.msrb.mxu3 %v6834_v1 }
 0x141   :  { %315 = vmatmul.bf16.gmra.mxu1 %v6813_v27  ;;  %369 = vmatmul.bf16.gmra.mxu2 %v6823_v28  ;;  %v6853_v27 = vld [vmem:[%s7958_s3 + $0x48] sm:$0xff] }
 0x142   :  { %513 = vmatpush.bf16.msrb.mxu1 %v6817_v26  ;;  %549 = vmatpush.bf16.msrb.mxu2 %v7489_v3  ;;  %v6852_v26 = vld [vmem:[%s7958_s3 + $0x40] sm:$0xff] }
 0x143   :  { %1305 = vmatpush.bf16.msra.mxu0 %v7489_v3 }
 0x144   :  { %1062 = vmatmul.bf16.gmra.mxu0 %v6873_v29 }
 0x146   :  { %514 = vmatpush.bf16.msrb.mxu1 %v6816_v30  ;;  %550 = vmatpush.bf16.msrb.mxu2 %v7498_v12 }
 0x147   :  { %1306 = vmatpush.bf16.msra.mxu0 %v7498_v12 }
 0x14a   :  { %515 = vmatpush.bf16.msrb.mxu1 %v6815_v31  ;;  %551 = vmatpush.bf16.msrb.mxu2 %v7503_v10 }
 0x14b   :  { %1307 = vmatpush.bf16.msra.mxu0 %v7503_v10 }
 0x14e   :  { %516 = vmatpush.bf16.msrb.mxu1 %v6814_v32  ;;  %552 = vmatpush.bf16.msrb.mxu2 %v7508_v19 }
 0x14f   :  { %1308 = vmatpush.bf16.msra.mxu0 %v7508_v19 }
 0x151   :  { %553 = vmatmul.bf16.vlgmr.msrb.gmra.mxu2 %v6832_v35  ;;  %v6861_v35 = vld [vmem:[#allocation3 + $0x138] sm:$0xff] }
 0x152   :  { %671 = vmatpush.bf16.msra.mxu1 %v7459_v39  ;;  %757 = vmatpush.bf16.msra.mxu2 %v6851_v33 }
 0x153   :  { %1553 = vmatpush.bf16.msrb.mxu0 %v7459_v39 }
 0x154   :  { %1309 = vmatmul.bf16.vlgmr.msra.gmra.mxu0 %v6892_v36 }
 0x156   :  { %672 = vmatpush.bf16.msra.mxu1 %v7466_v46  ;;  %758 = vmatpush.bf16.msra.mxu2 %v6850_v34 }
 0x157   :  { %1554 = vmatpush.bf16.msrb.mxu0 %v7466_v46 }
 0x15a   :  { %673 = vmatpush.bf16.msra.mxu1 %v7473_v53  ;;  %759 = vmatpush.bf16.msra.mxu2 %v6849_v37  ;;  %v6860_v37 = vld [vmem:[#allocation3 + $0x130] sm:$0xff] }
 0x15b   :  { %1555 = vmatpush.bf16.msrb.mxu0 %v7473_v53 }
 0x15e   :  { %674 = vmatpush.bf16.msra.mxu1 %v7480_v60  ;;  %760 = vmatpush.bf16.msra.mxu2 %v6848_v38 }
 0x15f   :  { %1556 = vmatpush.bf16.msrb.mxu0 %v7480_v60 }
 0x161   :  { %558 = vmatmul.bf16.gmra.mxu2 %v6833_v42 }
 0x162   :  { %675 = vmatpush.bf16.msra.mxu1 %v7489_v3  ;;  %761 = vmatpush.bf16.msra.mxu2 %v6847_v40 }
 0x163   :  { %1557 = vmatpush.bf16.msrb.mxu0 %v7489_v3 }
 0x164   :  { %1314 = vmatmul.bf16.gmra.mxu0 %v6893_v43  ;;  %v6858_v43 = vld [vmem:[#allocation3 + $0x120] sm:$0xff] }
 0x166   :  { %676 = vmatpush.bf16.msra.mxu1 %v7498_v12  ;;  %762 = vmatpush.bf16.msra.mxu2 %v6846_v41  ;;  %v6859_v41 = vld [vmem:[#allocation3 + $0x128] sm:$0xff] }
 0x167   :  { %1558 = vmatpush.bf16.msrb.mxu0 %v7498_v12 }
 0x16a   :  { %677 = vmatpush.bf16.msra.mxu1 %v7503_v10  ;;  %763 = vmatpush.bf16.msra.mxu2 %v6845_v44 }
 0x16b   :  { %1559 = vmatpush.bf16.msrb.mxu0 %v7503_v10 }
 0x16e   :  { %678 = vmatpush.bf16.msra.mxu1 %v7508_v19  ;;  %764 = vmatpush.bf16.msra.mxu2 %v6844_v47 }
 0x16f   :  { %1560 = vmatpush.bf16.msrb.mxu0 %v7508_v19 }
 0x172   :  { %923 = vmatpush.bf16.msrb.mxu2 %v7459_v39 }
 0x173   :  { %1805 = vmatpush.bf16.msra.mxu0 %v7459_v39 }
 0x174   :  { %1561 = vmatmul.bf16.vlgmr.msrb.gmra.mxu0 %v6912_v50 }
 0x176   :  { %924 = vmatpush.bf16.msrb.mxu2 %v7466_v46 }
 0x177   :  { %1806 = vmatpush.bf16.msra.mxu0 %v7466_v46 }
 0x17a   :  { %925 = vmatpush.bf16.msrb.mxu2 %v7473_v53 }
 0x17b   :  { %1807 = vmatpush.bf16.msra.mxu0 %v7473_v53 }
 0x17e   :  { %926 = vmatpush.bf16.msrb.mxu2 %v7480_v60 }
 0x17f   :  { %1808 = vmatpush.bf16.msra.mxu0 %v7480_v60 }
 0x182   :  { %927 = vmatpush.bf16.msrb.mxu2 %v7489_v3 }
 0x183   :  { %1809 = vmatpush.bf16.msra.mxu0 %v7489_v3 }
 0x186   :  { %928 = vmatpush.bf16.msrb.mxu2 %v7498_v12 }
 0x187   :  { %1810 = vmatpush.bf16.msra.mxu0 %v7498_v12 }
 0x18a   :  { %929 = vmatpush.bf16.msrb.mxu2 %v7503_v10 }
 0x18b   :  { %1811 = vmatpush.bf16.msra.mxu0 %v7503_v10 }
 0x18e   :  { %930 = vmatpush.bf16.msrb.mxu2 %v7508_v19 }
 0x18f   :  { %1812 = vmatpush.bf16.msra.mxu0 %v7508_v19 }
 0x193   :  { %2057 = vmatpush.bf16.msrb.mxu0 %v7459_v39 }
 0x197   :  { %2058 = vmatpush.bf16.msrb.mxu0 %v7466_v46 }
 0x19b   :  { %2059 = vmatpush.bf16.msrb.mxu0 %v7473_v53 }
 0x19f   :  { %2060 = vmatpush.bf16.msrb.mxu0 %v7480_v60 }
 0x1a3   :  { %2061 = vmatpush.bf16.msrb.mxu0 %v7489_v3 }
 0x1a7   :  { %2062 = vmatpush.bf16.msrb.mxu0 %v7498_v12 }
 0x1ab   :  { %2063 = vmatpush.bf16.msrb.mxu0 %v7503_v10 }
 0x1ae   :  { %v311_v2 = vpop.f32.mrf.mxu1 }
 0x1af   :  { %2064 = vmatpush.bf16.msrb.mxu0 %v7508_v19 }
 0x1b4   :  { %v365_v4 = vpop.f32.mrf.mxu2 }
 0x1b6   :  { %v313_v5 = vpop.f32.mrf.mxu1 }
 0x1b7   :  { %v321_v6 = vpack.c.bf16 %v313_v5, %v311_v2  ;;  %v6863_v2 = vld [vmem:[%s7958_s3 + $0x58] sm:$0xff] }
 0x1b9   :  { %517 = vmatmul.bf16.vlgmr.msrb.gmra.mxu1 %v321_v6 }
 0x1ba   :  { %883 = vmatpush.bf16.msrb.mxu1 %v6861_v35 }
 0x1bc   :  { %v367_v7 = vpop.f32.mrf.mxu2 }
 0x1bd   :  { %v375_v8 = vpack.c.bf16 %v367_v7, %v365_v4  ;;  %v6882_v7 = vld [vmem:[%s7958_s3 + $0x70] sm:$0xff] }
 0x1be   :  { %v316_v9 = vpop.f32.mrf.mxu1  ;;  %884 = vmatpush.bf16.msrb.mxu1 %v6860_v37  ;;  %v6923_v37 = vld [vmem:[%s7958_s3 + $0xb8] sm:$0xff] }
 0x1bf   :  { %450 = vmatmul.bf16.vlgmr.msra.gmra.mxu3 %v375_v8  ;;  %v6883_v8 = vld [vmem:[%s7958_s3 + $0x78] sm:$0xff] }
 0x1c0   :  { %797 = vmatpush.bf16.msra.mxu3 %v7459_v39 }
 0x1c2   :  { %885 = vmatpush.bf16.msrb.mxu1 %v6859_v41 }
 0x1c4   :  { %798 = vmatpush.bf16.msra.mxu3 %v7466_v46  ;;  %v370_v13 = vpop.f32.mrf.mxu2 }
 0x1c6   :  { %v318_v14 = vpop.f32.mrf.mxu1  ;;  %886 = vmatpush.bf16.msrb.mxu1 %v6858_v43  ;;  %v6874_v43 = vld [vmem:[#allocation3 + $0x180] sm:$0xff] }
 0x1c7   :  { %v322_v11 = vpack.c.bf16 %v318_v14, %v316_v9  ;;  %v6902_v9 = vld [vmem:[%s7958_s3 + $0x90] sm:$0xff]  ;;  %v6903_v14 = vld [vmem:[%s7958_s3 + $0x98] sm:$0xff] }
 0x1c8   :  { %799 = vmatpush.bf16.msra.mxu3 %v7473_v53 }
 0x1c9   :  { %522 = vmatmul.bf16.gmra.mxu1 %v322_v11  ;;  %v6932_v11 = vld [vmem:[%s7958_s3 + $0xc0] sm:$0xff] }
 0x1ca   :  { %887 = vmatpush.bf16.msrb.mxu1 %v6857_v45 }
 0x1cc   :  { %800 = vmatpush.bf16.msra.mxu3 %v7480_v60  ;;  %v372_v15 = vpop.f32.mrf.mxu2 }
 0x1cd   :  { %v376_v16 = vpack.c.bf16 %v372_v15, %v370_v13  ;;  %v6913_v13 = vld [vmem:[%s7958_s3 + $0xa8] sm:$0xff]  ;;  %v6871_v15 = vld [vmem:[#allocation3 + $0x178] sm:$0xff] }
 0x1ce   :  { %888 = vmatpush.bf16.msrb.mxu1 %v6856_v48  ;;  %1566 = vmatmul.bf16.gmra.mxu0 %v6913_v13  ;;  %v6895_v13 = vld [vmem:[#allocation3 + $0x208] sm:$0xff] }
 0x1cf   :  { %455 = vmatmul.bf16.gmra.mxu3 %v376_v16  ;;  %v6870_v16 = vld [vmem:[#allocation3 + $0x170] sm:$0xff] }
 0x1d0   :  { %801 = vmatpush.bf16.msra.mxu3 %v7489_v3 }
 0x1d2   :  { %889 = vmatpush.bf16.msrb.mxu1 %v6855_v52  ;;  %v6942_v52 = vld [vmem:[%s7958_s3 + $0xd0] sm:$0xff] }
 0x1d4   :  { %802 = vmatpush.bf16.msra.mxu3 %v7498_v12  ;;  %v554_v17 = vpop.f32.mrf.mxu2 }
 0x1d6   :  { %890 = vmatpush.bf16.msrb.mxu1 %v6854_v54 }
 0x1d8   :  { %803 = vmatpush.bf16.msra.mxu3 %v7503_v10 }
 0x1d9   :  { %679 = vmatmul.bf16.vlgmr.msra.gmra.mxu1 %v6842_v18  ;;  %v6881_v18 = vld [vmem:[#allocation3 + $0x1b8] sm:$0xff] }
 0x1da   :  { %1135 = vmatpush.bf16.msra.mxu1 %v6881_v18 }
 0x1dc   :  { %804 = vmatpush.bf16.msra.mxu3 %v7508_v19  ;;  %v556_v20 = vpop.f32.mrf.mxu2 }
 0x1dd   :  { %v564_v21 = vpack.c.bf16 %v556_v20, %v554_v17  ;;  %v6869_v17 = vld [vmem:[#allocation3 + $0x168] sm:$0xff]  ;;  %v6868_v20 = vld [vmem:[#allocation3 + $0x160] sm:$0xff] }
 0x1de   :  { %1813 = vmatmul.bf16.vlgmr.msra.gmra.mxu0 %v6932_v11 }
 0x1df   :  { %639 = vmatmul.bf16.vlgmr.msrb.gmra.mxu3 %v564_v21  ;;  %v6880_v21 = vld [vmem:[#allocation3 + $0x1b0] sm:$0xff] }
 0x1e0   :  { %1009 = vmatpush.bf16.msrb.mxu3 %v6871_v15  ;;  %1136 = vmatpush.bf16.msra.mxu1 %v6880_v21 }
 0x1e4   :  { %v559_v22 = vpop.f32.mrf.mxu2  ;;  %1010 = vmatpush.bf16.msrb.mxu3 %v6870_v16  ;;  %v6894_v16 = vld [vmem:[#allocation3 + $0x200] sm:$0xff] }
 0x1e8   :  { %1011 = vmatpush.bf16.msrb.mxu3 %v6869_v17  ;;  %v6910_v17 = vld [vmem:[#allocation3 + $0x270] sm:$0xff] }
 0x1e9   :  { %684 = vmatmul.bf16.gmra.mxu1 %v6843_v23  ;;  %v6933_v23 = vld [vmem:[%s7958_s3 + $0xc8] sm:$0xff] }
 0x1ec   :  { %v561_v24 = vpop.f32.mrf.mxu2  ;;  %1012 = vmatpush.bf16.msrb.mxu3 %v6868_v20  ;;  %v6921_v20 = vld [vmem:[#allocation3 + $0x2b8] sm:$0xff] }
 0x1ed   :  { %v565_v25 = vpack.c.bf16 %v561_v24, %v559_v22  ;;  %v6922_v22 = vld [vmem:[%s7958_s3 + $0xb0] sm:$0xff]  ;;  %v6867_v24 = vld [vmem:[#allocation3 + $0x158] sm:$0xff] }
 0x1ee   :  { %1818 = vmatmul.bf16.gmra.mxu0 %v6933_v23 }
 0x1ef   :  { %644 = vmatmul.bf16.gmra.mxu3 %v565_v25  ;;  %v6879_v25 = vld [vmem:[#allocation3 + $0x1a8] sm:$0xff] }
 0x1f0   :  { %1013 = vmatpush.bf16.msrb.mxu3 %v6867_v24  ;;  %1137 = vmatpush.bf16.msra.mxu1 %v6879_v25 }
 0x1ff   :  { %805 = vmatmul.bf16.vlgmr.msra.gmra.mxu3 %v6852_v26 }
 0x20f   :  { %810 = vmatmul.bf16.gmra.mxu3 %v6853_v27  ;;  %v6866_v27 = vld [vmem:[#allocation3 + $0x150] sm:$0xff] }
 0x210   :  { %1014 = vmatpush.bf16.msrb.mxu3 %v6866_v27  ;;  %v6920_v27 = vld [vmem:[#allocation3 + $0x2b0] sm:$0xff] }
 0x236   :  { %v518_v28 = vpop.f32.mrf.mxu1 }
 0x23e   :  { %v7622_v29 = vpop.f32.mrf.mxu1 }
 0x242   :  { %v451_v30 = vpop.f32.mrf.mxu3 }
 0x243   :  { %v519_v31 = vadd.f32 %v518_v28, %v451_v30  ;;  %v6878_v28 = vld [vmem:[#allocation3 + $0x1a0] sm:$0xff] }
 0x244   :  { %1138 = vmatpush.bf16.msra.mxu1 %v6878_v28 }
 0x246   :  { %v523_v32 = vpop.f32.mrf.mxu1 }
 0x24a   :  { %v7624_v33 = vpop.f32.mrf.mxu3 }
 0x24e   :  { %v7626_v34 = vpop.f32.mrf.mxu1 }
 0x252   :  { %v456_v36 = vpop.f32.mrf.mxu3 }
 0x253   :  { %v524_v38 = vadd.f32 %v523_v32, %v456_v36  ;;  %v6877_v32 = vld [vmem:[#allocation3 + $0x198] sm:$0xff]  ;;  %v6876_v36 = vld [vmem:[#allocation3 + $0x190] sm:$0xff] }
 0x254   :  { %1139 = vmatpush.bf16.msra.mxu1 %v6877_v32  ;;  %v6907_v32 = vld [vmem:[#allocation3 + $0x258] sm:$0xff] }
 0x256   :  { %v680_v40 = vpop.f32.mrf.mxu1 }
 0x258   :  { %1140 = vmatpush.bf16.msra.mxu1 %v6876_v36 }
 0x25a   :  { %v7628_v42 = vpop.f32.mrf.mxu3 }
 0x25e   :  { %v682_v44 = vpop.f32.mrf.mxu1 }
 0x25f   :  { %v690_v47 = vpack.c.bf16 %v682_v44, %v680_v40  ;;  %v6891_v40 = vld [vmem:[#allocation3 + $0x1f8] sm:$0xff]  ;;  %v6890_v44 = vld [vmem:[#allocation3 + $0x1f0] sm:$0xff] }
 0x261   :  { %765 = vmatmul.bf16.vlgmr.msra.gmra.mxu2 %v690_v47  ;;  %v6901_v47 = vld [vmem:[#allocation3 + $0x238] sm:$0xff] }
 0x262   :  { %1175 = vmatpush.bf16.msra.mxu2 %v7459_v39  ;;  %v640_v49 = vpop.f32.mrf.mxu3 }
 0x263   :  { %v7631_v50 = vadd.f32 %v640_v49, %v519_v31  ;;  %v6865_v31 = vld [vmem:[#allocation3 + $0x148] sm:$0xff] }
 0x264   :  { %1015 = vmatpush.bf16.msrb.mxu3 %v6865_v31  ;;  %v6889_v49 = vld [vmem:[#allocation3 + $0x1e8] sm:$0xff] }
 0x266   :  { %1176 = vmatpush.bf16.msra.mxu2 %v7466_v46  ;;  %v685_v51 = vpop.f32.mrf.mxu1 }
 0x26a   :  { %1177 = vmatpush.bf16.msra.mxu2 %v7473_v53  ;;  %v7635_v55 = vpop.f32.mrf.mxu3 }
 0x26e   :  { %1178 = vmatpush.bf16.msra.mxu2 %v7480_v60  ;;  %v687_v56 = vpop.f32.mrf.mxu1 }
 0x26f   :  { %v691_v57 = vpack.c.bf16 %v687_v56, %v685_v51  ;;  %v6900_v51 = vld [vmem:[#allocation3 + $0x230] sm:$0xff]  ;;  %v6899_v56 = vld [vmem:[#allocation3 + $0x228] sm:$0xff] }
 0x271   :  { %770 = vmatmul.bf16.gmra.mxu2 %v691_v57 }
 0x272   :  { %1179 = vmatpush.bf16.msra.mxu2 %v7489_v3  ;;  %v645_v58 = vpop.f32.mrf.mxu3 }
 0x273   :  { %v7639_v59 = vadd.f32 %v645_v58, %v524_v38  ;;  %v1058_v38 = vpop.f32.mrf.mxu0  ;;  %v6886_v58 = vld [vmem:[#allocation3 + $0x1d0] sm:$0xff] }
 0x276   :  { %1180 = vmatpush.bf16.msra.mxu2 %v7498_v12 }
 0x27a   :  { %1181 = vmatpush.bf16.msra.mxu2 %v7503_v10  ;;  %v7643_v61 = vpop.f32.mrf.mxu3 }
 0x27e   :  { %1182 = vmatpush.bf16.msra.mxu2 %v7508_v19 }
 0x281   :  { %931 = vmatmul.bf16.vlgmr.msrb.gmra.mxu2 %v6862_v62 }
 0x282   :  { %1427 = vmatpush.bf16.msrb.mxu2 %v7459_v39  ;;  %v806_v63 = vpop.f32.mrf.mxu3 }
 0x286   :  { %1428 = vmatpush.bf16.msrb.mxu2 %v7466_v46 }
 0x28a   :  { %1429 = vmatpush.bf16.msrb.mxu2 %v7473_v53  ;;  %v808_v0 = vpop.f32.mrf.mxu3 }
 0x28b   :  { %v816_v1 = vpack.c.bf16 %v808_v0, %v806_v63  ;;  %v6897_v0 = vld [vmem:[#allocation3 + $0x218] sm:$0xff] }
 0x28d   :  { %891 = vmatmul.bf16.vlgmr.msrb.gmra.mxu1 %v816_v1 }
 0x28e   :  { %1430 = vmatpush.bf16.msrb.mxu2 %v7480_v60 }
 0x291   :  { %936 = vmatmul.bf16.gmra.mxu2 %v6863_v2 }
 0x292   :  { %1431 = vmatpush.bf16.msrb.mxu2 %v7489_v3  ;;  %v811_v4 = vpop.f32.mrf.mxu3 }
 0x296   :  { %1432 = vmatpush.bf16.msrb.mxu2 %v7498_v12 }
 0x29a   :  { %1433 = vmatpush.bf16.msrb.mxu2 %v7503_v10  ;;  %v813_v5 = vpop.f32.mrf.mxu3 }
 0x29b   :  { %v817_v6 = vpack.c.bf16 %v813_v5, %v811_v4  ;;  %v6884_v5 = vld [vmem:[#allocation3 + $0x1c0] sm:$0xff] }
 0x29d   :  { %896 = vmatmul.bf16.gmra.mxu1 %v817_v6  ;;  %v6896_v6 = vld [vmem:[#allocation3 + $0x210] sm:$0xff] }
 0x29e   :  { %1434 = vmatpush.bf16.msrb.mxu2 %v7508_v19 }
 0x2a1   :  { %1183 = vmatmul.bf16.vlgmr.msra.gmra.mxu2 %v6882_v7 }
 0x2a2   :  { %1679 = vmatpush.bf16.msra.mxu2 %v7459_v39 }
 0x2a6   :  { %1680 = vmatpush.bf16.msra.mxu2 %v7466_v46 }
 0x2aa   :  { %1681 = vmatpush.bf16.msra.mxu2 %v7473_v53 }
 0x2ae   :  { %1682 = vmatpush.bf16.msra.mxu2 %v7480_v60 }
 0x2b1   :  { %1188 = vmatmul.bf16.gmra.mxu2 %v6883_v8  ;;  %v6943_v8 = vld [vmem:[%s7958_s3 + $0xd8] sm:$0xff] }
 0x2b2   :  { %1683 = vmatpush.bf16.msra.mxu2 %v7489_v3 }
 0x2b6   :  { %1684 = vmatpush.bf16.msra.mxu2 %v7498_v12 }
 0x2ba   :  { %1685 = vmatpush.bf16.msra.mxu2 %v7503_v10 }
 0x2be   :  { %1686 = vmatpush.bf16.msra.mxu2 %v7508_v19 }
 0x2c1   :  { %1435 = vmatmul.bf16.vlgmr.msrb.gmra.mxu2 %v6902_v9 }
 0x2c2   :  { %1931 = vmatpush.bf16.msrb.mxu2 %v7459_v39 }
 0x2c6   :  { %1932 = vmatpush.bf16.msrb.mxu2 %v7466_v46 }
 0x2ca   :  { %1933 = vmatpush.bf16.msrb.mxu2 %v7473_v53 }
 0x2ce   :  { %1934 = vmatpush.bf16.msrb.mxu2 %v7480_v60 }
 0x2d1   :  { %1440 = vmatmul.bf16.gmra.mxu2 %v6903_v14  ;;  %v6911_v14 = vld [vmem:[#allocation3 + $0x278] sm:$0xff] }
 0x2d2   :  { %1935 = vmatpush.bf16.msrb.mxu2 %v7489_v3 }
 0x2d6   :  { %1936 = vmatpush.bf16.msrb.mxu2 %v7498_v12 }
 0x2da   :  { %1937 = vmatpush.bf16.msrb.mxu2 %v7503_v10 }
 0x2de   :  { %1938 = vmatpush.bf16.msrb.mxu2 %v7508_v19 }
 0x2e1   :  { %1687 = vmatmul.bf16.vlgmr.msra.gmra.mxu2 %v6922_v22  ;;  %v6909_v22 = vld [vmem:[#allocation3 + $0x268] sm:$0xff] }
 0x2e2   :  { %2183 = vmatpush.bf16.msra.mxu2 %v7459_v39  ;;  %v6864_v39 = vld [vmem:[#allocation3 + $0x140] sm:$0xff] }
 0x2e3   :  { %1016 = vmatpush.bf16.msrb.mxu3 %v6864_v39  ;;  %v6919_v39 = vld [vmem:[#allocation3 + $0x2a8] sm:$0xff] }
 0x2e4   :  { %v766_v26 = vpop.f32.mrf.mxu2 }
 0x2e5   :  { %v7702_v30 = vadd.f32 %v766_v26, %v7631_v50  ;;  %v6888_v50 = vld [vmem:[#allocation3 + $0x1e0] sm:$0xff] }
 0x2e6   :  { %2184 = vmatpush.bf16.msra.mxu2 %v7466_v46  ;;  %v6952_v46 = vld [vmem:[%s7958_s3 + $0xe0] sm:$0xff] }
 0x2e7   :  { %2065 = vmatmul.bf16.vlgmr.msrb.gmra.mxu0 %v6952_v46  ;;  %1261 = vmatpush.bf16.msra.mxu3 %v6891_v40  ;;  %v6908_v26 = vld [vmem:[#allocation3 + $0x260] sm:$0xff]  ;;  %v6905_v40 = vld [vmem:[#allocation3 + $0x248] sm:$0xff] }
 0x2ea   :  { %2185 = vmatpush.bf16.msra.mxu2 %v7473_v53  ;;  %v6875_v53 = vld [vmem:[#allocation3 + $0x188] sm:$0xff] }
 0x2eb   :  { %1141 = vmatpush.bf16.msra.mxu1 %v6875_v53  ;;  %1262 = vmatpush.bf16.msra.mxu3 %v6890_v44  ;;  %v6904_v44 = vld [vmem:[#allocation3 + $0x240] sm:$0xff] }
 0x2ec   :  { %v7706_v35 = vpop.f32.mrf.mxu2 }
 0x2ee   :  { %2186 = vmatpush.bf16.msra.mxu2 %v7480_v60  ;;  %v1060_v60 = vpop.f32.mrf.mxu0 }
 0x2ef   :  { %v1068_v48 = vpack.c.bf16 %v1060_v60, %v1058_v38  ;;  %1142 = vmatpush.bf16.msra.mxu1 %v6874_v43  ;;  %1263 = vmatpush.bf16.msra.mxu3 %v6889_v49  ;;  %v6918_v38 = vld [vmem:[#allocation3 + $0x2a0] sm:$0xff]  ;;  %v6915_v49 = vld [vmem:[#allocation3 + $0x288] sm:$0xff] }
 0x2f1   :  { %1692 = vmatmul.bf16.gmra.mxu2 %v6923_v37  ;;  %v6906_v37 = vld [vmem:[#allocation3 + $0x250] sm:$0xff] }
 0x2f2   :  { %2187 = vmatpush.bf16.msra.mxu2 %v7489_v3  ;;  %1143 = vmatmul.bf16.vlgmr.msra.gmra.mxu1 %v1068_v48 }
 0x2f3   :  { %1387 = vmatpush.bf16.msrb.mxu1 %v6901_v47  ;;  %1264 = vmatpush.bf16.msra.mxu3 %v6888_v50  ;;  %v6963_v47 = vld [vmem:[%s7958_s3 + $0xf8] sm:$0xff] }
 0x2f4   :  { %v771_v41 = vpop.f32.mrf.mxu2  ;;  %v6931_v50 = vld [vmem:[#allocation3 + $0x2f8] sm:$0xff] }
 0x2f5   :  { %v7717_v45 = vadd.f32 %v771_v41, %v7639_v59  ;;  %v6898_v59 = vld [vmem:[#allocation3 + $0x220] sm:$0xff]  ;;  %v6917_v41 = vld [vmem:[#allocation3 + $0x298] sm:$0xff] }
 0x2f6   :  { %2188 = vmatpush.bf16.msra.mxu2 %v7498_v12  ;;  %v1063_v54 = vpop.f32.mrf.mxu0  ;;  %v6953_v12 = vld [vmem:[%s7958_s3 + $0xe8] sm:$0xff] }
 0x2f7   :  { %1388 = vmatpush.bf16.msrb.mxu1 %v6900_v51  ;;  %2070 = vmatmul.bf16.gmra.mxu0 %v6953_v12 }
 0x2fa   :  { %2189 = vmatpush.bf16.msra.mxu2 %v7503_v10  ;;  %v6887_v10 = vld [vmem:[#allocation3 + $0x1d8] sm:$0xff] }
 0x2fb   :  { %1389 = vmatpush.bf16.msrb.mxu1 %v6899_v56  ;;  %1265 = vmatpush.bf16.msra.mxu3 %v6887_v10  ;;  %v6941_v10 = vld [vmem:[#allocation3 + $0x338] sm:$0xff] }
 0x2fc   :  { %v7721_v3 = vpop.f32.mrf.mxu2 }
 0x2fe   :  { %2190 = vmatpush.bf16.msra.mxu2 %v7508_v19  ;;  %v1065_v62 = vpop.f32.mrf.mxu0  ;;  %v6885_v19 = vld [vmem:[#allocation3 + $0x1c8] sm:$0xff] }
 0x2ff   :  { %1390 = vmatpush.bf16.msrb.mxu1 %v6898_v59  ;;  %v1069_v63 = vpack.c.bf16 %v1065_v62, %v1063_v54  ;;  %1266 = vmatpush.bf16.msra.mxu3 %v6886_v58  ;;  %v6930_v54 = vld [vmem:[#allocation3 + $0x2f0] sm:$0xff]  ;;  %v6928_v59 = vld [vmem:[#allocation3 + $0x2e0] sm:$0xff] }
 0x300   :  { %v6940_v62 = vld [vmem:[#allocation3 + $0x330] sm:$0xff] }
 0x301   :  { %1939 = vmatmul.bf16.vlgmr.msrb.gmra.mxu2 %v6942_v52  ;;  %v6914_v52 = vld [vmem:[#allocation3 + $0x280] sm:$0xff] }
 0x302   :  { %1148 = vmatmul.bf16.gmra.mxu1 %v1069_v63 }
 0x303   :  { %1267 = vmatpush.bf16.msra.mxu3 %v6885_v19  ;;  %1391 = vmatpush.bf16.msrb.mxu1 %v6897_v0  ;;  %v6927_v0 = vld [vmem:[#allocation3 + $0x2d8] sm:$0xff] }
 0x304   :  { %v932_v57 = vpop.f32.mrf.mxu2 }
 0x306   :  { %v1310_v9 = vpop.f32.mrf.mxu0 }
 0x307   :  { %1392 = vmatpush.bf16.msrb.mxu1 %v6896_v6  ;;  %1268 = vmatpush.bf16.msra.mxu3 %v6884_v5  ;;  %v6926_v5 = vld [vmem:[#allocation3 + $0x2d0] sm:$0xff]  ;;  %v6938_v6 = vld [vmem:[#allocation3 + $0x320] sm:$0xff] }
 0x30a   :  { %v892_v1 = vpop.f32.mrf.mxu1 }
 0x30b   :  { %v7731_v2 = vadd.f32 %v892_v1, %v7702_v30  ;;  %1393 = vmatpush.bf16.msrb.mxu1 %v6895_v13  ;;  %v6962_v30 = vld [vmem:[%s7958_s3 + $0xf0] sm:$0xff]  ;;  %v6937_v13 = vld [vmem:[#allocation3 + $0x318] sm:$0xff] }
 0x30c   :  { %v934_v4 = vpop.f32.mrf.mxu2  ;;  %v6939_v1 = vld [vmem:[#allocation3 + $0x328] sm:$0xff] }
 0x30d   :  { %v942_v7 = vpack.c.bf16 %v934_v4, %v932_v57  ;;  %v6929_v57 = vld [vmem:[#allocation3 + $0x2e8] sm:$0xff] }
 0x30e   :  { %v1312_v18 = vpop.f32.mrf.mxu0 }
 0x30f   :  { %1017 = vmatmul.bf16.vlgmr.msrb.gmra.mxu3 %v942_v7  ;;  %v1320_v21 = vpack.c.bf16 %v1312_v18, %v1310_v9  ;;  %1394 = vmatpush.bf16.msrb.mxu1 %v6894_v16  ;;  %v6925_v9 = vld [vmem:[#allocation3 + $0x2c8] sm:$0xff]  ;;  %v6936_v16 = vld [vmem:[#allocation3 + $0x310] sm:$0xff] }
 0x310   :  { %1513 = vmatpush.bf16.msrb.mxu3 %v6911_v14 }
 0x311   :  { %1944 = vmatmul.bf16.gmra.mxu2 %v6943_v8 }
 0x312   :  { %v7736_v11 = vpop.f32.mrf.mxu1  ;;  %1395 = vmatmul.bf16.vlgmr.msrb.gmra.mxu1 %v1320_v21  ;;  %v6951_v21 = vld [vmem:[#allocation3 + $0x378] sm:$0xff] }
 0x313   :  { %1639 = vmatpush.bf16.msra.mxu1 %v6921_v20  ;;  %v6935_v20 = vld [vmem:[#allocation3 + $0x308] sm:$0xff] }
 0x314   :  { %v937_v15 = vpop.f32.mrf.mxu2  ;;  %1514 = vmatpush.bf16.msrb.mxu3 %v6910_v17 }
 0x316   :  { %v1315_v31 = vpop.f32.mrf.mxu0 }
 0x317   :  { %1640 = vmatpush.bf16.msra.mxu1 %v6920_v27  ;;  %v6961_v27 = vld [vmem:[#allocation3 + $0x3b8] sm:$0xff] }
 0x318   :  { %1515 = vmatpush.bf16.msrb.mxu3 %v6909_v22 }
 0x31a   :  { %v897_v23 = vpop.f32.mrf.mxu1 }
 0x31b   :  { %v7739_v24 = vadd.f32 %v897_v23, %v7717_v45  ;;  %1641 = vmatpush.bf16.msra.mxu1 %v6919_v39  ;;  %v6916_v45 = vld [vmem:[#allocation3 + $0x290] sm:$0xff]  ;;  %v6934_v23 = vld [vmem:[#allocation3 + $0x300] sm:$0xff] }
 0x31c   :  { %v939_v25 = vpop.f32.mrf.mxu2  ;;  %1516 = vmatpush.bf16.msrb.mxu3 %v6908_v26  ;;  %v6960_v39 = vld [vmem:[#allocation3 + $0x3b0] sm:$0xff] }
 0x31d   :  { %v943_v28 = vpack.c.bf16 %v939_v25, %v937_v15  ;;  %v6924_v15 = vld [vmem:[#allocation3 + $0x2c0] sm:$0xff]  ;;  %v6950_v25 = vld [vmem:[#allocation3 + $0x370] sm:$0xff] }
 0x31e   :  { %v1317_v46 = vpop.f32.mrf.mxu0 }
 0x31f   :  { %1022 = vmatmul.bf16.gmra.mxu3 %v943_v28  ;;  %1642 = vmatpush.bf16.msra.mxu1 %v6918_v38  ;;  %v1321_v53 = vpack.c.bf16 %v1317_v46, %v1315_v31  ;;  %v6947_v38 = vld [vmem:[#allocation3 + $0x358] sm:$0xff]  ;;  %v6959_v46 = vld [vmem:[#allocation3 + $0x3a8] sm:$0xff] }
 0x320   :  { %1517 = vmatpush.bf16.msrb.mxu3 %v6907_v32  ;;  %v6948_v32 = vld [vmem:[#allocation3 + $0x360] sm:$0xff] }
 0x321   :  { %2191 = vmatmul.bf16.vlgmr.msra.gmra.mxu2 %v6962_v30  ;;  %v6949_v30 = vld [vmem:[#allocation3 + $0x368] sm:$0xff] }
 0x322   :  { %1400 = vmatmul.bf16.gmra.mxu1 %v1321_v53 }
 0x323   :  { %1643 = vmatpush.bf16.msra.mxu1 %v6917_v41  ;;  %v6958_v41 = vld [vmem:[#allocation3 + $0x3a0] sm:$0xff] }
 0x324   :  { %v1184_v36 = vpop.f32.mrf.mxu2  ;;  %1518 = vmatpush.bf16.msrb.mxu3 %v6906_v37 }
 0x326   :  { %v1562_v48 = vpop.f32.mrf.mxu0 }
 0x327   :  { %1644 = vmatpush.bf16.msra.mxu1 %v6916_v45  ;;  %v6945_v45 = vld [vmem:[#allocation3 + $0x348] sm:$0xff] }
 0x328   :  { %1519 = vmatpush.bf16.msrb.mxu3 %v6905_v40  ;;  %v6946_v40 = vld [vmem:[#allocation3 + $0x350] sm:$0xff] }
 0x32b   :  { %1645 = vmatpush.bf16.msra.mxu1 %v6915_v49  ;;  %v6956_v49 = vld [vmem:[#allocation3 + $0x390] sm:$0xff] }
 0x32c   :  { %v1186_v43 = vpop.f32.mrf.mxu2  ;;  %1520 = vmatpush.bf16.msrb.mxu3 %v6904_v44 }
 0x32d   :  { %v1194_v60 = vpack.c.bf16 %v1186_v43, %v1184_v36 }
 0x32e   :  { %v1564_v12 = vpop.f32.mrf.mxu0 }
 0x32f   :  { %1269 = vmatmul.bf16.vlgmr.msra.gmra.mxu3 %v1194_v60  ;;  %v1572_v56 = vpack.c.bf16 %v1564_v12, %v1562_v48  ;;  %1646 = vmatpush.bf16.msra.mxu1 %v6914_v52  ;;  %v6957_v60 = vld [vmem:[#allocation3 + $0x398] sm:$0xff]  ;;  %v6944_v48 = vld [vmem:[#allocation3 + $0x340] sm:$0xff]  ;;  %v6955_v52 = vld [vmem:[#allocation3 + $0x388] sm:$0xff] }
 0x330   :  { %1765 = vmatpush.bf16.msra.mxu3 %v6931_v50 }
 0x331   :  { %2196 = vmatmul.bf16.gmra.mxu2 %v6963_v47 }
 0x332   :  { %1647 = vmatmul.bf16.vlgmr.msra.gmra.mxu1 %v1572_v56  ;;  %v6970_v56 = vld [vmem:[#allocation3 + $0x3f0] sm:$0xff] }
 0x333   :  { %1891 = vmatpush.bf16.msrb.mxu1 %v6941_v10  ;;  %v6954_v10 = vld [vmem:[#allocation3 + $0x380] sm:$0xff] }
 0x334   :  { %v1189_v51 = vpop.f32.mrf.mxu2  ;;  %1766 = vmatpush.bf16.msra.mxu3 %v6930_v54  ;;  %v6971_v54 = vld [vmem:[#allocation3 + $0x3f8] sm:$0xff] }
 0x336   :  { %v1567_v19 = vpop.f32.mrf.mxu0 }
 0x337   :  { %1892 = vmatpush.bf16.msrb.mxu1 %v6940_v62  ;;  %v7747_v62 = vpop.f32.mrf.mxu1 }
 0x338   :  { %1767 = vmatpush.bf16.msra.mxu3 %v6929_v57 }
 0x33b   :  { %1893 = vmatpush.bf16.msrb.mxu1 %v6939_v1 }
 0x33c   :  { %v1191_v58 = vpop.f32.mrf.mxu2  ;;  %1768 = vmatpush.bf16.msra.mxu3 %v6928_v59 }
 0x33d   :  { %v1195_v63 = vpack.c.bf16 %v1191_v58, %v1189_v51  ;;  %v6969_v58 = vld [vmem:[#allocation3 + $0x3e8] sm:$0xff] }
 0x33e   :  { %v1569_v7 = vpop.f32.mrf.mxu0 }
 0x33f   :  { %1274 = vmatmul.bf16.gmra.mxu3 %v1195_v63  ;;  %v1573_v8 = vpack.c.bf16 %v1569_v7, %v1567_v19  ;;  %1894 = vmatpush.bf16.msrb.mxu1 %v6938_v6  ;;  %v6968_v19 = vld [vmem:[#allocation3 + $0x3e0] sm:$0xff]  ;;  %v6966_v7 = vld [vmem:[#allocation3 + $0x3d0] sm:$0xff] }
 0x340   :  { %1769 = vmatpush.bf16.msra.mxu3 %v6927_v0 }
 0x342   :  { %1652 = vmatmul.bf16.gmra.mxu1 %v1573_v8 }
 0x343   :  { %1895 = vmatpush.bf16.msrb.mxu1 %v6937_v13 }
 0x344   :  { %v1436_v4 = vpop.f32.mrf.mxu2  ;;  %1770 = vmatpush.bf16.msra.mxu3 %v6926_v5 }
 0x346   :  { %v1814_v18 = vpop.f32.mrf.mxu0 }
 0x347   :  { %1896 = vmatpush.bf16.msrb.mxu1 %v6936_v16  ;;  %v6964_v16 = vld [vmem:[#allocation3 + $0x3c0] sm:$0xff] }
 0x348   :  { %1771 = vmatpush.bf16.msra.mxu3 %v6925_v9  ;;  %v6965_v9 = vld [vmem:[#allocation3 + $0x3c8] sm:$0xff] }
 0x34b   :  { %1897 = vmatpush.bf16.msrb.mxu1 %v6935_v20 }
 0x34c   :  { %v1438_v14 = vpop.f32.mrf.mxu2  ;;  %1772 = vmatpush.bf16.msra.mxu3 %v6924_v15 }
 0x34d   :  { %v1446_v17 = vpack.c.bf16 %v1438_v14, %v1436_v4  ;;  %v6967_v4 = vld [vmem:[#allocation3 + $0x3d8] sm:$0xff] }
 0x34e   :  { %v1816_v26 = vpop.f32.mrf.mxu0 }
 0x34f   :  { %1521 = vmatmul.bf16.vlgmr.msrb.gmra.mxu3 %v1446_v17  ;;  %v1824_v28 = vpack.c.bf16 %v1816_v26, %v1814_v18  ;;  %1898 = vmatpush.bf16.msrb.mxu1 %v6934_v23 }
 0x350   :  { %2017 = vmatpush.bf16.msrb.mxu3 %v6951_v21 }
 0x352   :  { %1899 = vmatmul.bf16.vlgmr.msrb.gmra.mxu1 %v1824_v28 }
 0x353   :  { %2143 = vmatpush.bf16.msra.mxu1 %v6961_v27 }
 0x354   :  { %v1441_v22 = vpop.f32.mrf.mxu2  ;;  %2018 = vmatpush.bf16.msrb.mxu3 %v6950_v25 }
 0x356   :  { %v1819_v37 = vpop.f32.mrf.mxu0 }
 0x357   :  { %2144 = vmatpush.bf16.msra.mxu1 %v6960_v39 }
 0x358   :  { %2019 = vmatpush.bf16.msrb.mxu3 %v6949_v30 }
 0x35b   :  { %2145 = vmatpush.bf16.msra.mxu1 %v6959_v46 }
 0x35c   :  { %v1443_v31 = vpop.f32.mrf.mxu2  ;;  %2020 = vmatpush.bf16.msrb.mxu3 %v6948_v32 }
 0x35d   :  { %v1447_v36 = vpack.c.bf16 %v1443_v31, %v1441_v22 }
 0x35e   :  { %v1821_v43 = vpop.f32.mrf.mxu0 }
 0x35f   :  { %1526 = vmatmul.bf16.gmra.mxu3 %v1447_v36  ;;  %v1825_v44 = vpack.c.bf16 %v1821_v43, %v1819_v37  ;;  %2146 = vmatpush.bf16.msra.mxu1 %v6958_v41 }
 0x360   :  { %2021 = vmatpush.bf16.msrb.mxu3 %v6947_v38 }
 0x362   :  { %1904 = vmatmul.bf16.gmra.mxu1 %v1825_v44 }
 0x363   :  { %2147 = vmatpush.bf16.msra.mxu1 %v6957_v60 }
 0x364   :  { %v1688_v53 = vpop.f32.mrf.mxu2  ;;  %2022 = vmatpush.bf16.msrb.mxu3 %v6946_v40 }
 0x366   :  { %v2066_v51 = vpop.f32.mrf.mxu0 }
 0x367   :  { %2148 = vmatpush.bf16.msra.mxu1 %v6956_v49 }
 0x368   :  { %2023 = vmatpush.bf16.msrb.mxu3 %v6945_v45 }
 0x36b   :  { %2149 = vmatpush.bf16.msra.mxu1 %v6955_v52 }
 0x36c   :  { %v1690_v47 = vpop.f32.mrf.mxu2  ;;  %2024 = vmatpush.bf16.msrb.mxu3 %v6944_v48 }
 0x36d   :  { %v1698_v50 = vpack.c.bf16 %v1690_v47, %v1688_v53 }
 0x36e   :  { %v2068_v57 = vpop.f32.mrf.mxu0 }
 0x36f   :  { %1773 = vmatmul.bf16.vlgmr.msra.gmra.mxu3 %v1698_v50  ;;  %v2076_v59 = vpack.c.bf16 %v2068_v57, %v2066_v51  ;;  %2150 = vmatpush.bf16.msra.mxu1 %v6954_v10  ;;  %v1144_v5 = vpop.f32.mrf.mxu1 }
 0x370   :  { %2269 = vmatpush.bf16.msra.mxu3 %v6971_v54 }
 0x372   :  { %2151 = vmatmul.bf16.vlgmr.msra.gmra.mxu1 %v2076_v59 }
 0x374   :  { %v1693_v12 = vpop.f32.mrf.mxu2  ;;  %2270 = vmatpush.bf16.msra.mxu3 %v6970_v56 }
 0x376   :  { %v2071_v1 = vpop.f32.mrf.mxu0 }
 0x377   :  { %v7749_v15 = vpop.f32.mrf.mxu1 }
 0x378   :  { %2271 = vmatpush.bf16.msra.mxu3 %v6969_v58 }
 0x37c   :  { %v1695_v63 = vpop.f32.mrf.mxu2  ;;  %2272 = vmatpush.bf16.msra.mxu3 %v6968_v19 }
 0x37d   :  { %v1699_v0 = vpack.c.bf16 %v1695_v63, %v1693_v12 }
 0x37e   :  { %v2073_v8 = vpop.f32.mrf.mxu0 }
 0x37f   :  { %1778 = vmatmul.bf16.gmra.mxu3 %v1699_v0  ;;  %v2077_v13 = vpack.c.bf16 %v2073_v8, %v2071_v1  ;;  %v1149_v23 = vpop.f32.mrf.mxu1 }
 0x380   :  { %2273 = vmatpush.bf16.msra.mxu3 %v6967_v4 }
 0x382   :  { %2156 = vmatmul.bf16.gmra.mxu1 %v2077_v13 }
 0x384   :  { %v1940_v6 = vpop.f32.mrf.mxu2  ;;  %2274 = vmatpush.bf16.msra.mxu3 %v6966_v7 }
 0x387   :  { %v7752_v28 = vpop.f32.mrf.mxu1 }
 0x388   :  { %2275 = vmatpush.bf16.msra.mxu3 %v6965_v9 }
 0x38c   :  { %v1942_v14 = vpop.f32.mrf.mxu2  ;;  %2276 = vmatpush.bf16.msra.mxu3 %v6964_v16  ;;  %v521_v16 = vadd.f32 %v7622_v29, %v7624_v33 }
 0x38d   :  { %v1950_v17 = vpack.c.bf16 %v1942_v14, %v1940_v6 }
 0x38f   :  { %2025 = vmatmul.bf16.vlgmr.msrb.gmra.mxu3 %v1950_v17  ;;  %v1396_v37 = vpop.f32.mrf.mxu1  ;;  %v651_v17 = vadd.f32 %v7635_v55, %v521_v16 }
 0x392   :  { %v1018_v18 = vpop.f32.mrf.mxu3 }
 0x393   :  { %v1028_v20 = vadd.f32 %v1018_v18, %v7731_v2  ;;  %v777_v18 = vadd.f32 %v7706_v35, %v651_v17 }
 0x394   :  { %v1945_v21 = vpop.f32.mrf.mxu2 }
 0x395   :  { %v1154_v22 = vadd.f32 %v1144_v5, %v1028_v20 }
 0x397   :  { %v1398_v41 = vpop.f32.mrf.mxu1 }
 0x39a   :  { %v1020_v25 = vpop.f32.mrf.mxu3 }
 0x39c   :  { %v1947_v26 = vpop.f32.mrf.mxu2 }
 0x39d   :  { %v1951_v27 = vpack.c.bf16 %v1947_v26, %v1945_v21  ;;  %v903_v21 = vadd.f32 %v7736_v11, %v777_v18 }
 0x39f   :  { %2030 = vmatmul.bf16.gmra.mxu3 %v1951_v27  ;;  %v1401_v47 = vpop.f32.mrf.mxu1 }
 0x3a2   :  { %v1023_v30 = vpop.f32.mrf.mxu3 }
 0x3a3   :  { %v1030_v31 = vadd.f32 %v1023_v30, %v7739_v24 }
 0x3a4   :  { %v2192_v32 = vpop.f32.mrf.mxu2 }
 0x3a5   :  { %v1156_v39 = vadd.f32 %v1149_v23, %v1030_v31  ;;  %v526_v31 = vadd.f32 %v7626_v34, %v7628_v42 }
 0x3a7   :  { %v1403_v50 = vpop.f32.mrf.mxu1 }
 0x3aa   :  { %v1025_v36 = vpop.f32.mrf.mxu3 }
 0x3ac   :  { %v2194_v38 = vpop.f32.mrf.mxu2 }
 0x3ad   :  { %v2202_v46 = vpack.c.bf16 %v2194_v38, %v2192_v32  ;;  %v653_v32 = vadd.f32 %v7643_v61, %v526_v31 }
 0x3af   :  { %2277 = vmatmul.bf16.vlgmr.msra.gmra.mxu3 %v2202_v46  ;;  %v1648_v54 = vpop.f32.mrf.mxu1  ;;  %v779_v33 = vadd.f32 %v7721_v3, %v653_v32 }
 0x3b2   :  { %v1270_v2 = vpop.f32.mrf.mxu3 }
 0x3b3   :  { %v1280_v53 = vadd.f32 %v1270_v2, %v1154_v22  ;;  %v1029_v22 = vadd.f32 %v1020_v25, %v903_v21 }
 0x3b4   :  { %v2197_v40 = vpop.f32.mrf.mxu2 }
 0x3b5   :  { %v1406_v43 = vadd.f32 %v1396_v37, %v1280_v53  ;;  %v1155_v26 = vadd.f32 %v7749_v15, %v1029_v22  ;;  %v905_v37 = vadd.f32 %v7747_v62, %v779_v33  ;;  %v7237_v62 = vld [vmem:[%s7960_s5] ss:$0 sm:$0xff] }
 0x3b7   :  { %v1650_v57 = vpop.f32.mrf.mxu1  ;;  %v1031_v11 = vadd.f32 %v1025_v36, %v905_v37 }
 0x3b9   :  { %v1157_v15 = vadd.f32 %v7752_v28, %v1031_v11 }
 0x3ba   :  { %v1272_v44 = vpop.f32.mrf.mxu3 }
 0x3bb   :  { %v1281_v30 = vadd.f32 %v1272_v44, %v1155_v26  ;;  %v7003_v26 = vld [vmem:[#allocation5 + $0xf4] sm:$0xf0] }
 0x3bc   :  { %v2199_v45 = vpop.f32.mrf.mxu2 }
 0x3bd   :  { %v2203_v60 = vpack.c.bf16 %v2199_v45, %v2197_v40 }
 0x3bf   :  { %2282 = vmatmul.bf16.gmra.mxu3 %v2203_v60  ;;  %v1653_v19 = vpop.f32.mrf.mxu1 }
 0x3c2   :  { %v1275_v48 = vpop.f32.mrf.mxu3 }
 0x3c3   :  { %v1282_v49 = vadd.f32 %v1275_v48, %v1156_v39  ;;  %v1407_v39 = vadd.f32 %v1398_v41, %v1281_v30 }
 0x3c5   :  { %v1408_v24 = vadd.f32 %v1401_v47, %v1282_v49 }
 0x3c7   :  { %v1655_v4 = vpop.f32.mrf.mxu1 }
 0x3ca   :  { %v1277_v51 = vpop.f32.mrf.mxu3 }
 0x3cb   :  { %v1283_v40 = vadd.f32 %v1277_v51, %v1157_v15  ;;  %v6999_v15 = vld [vmem:[#allocation5 + $0xd4] sm:$0xf0] }
 0x3cf   :  { %v1900_v6 = vpop.f32.mrf.mxu1 }
 0x3d2   :  { %v1522_v52 = vpop.f32.mrf.mxu3 }
 0x3d3   :  { %v1532_v12 = vadd.f32 %v1522_v52, %v1406_v43  ;;  %v1409_v43 = vadd.f32 %v1403_v50, %v1283_v40 }
 0x3d5   :  { %v1658_v10 = vadd.f32 %v1648_v54, %v1532_v12 }
 0x3d7   :  { %v1902_v8 = vpop.f32.mrf.mxu1 }
 0x3da   :  { %v1524_v56 = vpop.f32.mrf.mxu3 }
 0x3db   :  { %v1533_v55 = vadd.f32 %v1524_v56, %v1407_v39  ;;  %v7309_v56 = vmov 32.0   ;;  %v5787_v39 = vld [vmem:[#allocation5 + $0xe0] sm:$0xf] }
 0x3dc   :  { %7241 = vrcp.f32 %v7309_v56  ;;  %v5739_v56 = vld [vmem:[#allocation5 + $0x80] sm:$0xf] }
 0x3dd   :  { %v1659_v25 = vadd.f32 %v1650_v57, %v1533_v55 }
 0x3df   :  { %v1905_v14 = vpop.f32.mrf.mxu1 }
 0x3e2   :  { %v1527_v58 = vpop.f32.mrf.mxu3 }
 0x3e3   :  { %v1534_v59 = vadd.f32 %v1527_v58, %v1408_v24 }
 0x3e5   :  { %v1660_v61 = vadd.f32 %v1653_v19, %v1534_v59 }
 0x3e7   :  { %v1907_v23 = vpop.f32.mrf.mxu1 }
 0x3ea   :  { %v1529_v63 = vpop.f32.mrf.mxu3 }
 0x3eb   :  { %v1535_v45 = vadd.f32 %v1529_v63, %v1409_v43 }
 0x3ed   :  { %v1661_v24 = vadd.f32 %v1655_v4, %v1535_v45  ;;  %v5763_v45 = vld [vmem:[#allocation5 + $0xb0] sm:$0xf] }
 0x3ef   :  { %v2152_v29 = vpop.f32.mrf.mxu1 }
 0x3f2   :  { %v1774_v0 = vpop.f32.mrf.mxu3 }
 0x3f3   :  { %v1784_v1 = vadd.f32 %v1774_v0, %v1658_v10 }
 0x3f5   :  { %v1910_v46 = vadd.f32 %v1900_v6, %v1784_v1  ;;  %v7242_v1 = vpop.eup %7241 }
 0x3f6   :  { %vm2316_vm1 = vweird.f32 %v7242_v1 }
 0x3f7   :  { %v2154_v2 = vpop.f32.mrf.mxu1 }
 0x3fa   :  { %v1776_v5 = vpop.f32.mrf.mxu3 }
 0x3fb   :  { %v1785_v38 = vadd.f32 %v1776_v5, %v1659_v25 }
 0x3fd   :  { %v1911_v34 = vadd.f32 %v1902_v8, %v1785_v38  ;;  %v2312_v8 = vmul.f32 32.0, %v7242_v1  ;;  %v5779_v38 = vld [vmem:[#allocation5 + $0xd0] sm:$0xf] }
 0x3ff   :  { %v2157_v49 = vpop.f32.mrf.mxu1 }
 0x402   :  { %v1779_v7 = vpop.f32.mrf.mxu3 }
 0x403   :  { %v1786_v44 = vadd.f32 %v1779_v7, %v1660_v61  ;;  %v6997_v61 = vld [vmem:[#allocation5 + $0xc4] sm:$0xf0] }
 0x405   :  { %v1912_v28 = vadd.f32 %v1905_v14, %v1786_v44  ;;  %v2313_v14 = vsub.f32 1.0, %v2312_v8  ;;  %v7238_v8 = vld [vmem:[%s7961_s6] ss:$0 sm:$0xff] }
 0x407   :  { %v2159_v0 = vpop.f32.mrf.mxu1  ;;  %v2314_v17 = vmul.f32 %v7242_v1, %v2313_v14 }
 0x409   :  { %v2315_v21 = vadd.f32 %v7242_v1, %v2314_v17  ;;  %v7239_v17 = vld [vmem:[%s7962_s7] ss:$0 sm:$0xff] }
 0x40a   :  { %v1781_v9 = vpop.f32.mrf.mxu3 }
 0x40b   :  { %v1787_v12 = vadd.f32 %v1781_v9, %v1661_v24  ;;  %v2317_v31 = vsel %vm2316_vm1, %v7242_v1, %v2315_v21 }
 0x40d   :  { %v1913_v58 = vadd.f32 %v1907_v23, %v1787_v12  ;;  %v5795_v23 = vld [vmem:[#allocation5 + $0xf0] sm:$0xf] }
 0x40e   :  { %v5796_v30 = vor.u32 %v7003_v26, %v5795_v23 }
 0x410   :  { %2531 = vmatpush.bf16.msrb.mxu1 %v5796_v30 }
 0x412   :  { %v2026_v13 = vpop.f32.mrf.mxu3 }
 0x413   :  { %v2036_v42 = vadd.f32 %v2026_v13, %v1910_v46 }
 0x415   :  { %v2162_v3 = vadd.f32 %v2152_v29, %v2036_v42  ;;  %v7001_v29 = vld [vmem:[#allocation5 + $0xe4] sm:$0xf0]  ;;  %v5771_v42 = vld [vmem:[#allocation5 + $0xc0] sm:$0xf] }
 0x416   :  { %v5788_v55 = vor.u32 %v7001_v29, %v5787_v39  ;;  %v5772_v44 = vor.u32 %v6997_v61, %v5771_v42  ;;  %v5781_v42 = vld [vmem:[#allocation5 + $0xd8] sm:$0xf0] }
 0x417   :  { %v2380_v61 = vld [vmem:[%s7963_s8] sm:$0xf] }
 0x418   :  { %2532 = vmatpush.bf16.msrb.mxu1 %v5788_v55 }
 0x41a   :  { %v2028_v20 = vpop.f32.mrf.mxu3 }
 0x41b   :  { %v2037_v41 = vadd.f32 %v2028_v20, %v1911_v34 }
 0x41d   :  { %v2163_v60 = vadd.f32 %v2154_v2, %v2037_v41 }
 0x422   :  { %v2031_v27 = vpop.f32.mrf.mxu3 }
 0x423   :  { %v2038_v51 = vadd.f32 %v2031_v27, %v1912_v28  ;;  %v5755_v28 = vld [vmem:[#allocation5 + $0xa0] sm:$0xf] }
 0x425   :  { %v2164_v50 = vadd.f32 %v2157_v49, %v2038_v51 }
 0x42a   :  { %v2033_v35 = vpop.f32.mrf.mxu3 }
 0x42b   :  { %v2039_v63 = vadd.f32 %v2033_v35, %v1913_v58 }
 0x42d   :  { %v2165_v6 = vadd.f32 %v2159_v0, %v2039_v63 }
 0x432   :  { %v2278_v53 = vpop.f32.mrf.mxu3 }
 0x433   :  { %v2288_v47 = vadd.f32 %v2278_v53, %v2162_v3  ;;  %v5780_v53 = vor.u32 %v6999_v15, %v5779_v38 }
 0x435   :  { %v2296_v52 = vadd.f32 %v7237_v62, %v2288_v47  ;;  %2533 = vmatpush.bf16.msrb.mxu1 %v5780_v53 }
 0x439   :  { %2534 = vmatpush.bf16.msrb.mxu1 %v5772_v44 }
 0x43a   :  { %v2280_v36 = vpop.f32.mrf.mxu3 }
 0x43b   :  { %v2289_v48 = vadd.f32 %v2280_v36, %v2163_v60  ;;  %v6995_v60 = vld [vmem:[#allocation5 + $0xb4] sm:$0xf0] }
 0x43d   :  { %v2297_v54 = vadd.f32 %v7237_v62, %v2289_v48  ;;  %v6993_v48 = vld [vmem:[#allocation5 + $0xa4] sm:$0xf0] }
 0x43e   :  { %v5756_v24 = vor.u32 %v6993_v48, %v5755_v28  ;;  %v5859_v28 = vld [vmem:[#allocation5 + $0x70] sm:$0xf]  ;;  %v6987_v48 = vld [vmem:[#allocation5 + $0x74] sm:$0xf0] }
 0x43f   :  { %v2302_v10 = vadd.f32 %v2297_v54, %v2296_v52 }
 0x442   :  { %v2283_v57 = vpop.f32.mrf.mxu3 }
 0x443   :  { %v2290_v59 = vadd.f32 %v2283_v57, %v2164_v50  ;;  %v6989_v57 = vld [vmem:[#allocation5 + $0x84] sm:$0xf0] }
 0x445   :  { %v2298_v19 = vadd.f32 %v7237_v62, %v2290_v59  ;;  %v5740_v59 = vor.u32 %v6989_v57, %v5739_v56  ;;  %v6985_v56 = vld [vmem:[#allocation5 + $0x64] sm:$0xf0] }
 0x447   :  { %v2303_v5 = vadd.f32 %v2302_v10, %v2298_v19 }
 0x44a   :  { %v2285_v7 = vpop.f32.mrf.mxu3 }
 0x44b   :  { %v2291_v4 = vadd.f32 %v2285_v7, %v2165_v6 }
 0x44d   :  { %v2299_v13 = vadd.f32 %v7237_v62, %v2291_v4  ;;  %v5764_v62 = vor.u32 %v6995_v60, %v5763_v45  ;;  %v5773_v45 = vld [vmem:[#allocation5 + $0xc8] sm:$0xf0] }
 0x44f   :  { %v2304_v16 = vadd.f32 %v2303_v5, %v2299_v13  ;;  %2535 = vmatpush.bf16.msrb.mxu1 %v5764_v62  ;;  %v5853_v62 = vld [vmem:[#allocation5 + $0x68] sm:$0xf0] }
 0x451   :  { %v2305_v9 = vrot.slane %v2304_v16, 4 }
 0x453   :  { %v2306_v18 = vadd.f32 %v2305_v9, %v2304_v16  ;;  %2536 = vmatpush.bf16.msrb.mxu1 %v5756_v24  ;;  %v6994_v24 = vld [vmem:[#allocation5 + $0xb4] sm:$0xf] }
 0x455   :  { %v2307_v20 = vrot.slane %v2306_v18, 2 }
 0x457   :  { %v2308_v22 = vadd.f32 %v2307_v20, %v2306_v18 }
 0x459   :  { %v2309_v27 = vrot.slane %v2308_v22, 1 }
 0x45b   :  { %v2310_v32 = vadd.f32 %v2309_v27, %v2308_v22 }
 0x45d   :  { %v2318_v33 = vmul.f32 %v2317_v31, %v2310_v32 }
 0x45f   :  { %v2319_v35 = vsub.f32 %v2296_v52, %v2318_v33  ;;  %v2320_v37 = vsub.f32 %v2297_v54, %v2318_v33  ;;  %v2321_v11 = vsub.f32 %v2298_v19, %v2318_v33  ;;  %v2322_v25 = vsub.f32 %v2299_v13, %v2318_v33  ;;  %v5747_v52 = vld [vmem:[#allocation5 + $0x90] sm:$0xf]  ;;  %v6991_v54 = vld [vmem:[#allocation5 + $0x94] sm:$0xf0]  ;;  %v7002_v33 = vld [vmem:[#allocation5 + $0xf4] sm:$0xf] }
 0x460   :  { %v5748_v10 = vor.u32 %v6991_v54, %v5747_v52  ;;  %v6982_v54 = vld [vmem:[#allocation5 + $0x54] sm:$0xf] }
 0x461   :  { %v2323_v46 = vmul.f32 %v2319_v35, %v2319_v35  ;;  %v2324_v2 = vmul.f32 %v2320_v37, %v2320_v37  ;;  %v2325_v40 = vmul.f32 %v2321_v11, %v2321_v11  ;;  %v2326_v41 = vmul.f32 %v2322_v25, %v2322_v25 }
 0x462   :  { %2537 = vmatpush.bf16.msrb.mxu1 %v5748_v10 }
 0x463   :  { %v2327_v34 = vadd.f32 %v2324_v2, %v2323_v46  ;;  %v7000_v46 = vld [vmem:[#allocation5 + $0xe4] sm:$0xf]  ;;  %v5789_v2 = vld [vmem:[#allocation5 + $0xe8] sm:$0xf0] }
 0x465   :  { %v2328_v43 = vadd.f32 %v2327_v34, %v2325_v40  ;;  %v5792_v40 = vor.u32 %v7000_v46, %v5789_v2  ;;  %v6998_v34 = vld [vmem:[#allocation5 + $0xd4] sm:$0xf]  ;;  %v5813_v46 = vld [vmem:[#allocation5 + $0x18] sm:$0xf0]  ;;  %v5819_v2 = vld [vmem:[#allocation5 + $0x20] sm:$0xf] }
 0x466   :  { %2538 = vmatpush.bf16.msrb.mxu1 %v5740_v59  ;;  %v5784_v44 = vor.u32 %v6998_v34, %v5781_v42  ;;  %v5757_v59 = vld [vmem:[#allocation5 + $0xa8] sm:$0xf0] }
 0x467   :  { %v2329_v3 = vadd.f32 %v2328_v43, %v2326_v41  ;;  %v6986_v41 = vld [vmem:[#allocation5 + $0x74] sm:$0xf]  ;;  %v5861_v43 = vld [vmem:[#allocation5 + $0x78] sm:$0xf0] }
 0x468   :  { %v5864_v60 = vor.u32 %v6986_v41, %v5861_v43  ;;  %v7015_v41 = vld [vmem:[#allocation5 + $0x154] sm:$0xf0] }
 0x469   :  { %v2330_v47 = vrot.slane %v2329_v3, 4 }
 0x46b   :  { %v2331_v36 = vadd.f32 %v2330_v47, %v2329_v3  ;;  %v6996_v3 = vld [vmem:[#allocation5 + $0xc4] sm:$0xf] }
 0x46c   :  { %v6984_v47 = vld [vmem:[#allocation5 + $0x64] sm:$0xf] }
 0x46d   :  { %v2332_v49 = vrot.slane %v2331_v36, 2  ;;  %v5856_v52 = vor.u32 %v6984_v47, %v5853_v62 }
 0x46f   :  { %v2333_v51 = vadd.f32 %v2332_v49, %v2331_v36  ;;  %v5776_v36 = vor.u32 %v6996_v3, %v5773_v45  ;;  %v5860_v49 = vor.u32 %v6987_v48, %v5859_v28  ;;  %v5805_v3 = vld [vmem:[#allocation5 + $0x8] sm:$0xf0]  ;;  %v5991_v45 = vld [vmem:[#allocation5 + $0x1f0] sm:$0xf]  ;;  %v5983_v28 = vld [vmem:[#allocation5 + $0x1e0] sm:$0xf] }
 0x470   :  { %v7033_v48 = vld [vmem:[#allocation5 + $0x1e4] sm:$0xf0] }
 0x471   :  { %v2334_v12 = vrot.slane %v2333_v51, 1  ;;  %2637 = vmatpush.bf16.msrb.mxu3 %v5860_v49  ;;  %v5984_v49 = vor.u32 %v7033_v48, %v5983_v28  ;;  %v5969_v48 = vld [vmem:[#allocation5 + $0x1c8] sm:$0xf0] }
 0x473   :  { %v2335_v50 = vadd.f32 %v2334_v12, %v2333_v51  ;;  %v5765_v51 = vld [vmem:[#allocation5 + $0xb8] sm:$0xf0] }
 0x474   :  { %v5845_v12 = vld [vmem:[#allocation5 + $0x58] sm:$0xf0]  ;;  %v5768_v10 = vor.u32 %v6994_v24, %v5765_v51  ;;  %v5975_v24 = vld [vmem:[#allocation5 + $0x1d0] sm:$0xf]  ;;  %v7031_v51 = vld [vmem:[#allocation5 + $0x1d4] sm:$0xf0] }
 0x475   :  { %v2336_v58 = vmul.f32 %v2335_v50, %v2317_v31  ;;  %v5851_v50 = vld [vmem:[#allocation5 + $0x60] sm:$0xf] }
 0x476   :  { %v5852_v57 = vor.u32 %v6985_v56, %v5851_v50  ;;  %v5959_v50 = vld [vmem:[#allocation5 + $0x1b0] sm:$0xf]  ;;  %v7027_v56 = vld [vmem:[#allocation5 + $0x1b4] sm:$0xf0] }
 0x477   :  { %v2337_v63 = vadd.f32 1e-05, %v2336_v58  ;;  %v6992_v58 = vld [vmem:[#allocation5 + $0xa4] sm:$0xf] }
 0x478   :  { %2638 = vmatpush.bf16.msrb.mxu3 %v5852_v57  ;;  %v5960_v57 = vor.u32 %v7027_v56, %v5959_v50  ;;  %v7014_v50 = vld [vmem:[#allocation5 + $0x154] sm:$0xf]  ;;  %v5911_v56 = vld [vmem:[#allocation5 + $0x158] sm:$0xf0] }
 0x479   :  { %7243 = vrsqrt.f32 %v2337_v63  ;;  %vm2344_vm3 = vweird.f32 %v2337_v63 }
 0x47f   :  { %v7244_v19 = vpop.eup %7243 }
 0x480   :  { %v2339_v0 = vmul.f32 %v7244_v19, %v2337_v63  ;;  %vm2345_vm2 = vweird.f32 %v7244_v19  ;;  %v5848_v63 = vor.u32 %v6982_v54, %v5845_v12  ;;  %v5967_v54 = vld [vmem:[#allocation5 + $0x1c0] sm:$0xf]  ;;  %v7029_v12 = vld [vmem:[#allocation5 + $0x1c4] sm:$0xf0] }
 0x481   :  { %vm2346_vm4 = vmor %vm2344_vm3, %vm2345_vm2  ;;  %vm4779_vm2 = vcmask 1043456  }
 0x482   :  { %v2340_v1 = vmul.f32 %v7244_v19, %v2339_v0  ;;  %v5837_v0 = vld [vmem:[#allocation5 + $0x48] sm:$0xf0] }
 0x484   :  { %v2341_v5 = vmul.f32 0.5, %v2340_v1  ;;  %v5760_v1 = vor.u32 %v6992_v58, %v5757_v59  ;;  %v5951_v58 = vld [vmem:[#allocation5 + $0x1a0] sm:$0xf]  ;;  %v7025_v59 = vld [vmem:[#allocation5 + $0x1a4] sm:$0xf0] }
 0x486   :  { %v2342_v6 = vsub.f32 1.5, %v2341_v5  ;;  %v5843_v5 = vld [vmem:[#allocation5 + $0x50] sm:$0xf] }
 0x488   :  { %v2343_v7 = vmul.f32 %v7244_v19, %v2342_v6  ;;  %v6983_v6 = vld [vmem:[#allocation5 + $0x54] sm:$0xf0] }
 0x48a   :  { %v2347_v4 = vsel %vm2346_vm4, %v7244_v19, %v2343_v7  ;;  %v6980_v19 = vld [vmem:[#allocation5 + $0x44] sm:$0xf]  ;;  %v5844_v7 = vor.u32 %v6983_v6, %v5843_v5  ;;  %v5811_v5 = vld [vmem:[#allocation5 + $0x10] sm:$0xf]  ;;  %v6975_v6 = vld [vmem:[#allocation5 + $0x14] sm:$0xf0] }
 0x48b   :  { %v2348_v13 = vmul.f32 %v2347_v4, %v2319_v35  ;;  %v2349_v14 = vmul.f32 %v2347_v4, %v2320_v37  ;;  %v2350_v16 = vmul.f32 %v2347_v4, %v2321_v11  ;;  %v2351_v9 = vmul.f32 %v2347_v4, %v2322_v25  ;;  %v5797_v11 = vld [vmem:[#allocation5 + $0xf8] sm:$0xf0] }
 0x48c   :  { %v5800_v15 = vor.u32 %v7002_v33, %v5797_v11  ;;  %v5749_v4 = vld [vmem:[#allocation5 + $0x98] sm:$0xf0]  ;;  %2639 = vmatpush.bf16.msrb.mxu3 %v5844_v7  ;;  %v6979_v33 = vld [vmem:[#allocation5 + $0x34] sm:$0xf0]  ;;  %v7017_v11 = vld [vmem:[#allocation5 + $0x164] sm:$0xf0]  ;;  %v5812_v7 = vor.u32 %v6975_v6, %v5811_v5 }
 0x48d   :  { %v2355_v18 = vmul.f32 %v7238_v8, %v2348_v13  ;;  %v2356_v20 = vmul.f32 %v7238_v8, %v2349_v14  ;;  %v2357_v21 = vmul.f32 %v7238_v8, %v2350_v16  ;;  %v2358_v22 = vmul.f32 %v7238_v8, %v2351_v9  ;;  %v6990_v8 = vld [vmem:[#allocation5 + $0x94] sm:$0xf]  ;;  %v5829_v16 = vld [vmem:[#allocation5 + $0x38] sm:$0xf0] }
 0x48e   :  { %2544 = vmatpush.bf16.msrb.mxu2 %v5800_v15  ;;  %v5840_v13 = vor.u32 %v6980_v19, %v5837_v0  ;;  %v6978_v14 = vld [vmem:[#allocation5 + $0x34] sm:$0xf]  ;;  %v5752_v9 = vor.u32 %v6990_v8, %v5749_v4  ;;  %v5943_v19 = vld [vmem:[#allocation5 + $0x190] sm:$0xf]  ;;  %v7023_v0 = vld [vmem:[#allocation5 + $0x194] sm:$0xf0] }
 0x48f   :  { %v2362_v23 = vadd.f32 %v7239_v17, %v2355_v18  ;;  %v2363_v26 = vadd.f32 %v7239_v17, %v2356_v20  ;;  %v2364_v27 = vadd.f32 %v7239_v17, %v2357_v21  ;;  %v2365_v30 = vadd.f32 %v7239_v17, %v2358_v22  ;;  %v5835_v17 = vld [vmem:[#allocation5 + $0x40] sm:$0xf]  ;;  %v6981_v18 = vld [vmem:[#allocation5 + $0x44] sm:$0xf0]  ;;  %v6988_v22 = vld [vmem:[#allocation5 + $0x84] sm:$0xf] }
 0x490   :  { %v5735_v20 = vld [vmem:[%s7963_s8 + $0x4] sm:$0xf]  ;;  %v5836_v21 = vor.u32 %v6981_v18, %v5835_v17  ;;  %v6974_v15 = vld [vmem:[#allocation5 + $0x14] sm:$0xf]  ;;  %v6973_v4 = vld [vmem:[#allocation5 + $0x4] sm:$0xf0] }
 0x491   :  { %vm2366_vm5 = vcmp.gt.f32.partialorder %v2362_v23, 0.0  ;;  %vm2367_vm6 = vcmp.gt.f32.partialorder %v2363_v26, 0.0  ;;  %vm2368_vm7 = vcmp.gt.f32.partialorder %v2364_v27, 0.0  ;;  %vm2369_vm8 = vcmp.gt.f32.partialorder %v2365_v30, 0.0  ;;  %v5803_v8 = vld [vmem:[#allocation5] sm:$0xf] }
 0x492   :  { %v2370_v31 = vmul.f32 0.2, %v2362_v23  ;;  %v2371_v32 = vmul.f32 0.2, %v2363_v26  ;;  %v2372_v39 = vmul.f32 0.2, %v2364_v27  ;;  %2545 = vmatpush.bf16.msrb.mxu2 %v5792_v40  ;;  %2640 = vmatpush.bf16.msrb.mxu3 %v5836_v21  ;;  %v5816_v43 = vor.u32 %v6974_v15, %v5813_v46 }
 0x493   :  { %v2373_v29 = vmul.f32 0.2, %v2365_v30  ;;  %v6977_v40 = vld [vmem:[#allocation5 + $0x24] sm:$0xf0]  ;;  %v5893_v21 = vld [vmem:[#allocation5 + $0x130] sm:$0xf] }
 0x494   :  { %v2374_v55 = vsel %vm2366_vm5, %v2362_v23, %v2370_v31  ;;  %v2375_v35 = vsel %vm2367_vm6, %v2363_v26, %v2371_v32  ;;  %v2376_v37 = vsel %vm2368_vm7, %v2364_v27, %v2372_v39  ;;  %v5741_v23 = vld [vmem:[#allocation5 + $0x88] sm:$0xf0]  ;;  %v5925_v26 = vld [vmem:[#allocation5 + $0x170] sm:$0xf]  ;;  %v7019_v27 = vld [vmem:[#allocation5 + $0x174] sm:$0xf0]  ;;  %v5820_v42 = vor.u32 %v6977_v40, %v5819_v2 }
 0x495   :  { %v2377_v25 = vsel %vm2369_vm8, %v2365_v30, %v2373_v29  ;;  %v7776_v38 = vpack.c.bf16 %v2375_v35, %v2374_v55  ;;  %v5832_v30 = vor.u32 %v6978_v14, %v5829_v16  ;;  %v6976_v31 = vld [vmem:[#allocation5 + $0x24] sm:$0xf]  ;;  %v5821_v32 = vld [vmem:[#allocation5 + $0x28] sm:$0xf0]  ;;  %v5744_v39 = vor.u32 %v6988_v22, %v5741_v23  ;;  %v5827_v29 = vld [vmem:[#allocation5 + $0x30] sm:$0xf] }
 0x496   :  { %v7778_v53 = vpack.c.bf16 %v2377_v25, %v2376_v37  ;;  %2546 = vmatpush.bf16.msrb.mxu2 %v5784_v44  ;;  %v5926_v55 = vor.u32 %v7019_v27, %v5925_v26  ;;  %v5828_v35 = vor.u32 %v6979_v33, %v5827_v29  ;;  %v5917_v37 = vld [vmem:[#allocation5 + $0x160] sm:$0xf]  ;;  %v5824_v25 = vor.u32 %v6976_v31, %v5821_v32  ;;  %v6972_v44 = vld [vmem:[#allocation5 + $0x4] sm:$0xf]  ;;  %v7013_v14 = vld [vmem:[#allocation5 + $0x144] sm:$0xf0] }
 0x497   :  { %v5918_v34 = vor.u32 %v7017_v11, %v5917_v37  ;;  %v5808_v62 = vor.u32 %v6972_v44, %v5805_v3  ;;  %v5935_v16 = vld [vmem:[#allocation5 + $0x180] sm:$0xf]  ;;  %v7021_v18 = vld [vmem:[#allocation5 + $0x184] sm:$0xf0]  ;;  %v7011_v22 = vld [vmem:[#allocation5 + $0x134] sm:$0xf0] }
 0x498   :  { %2391 = vmatpush.bf16.msra.mxu0 %v7778_v53  ;;  %2674 = vmatpush.bf16.msra.mxu1 %v7778_v53  ;;  %v5894_v23 = vor.u32 %v7011_v22, %v5893_v21  ;;  %v5885_v26 = vld [vmem:[#allocation5 + $0x120] sm:$0xf]  ;;  %v7009_v27 = vld [vmem:[#allocation5 + $0x124] sm:$0xf0]  ;;  %v7007_v32 = vld [vmem:[#allocation5 + $0x114] sm:$0xf0] }
 0x499   :  { %2641 = vmatpush.bf16.msrb.mxu3 %v5828_v35  ;;  %v5886_v31 = vor.u32 %v7009_v27, %v5885_v26  ;;  %v5869_v29 = vld [vmem:[#allocation5 + $0x100] sm:$0xf]  ;;  %v7005_v33 = vld [vmem:[#allocation5 + $0x104] sm:$0xf0]  ;;  %v7034_v2 = vld [vmem:[#allocation5 + $0x1f4] sm:$0xf] }
 0x49a   :  { %2547 = vmatpush.bf16.msrb.mxu2 %v5776_v36  ;;  %v5993_v40 = vld [vmem:[#allocation5 + $0x1f8] sm:$0xf0]  ;;  %v7030_v44 = vld [vmem:[#allocation5 + $0x1d4] sm:$0xf]  ;;  %v7008_v21 = vld [vmem:[#allocation5 + $0x124] sm:$0xf] }
 0x49b   :  { %v5977_v3 = vld [vmem:[#allocation5 + $0x1d8] sm:$0xf0]  ;;  %v7022_v5 = vld [vmem:[#allocation5 + $0x194] sm:$0xf]  ;;  %v5887_v22 = vld [vmem:[#allocation5 + $0x128] sm:$0xf0] }
 0x49c   :  { %2392 = vmatpush.bf16.msra.mxu0 %v7776_v38  ;;  %2675 = vmatpush.bf16.msra.mxu1 %v7776_v38  ;;  %v5945_v6 = vld [vmem:[#allocation5 + $0x198] sm:$0xf0]  ;;  %v6115_v26 = vld [vmem:[#allocation5 + $0x2e0] sm:$0xf]  ;;  %v7065_v27 = vld [vmem:[#allocation5 + $0x2e4] sm:$0xf0] }
 0x49d   :  { %2642 = vmatpush.bf16.msrb.mxu3 %v5820_v42  ;;  %v5996_v42 = vor.u32 %v7034_v2, %v5993_v40  ;;  %v6091_v40 = vld [vmem:[#allocation5 + $0x2b0] sm:$0xf]  ;;  %vm4775_vm4 = vcmask 64512   ;;  %vm4823_vm5 = vcmask 1041408   ;;  %vm4982_vm6 = vcmask 1024  }
 0x49e   :  { %2548 = vmatpush.bf16.msrb.mxu2 %v5768_v10  ;;  %v5968_v10 = vor.u32 %v7029_v12, %v5967_v54  ;;  %v5961_v54 = vld [vmem:[#allocation5 + $0x1b8] sm:$0xf0] }
 0x49f   :  { %5734 = vmatmul.msk.bf16.vlgmr.msra.gmra.mxu0 %vm2381_vm9, %v2380_v61  ;;  %v5909_v61 = vld [vmem:[#allocation5 + $0x150] sm:$0xf] }
 0x4a0   :  { %2426 = vmatpush.bf16.msrb.mxu0 %v7778_v53  ;;  %v5910_v47 = vor.u32 %v7015_v41, %v5909_v61  ;;  %v7032_v61 = vld [vmem:[#allocation5 + $0x1e4] sm:$0xf]  ;;  %v5985_v41 = vld [vmem:[#allocation5 + $0x1e8] sm:$0xf0] }
 0x4a1   :  { %2643 = vmatpush.bf16.msrb.mxu3 %v5812_v7  ;;  %v5948_v7 = vor.u32 %v7022_v5, %v5945_v6  ;;  %v6059_v5 = vld [vmem:[#allocation5 + $0x278] sm:$0xf0]  ;;  %v6049_v6 = vld [vmem:[#allocation5 + $0x260] sm:$0xf] }
 0x4a2   :  { %2549 = vmatpush.bf16.msrb.mxu2 %v5760_v1  ;;  %v5944_v1 = vor.u32 %v7023_v0, %v5943_v19  ;;  %v7012_v19 = vld [vmem:[#allocation5 + $0x144] sm:$0xf]  ;;  %v5903_v0 = vld [vmem:[#allocation5 + $0x148] sm:$0xf0] }
 0x4a4   :  { %2427 = vmatpush.bf16.msrb.mxu0 %v7776_v38 }
 0x4a6   :  { %2550 = vmatpush.bf16.msrb.mxu2 %v5752_v9  ;;  %v5804_v9 = vor.u32 %v6973_v4, %v5803_v8  ;;  %v7010_v8 = vld [vmem:[#allocation5 + $0x134] sm:$0xf]  ;;  %v5895_v4 = vld [vmem:[#allocation5 + $0x138] sm:$0xf0] }
 0x4a8   :  { %2650 = vmatpush.bf16.msra.mxu0 %v5864_v60  ;;  %v7035_v60 = vld [vmem:[#allocation5 + $0x1f4] sm:$0xf0]  ;;  %2644 = vmatpush.bf16.msrb.mxu3 %v5804_v9 }
 0x4a9   :  { %v5992_v36 = vor.u32 %v7035_v60, %v5991_v45  ;;  %v5980_v45 = vor.u32 %v7030_v44, %v5977_v3  ;;  %v5931_v60 = vld [vmem:[%s7963_s8 + $0xc] sm:$0xf]  ;;  %v6075_v3 = vld [vmem:[#allocation5 + $0x290] sm:$0xf] }
 0x4aa   :  { %2551 = vmatpush.bf16.msrb.mxu2 %v5744_v39  ;;  %v7057_v44 = vld [vmem:[#allocation5 + $0x2a4] sm:$0xf0] }
 0x4ac   :  { %2651 = vmatpush.bf16.msra.mxu0 %v5856_v52  ;;  %v5976_v52 = vor.u32 %v7031_v51, %v5975_v24  ;;  %v5919_v24 = vld [vmem:[#allocation5 + $0x168] sm:$0xf0] }
 0x4ae   :  { %2779 = vmatpush.bf16.msra.mxu2 %v5926_v55  ;;  %v5870_v55 = vor.u32 %v7005_v33, %v5869_v29  ;;  %v7063_v29 = vld [vmem:[#allocation5 + $0x2d4] sm:$0xf0] }
 0x4af   :  { %5736 = vmatmul.msk.bf16.vlgmr.msrb.gmra.mxu0 %vm2381_vm9, %v5735_v20  ;;  %v5936_v20 = vor.u32 %v7021_v18, %v5935_v16  ;;  %v5937_v16 = vld [vmem:[#allocation5 + $0x188] sm:$0xf0]  ;;  %v7067_v18 = vld [vmem:[#allocation5 + $0x2f4] sm:$0xf0] }
 0x4b0   :  { %2652 = vmatpush.bf16.msra.mxu0 %v5848_v63  ;;  %v5952_v63 = vor.u32 %v7025_v59, %v5951_v58  ;;  %v5914_v58 = vor.u32 %v7014_v50, %v5911_v56  ;;  %v5953_v59 = vld [vmem:[#allocation5 + $0x1a8] sm:$0xf0] }
 0x4b2   :  { %2780 = vmatpush.bf16.msra.mxu2 %v5918_v34  ;;  %v5865_v34 = vld [vmem:[%s7963_s8 + $0x8] sm:$0xf] }
 0x4b4   :  { %2653 = vmatpush.bf16.msra.mxu0 %v5840_v13  ;;  %v5901_v13 = vld [vmem:[#allocation5 + $0x140] sm:$0xf] }
 0x4b5   :  { %v5902_v17 = vor.u32 %v7013_v14, %v5901_v13  ;;  %v7020_v13 = vld [vmem:[#allocation5 + $0x184] sm:$0xf]  ;;  %v5898_v14 = vor.u32 %v7010_v8, %v5895_v4 }
 0x4b6   :  { %2781 = vmatpush.bf16.msra.mxu2 %v5910_v47  ;;  %v7018_v47 = vld [vmem:[#allocation5 + $0x174] sm:$0xf]  ;;  %v5940_v9 = vor.u32 %v7020_v13, %v5937_v16  ;;  %v7048_v4 = vld [vmem:[#allocation5 + $0x264] sm:$0xf]  ;;  %v6051_v13 = vld [vmem:[#allocation5 + $0x268] sm:$0xf0] }
 0x4b7   :  { %v6054_v16 = vor.u32 %v7048_v4, %v6051_v13  ;;  %v7064_v13 = vld [vmem:[#allocation5 + $0x2e4] sm:$0xf] }
 0x4b8   :  { %2654 = vmatpush.bf16.msra.mxu0 %v5832_v30  ;;  %v5877_v30 = vld [vmem:[#allocation5 + $0x110] sm:$0xf] }
 0x4b9   :  { %v5878_v39 = vor.u32 %v7007_v32, %v5877_v30  ;;  %v7006_v30 = vld [vmem:[#allocation5 + $0x114] sm:$0xf]  ;;  %v5879_v32 = vld [vmem:[#allocation5 + $0x118] sm:$0xf0] }
 0x4ba   :  { %2782 = vmatpush.bf16.msra.mxu2 %v5902_v17  ;;  %v6123_v17 = vld [vmem:[#allocation5 + $0x2f0] sm:$0xf]  ;;  %v5882_v33 = vor.u32 %v7006_v30, %v5879_v32  ;;  %v7044_v30 = vld [vmem:[#allocation5 + $0x244] sm:$0xf]  ;;  %v7082_v32 = vld [vmem:[#allocation5 + $0x374] sm:$0xf] }
 0x4bc   :  { %2655 = vmatpush.bf16.msra.mxu0 %v5824_v25 }
 0x4be   :  { %2783 = vmatpush.bf16.msra.mxu2 %v5894_v23  ;;  %v5890_v23 = vor.u32 %v7008_v21, %v5887_v22  ;;  %v6043_v21 = vld [vmem:[#allocation5 + $0x258] sm:$0xf0] }
 0x4c0   :  { %2656 = vmatpush.bf16.msra.mxu0 %v5816_v43  ;;  %v5988_v43 = vor.u32 %v7032_v61, %v5985_v41 }
 0x4c2   :  { %2784 = vmatpush.bf16.msra.mxu2 %v5886_v31  ;;  %v6116_v31 = vor.u32 %v7065_v27, %v6115_v26  ;;  %v6033_v26 = vld [vmem:[#allocation5 + $0x240] sm:$0xf]  ;;  %v7045_v27 = vld [vmem:[#allocation5 + $0x244] sm:$0xf0] }
 0x4c4   :  { %2657 = vmatpush.bf16.msra.mxu0 %v5808_v62  ;;  %v5927_v62 = vld [vmem:[#allocation5 + $0x178] sm:$0xf0] }
 0x4c5   :  { %v5930_v28 = vor.u32 %v7018_v47, %v5927_v62 }
 0x4c6   :  { %2785 = vmatpush.bf16.msra.mxu2 %v5878_v39  ;;  %v6107_v39 = vld [vmem:[#allocation5 + $0x2d0] sm:$0xf] }
 0x4c7   :  { %2792 = vmatpush.bf16.msra.mxu3 %v5930_v28  ;;  %v6067_v28 = vld [vmem:[#allocation5 + $0x280] sm:$0xf] }
 0x4c8   :  { %2923 = vmatpush.bf16.msrb.mxu0 %v5992_v36  ;;  %v7028_v36 = vld [vmem:[#allocation5 + $0x1c4] sm:$0xf] }
 0x4c9   :  { %v5972_v51 = vor.u32 %v7028_v36, %v5969_v48  ;;  %v7053_v48 = vld [vmem:[#allocation5 + $0x284] sm:$0xf0] }
 0x4ca   :  { %2786 = vmatpush.bf16.msra.mxu2 %v5870_v55  ;;  %v6108_v55 = vor.u32 %v7063_v29, %v6107_v39  ;;  %v6191_v39 = vld [vmem:[#allocation5 + $0x378] sm:$0xf0]  ;;  %v6034_v29 = vor.u32 %v7045_v27, %v6033_v26 }
 0x4cc   :  { %2924 = vmatpush.bf16.msrb.mxu0 %v5984_v49  ;;  %v7016_v49 = vld [vmem:[#allocation5 + $0x164] sm:$0xf] }
 0x4cd   :  { %v5922_v12 = vor.u32 %v7016_v49, %v5919_v24  ;;  %v6068_v24 = vor.u32 %v7053_v48, %v6067_v28  ;;  %v7038_v28 = vld [vmem:[#allocation5 + $0x214] sm:$0xf]  ;;  %v6011_v48 = vld [vmem:[#allocation5 + $0x218] sm:$0xf0] }
 0x4cf   :  { %2793 = vmatpush.bf16.msra.mxu3 %v5922_v12 }
 0x4d0   :  { %2925 = vmatpush.bf16.msrb.mxu0 %v5976_v52  ;;  %v7026_v52 = vld [vmem:[#allocation5 + $0x1b4] sm:$0xf] }
 0x4d3   :  { %2794 = vmatpush.bf16.msra.mxu3 %v5914_v58 }
 0x4d4   :  { %2926 = vmatpush.bf16.msrb.mxu0 %v5968_v10  ;;  %v5964_v10 = vor.u32 %v7026_v52, %v5961_v54 }
 0x4d8   :  { %2927 = vmatpush.bf16.msrb.mxu0 %v5960_v57  ;;  %v7024_v57 = vld [vmem:[#allocation5 + $0x1a4] sm:$0xf] }
 0x4dc   :  { %2928 = vmatpush.bf16.msrb.mxu0 %v5952_v63  ;;  %v5956_v63 = vor.u32 %v7024_v57, %v5953_v59  ;;  %v5997_v59 = vld [vmem:[%s7963_s8 + $0x10] sm:$0xf] }
 0x4e0   :  { %2929 = vmatpush.bf16.msrb.mxu0 %v5944_v1  ;;  %v5906_v1 = vor.u32 %v7012_v19, %v5903_v0  ;;  %v7051_v19 = vld [vmem:[#allocation5 + $0x274] sm:$0xf0]  ;;  %v7050_v0 = vld [vmem:[#allocation5 + $0x274] sm:$0xf] }
 0x4e1   :  { %v6062_v8 = vor.u32 %v7050_v0, %v6059_v5  ;;  %v6189_v0 = vld [vmem:[#allocation5 + $0x370] sm:$0xf] }
 0x4e2   :  { %2795 = vmatpush.bf16.msra.mxu3 %v5906_v1 }
 0x4e4   :  { %2930 = vmatpush.bf16.msrb.mxu0 %v5936_v20  ;;  %v6124_v20 = vor.u32 %v7067_v18, %v6123_v17  ;;  %v7047_v17 = vld [vmem:[#allocation5 + $0x254] sm:$0xf0] }
 0x4e6   :  { %2796 = vmatpush.bf16.msra.mxu3 %v5898_v14 }
 0x4ea   :  { %2797 = vmatpush.bf16.msra.mxu3 %v5890_v23 }
 0x4ee   :  { %2798 = vmatpush.bf16.msra.mxu3 %v5882_v33 }
 0x51c   :  { %v2394_v35 = vpop.f32.mrf.mxu0 }
 0x51d   :  { %v2398_v37 = vpack.c.bf16 %v2394_v35, %v2394_v35  ;;  %v7004_v35 = vld [vmem:[#allocation5 + $0x104] sm:$0xf] }
 0x51f   :  { %2658 = vmatmul.bf16.vlgmr.msra.gmra.mxu0 %v2398_v37  ;;  %2645 = vmatmul.bf16.vlgmr.msrb.gmra.mxu3 %v2398_v37  ;;  %v5871_v37 = vld [vmem:[#allocation5 + $0x108] sm:$0xf0] }
 0x520   :  { %3106 = vmatpush.bf16.msra.mxu0 %v7778_v53 }
 0x524   :  { %3107 = vmatpush.bf16.msra.mxu0 %v7776_v38  ;;  %v2396_v11 = vpop.f32.mrf.mxu0 }
 0x525   :  { %v5874_v11 = vor.u32 %v7004_v35, %v5871_v37  ;;  %v7043_v35 = vld [vmem:[#allocation5 + $0x234] sm:$0xf0]  ;;  %v6063_v37 = vld [vmem:[%s7963_s8 + $0x14] sm:$0xf] }
 0x527   :  { %2799 = vmatpush.bf16.msra.mxu3 %v5874_v11  ;;  %v7042_v11 = vld [vmem:[#allocation5 + $0x234] sm:$0xf] }
 0x52c   :  { %v2429_v25 = vpop.f32.mrf.mxu0 }
 0x52d   :  { %v2433_v15 = vpack.c.bf16 %v2429_v25, %v2429_v25 }
 0x52f   :  { %2539 = vmatmul.bf16.vlgmr.msrb.gmra.mxu1 %v2433_v15  ;;  %2552 = vmatmul.bf16.vlgmr.msrb.gmra.mxu2 %v2433_v15  ;;  %v6099_v15 = vld [vmem:[#allocation5 + $0x2c0] sm:$0xf] }
 0x530   :  { %2818 = vmatpush.bf16.msrb.mxu1 %v7778_v53  ;;  %2962 = vmatpush.bf16.msrb.mxu2 %v7778_v53 }
 0x534   :  { %2819 = vmatpush.bf16.msrb.mxu1 %v7776_v38  ;;  %2963 = vmatpush.bf16.msrb.mxu2 %v7776_v38  ;;  %v2431_v46 = vpop.f32.mrf.mxu0 }
 0x535   :  { %v7061_v46 = vld [vmem:[#allocation5 + $0x2c4] sm:$0xf0] }
 0x536   :  { %v6100_v2 = vor.u32 %v7061_v46, %v6099_v15  ;;  %v6194_v15 = vor.u32 %v7082_v32, %v6191_v39  ;;  %v7080_v46 = vld [vmem:[#allocation5 + $0x364] sm:$0xf]  ;;  %v6165_v32 = vld [vmem:[#allocation5 + $0x340] sm:$0xf] }
 0x53f   :  { %5866 = vmatmul.msk.bf16.vlgmr.msra.gmra.mxu1 %vm2381_vm9, %v5865_v34  ;;  %v7059_v34 = vld [vmem:[#allocation5 + $0x2b4] sm:$0xf0] }
 0x540   :  { %2936 = vmatpush.bf16.msra.mxu1 %v5996_v42  ;;  %v6092_v42 = vor.u32 %v7059_v34, %v6091_v40 }
 0x544   :  { %2937 = vmatpush.bf16.msra.mxu1 %v5988_v43  ;;  %v6083_v43 = vld [vmem:[#allocation5 + $0x2a0] sm:$0xf] }
 0x548   :  { %2938 = vmatpush.bf16.msra.mxu1 %v5980_v45  ;;  %v6084_v45 = vor.u32 %v7057_v44, %v6083_v43  ;;  %v6019_v43 = vld [vmem:[#allocation5 + $0x228] sm:$0xf0] }
 0x54c   :  { %2939 = vmatpush.bf16.msra.mxu1 %v5972_v51 }
 0x54f   :  { %5932 = vmatmul.msk.bf16.vlgmr.msrb.gmra.mxu1 %vm2381_vm9, %v5931_v60  ;;  %v7055_v60 = vld [vmem:[#allocation5 + $0x294] sm:$0xf0] }
 0x550   :  { %2940 = vmatpush.bf16.msra.mxu1 %v5964_v10  ;;  %v6076_v47 = vor.u32 %v7055_v60, %v6075_v3  ;;  %v7078_v3 = vld [vmem:[#allocation5 + $0x354] sm:$0xf] }
 0x554   :  { %2941 = vmatpush.bf16.msra.mxu1 %v5956_v63  ;;  %v6057_v63 = vld [vmem:[#allocation5 + $0x270] sm:$0xf] }
 0x555   :  { %v6058_v1 = vor.u32 %v7051_v19, %v6057_v63  ;;  %v6125_v19 = vld [vmem:[#allocation5 + $0x2f8] sm:$0xf0] }
 0x557   :  { %3067 = vmatpush.bf16.msrb.mxu3 %v6058_v1  ;;  %v7083_v1 = vld [vmem:[#allocation5 + $0x374] sm:$0xf0] }
 0x558   :  { %2942 = vmatpush.bf16.msra.mxu1 %v5948_v7  ;;  %v7049_v7 = vld [vmem:[#allocation5 + $0x264] sm:$0xf0]  ;;  %v6190_v4 = vor.u32 %v7083_v1, %v6189_v0  ;;  %v6133_v0 = vld [vmem:[#allocation5 + $0x300] sm:$0xf] }
 0x559   :  { %v6050_v14 = vor.u32 %v7049_v7, %v6049_v6  ;;  %v6129_v7 = vld [vmem:[%s7963_s8 + $0x18] sm:$0xf] }
 0x55b   :  { %3068 = vmatpush.bf16.msrb.mxu3 %v6050_v14  ;;  %v6117_v14 = vld [vmem:[#allocation5 + $0x2e8] sm:$0xf0] }
 0x55c   :  { %2943 = vmatpush.bf16.msra.mxu1 %v5940_v9  ;;  %v6041_v9 = vld [vmem:[#allocation5 + $0x250] sm:$0xf] }
 0x55d   :  { %v6042_v22 = vor.u32 %v7047_v17, %v6041_v9  ;;  %v7081_v9 = vld [vmem:[#allocation5 + $0x364] sm:$0xf0]  ;;  %v6120_v17 = vor.u32 %v7064_v13, %v6117_v14  ;;  %v6305_v13 = vld [vmem:[#allocation5 + $0x450] sm:$0xf]  ;;  %v7111_v14 = vld [vmem:[#allocation5 + $0x454] sm:$0xf0] }
 0x55f   :  { %3069 = vmatpush.bf16.msrb.mxu3 %v6042_v22  ;;  %v6173_v22 = vld [vmem:[#allocation5 + $0x350] sm:$0xf] }
 0x560   :  { %3211 = vmatpush.bf16.msrb.mxu1 %v6124_v20  ;;  %v7046_v20 = vld [vmem:[#allocation5 + $0x254] sm:$0xf] }
 0x561   :  { %v6046_v23 = vor.u32 %v7046_v20, %v6043_v21  ;;  %v7062_v20 = vld [vmem:[#allocation5 + $0x2d4] sm:$0xf]  ;;  %v6109_v21 = vld [vmem:[#allocation5 + $0x2d8] sm:$0xf0] }
 0x562   :  { %v6112_v26 = vor.u32 %v7062_v20, %v6109_v21  ;;  %v6289_v20 = vld [vmem:[#allocation5 + $0x430] sm:$0xf]  ;;  %v7107_v21 = vld [vmem:[#allocation5 + $0x434] sm:$0xf0] }
 0x563   :  { %3070 = vmatpush.bf16.msrb.mxu3 %v6034_v29  ;;  %v7077_v29 = vld [vmem:[#allocation5 + $0x344] sm:$0xf0] }
 0x564   :  { %3212 = vmatpush.bf16.msrb.mxu1 %v6116_v31  ;;  %v6035_v31 = vld [vmem:[#allocation5 + $0x248] sm:$0xf0] }
 0x565   :  { %v6038_v33 = vor.u32 %v7044_v30, %v6035_v31  ;;  %v7060_v30 = vld [vmem:[#allocation5 + $0x2c4] sm:$0xf]  ;;  %v6101_v31 = vld [vmem:[#allocation5 + $0x2c8] sm:$0xf0] }
 0x566   :  { %v6104_v39 = vor.u32 %v7060_v30, %v6101_v31  ;;  %v6281_v31 = vld [vmem:[#allocation5 + $0x420] sm:$0xf] }
 0x568   :  { %3213 = vmatpush.bf16.msrb.mxu1 %v6108_v55  ;;  %v6025_v55 = vld [vmem:[#allocation5 + $0x230] sm:$0xf] }
 0x569   :  { %v6026_v40 = vor.u32 %v7043_v35, %v6025_v55  ;;  %v6159_v55 = vld [vmem:[#allocation5 + $0x338] sm:$0xf0]  ;;  %v6166_v35 = vor.u32 %v7077_v29, %v6165_v32  ;;  %v7105_v32 = vld [vmem:[#allocation5 + $0x424] sm:$0xf0]  ;;  %v6273_v29 = vld [vmem:[#allocation5 + $0x410] sm:$0xf] }
 0x56b   :  { %3071 = vmatpush.bf16.msrb.mxu3 %v6026_v40  ;;  %v7072_v40 = vld [vmem:[#allocation5 + $0x324] sm:$0xf] }
 0x56c   :  { %3214 = vmatpush.bf16.msrb.mxu1 %v6100_v2  ;;  %v6183_v2 = vld [vmem:[#allocation5 + $0x368] sm:$0xf0] }
 0x56d   :  { %v6186_v44 = vor.u32 %v7080_v46, %v6183_v2  ;;  %v7075_v2 = vld [vmem:[#allocation5 + $0x334] sm:$0xf0] }
 0x570   :  { %3215 = vmatpush.bf16.msrb.mxu1 %v6092_v42  ;;  %v6017_v42 = vld [vmem:[#allocation5 + $0x220] sm:$0xf] }
 0x574   :  { %3216 = vmatpush.bf16.msrb.mxu1 %v6084_v45  ;;  %v6175_v45 = vld [vmem:[#allocation5 + $0x358] sm:$0xf0] }
 0x578   :  { %3217 = vmatpush.bf16.msrb.mxu1 %v6076_v47 }
 0x57c   :  { %3218 = vmatpush.bf16.msrb.mxu1 %v6068_v24  ;;  %v6178_v24 = vor.u32 %v7078_v3, %v6175_v45  ;;  %v7073_v45 = vld [vmem:[#allocation5 + $0x324] sm:$0xf0] }
 0x59c   :  { %v2659_v25 = vpop.f32.mrf.mxu0 }
 0x5a2   :  { %v2646_v61 = vpop.f32.mrf.mxu3 }
 0x5a4   :  { %v2661_v41 = vpop.f32.mrf.mxu0 }
 0x5a5   :  { %v7040_v41 = vld [vmem:[#allocation5 + $0x224] sm:$0xf] }
 0x5a6   :  { %v6022_v47 = vor.u32 %v7040_v41, %v6019_v43  ;;  %v7056_v41 = vld [vmem:[#allocation5 + $0x2a4] sm:$0xf]  ;;  %v6085_v43 = vld [vmem:[#allocation5 + $0x2a8] sm:$0xf0] }
 0x5a7   :  { %v6088_v3 = vor.u32 %v7056_v41, %v6085_v43 }
 0x5aa   :  { %v2648_v62 = vpop.f32.mrf.mxu3 }
 0x5ab   :  { %v6009_v62 = vld [vmem:[#allocation5 + $0x210] sm:$0xf] }
 0x5ac   :  { %v2540_v36 = vpop.f32.mrf.mxu1 }
 0x5ad   :  { %v7808_v49 = vadd.f32 %v2646_v61, %v2540_v36  ;;  %v7041_v61 = vld [vmem:[#allocation5 + $0x224] sm:$0xf0]  ;;  %v7039_v36 = vld [vmem:[#allocation5 + $0x214] sm:$0xf0] }
 0x5ae   :  { %v6018_v60 = vor.u32 %v7041_v61, %v6017_v42 }
 0x5b0   :  { %3072 = vmatpush.bf16.msrb.mxu3 %v6018_v60  ;;  %v7070_v60 = vld [vmem:[#allocation5 + $0x314] sm:$0xf] }
 0x5b2   :  { %v2553_v51 = vpop.f32.mrf.mxu2 }
 0x5b3   :  { %v7810_v52 = vadd.f32 %v2659_v25, %v2553_v51  ;;  %v6027_v25 = vld [vmem:[#allocation5 + $0x238] sm:$0xf0]  ;;  %v7076_v51 = vld [vmem:[#allocation5 + $0x344] sm:$0xf] }
 0x5b4   :  { %v2542_v54 = vpop.f32.mrf.mxu1  ;;  %v6030_v34 = vor.u32 %v7042_v11, %v6027_v25  ;;  %v7058_v11 = vld [vmem:[#allocation5 + $0x2b4] sm:$0xf]  ;;  %v6093_v25 = vld [vmem:[#allocation5 + $0x2b8] sm:$0xf0] }
 0x5b5   :  { %v6167_v54 = vld [vmem:[#allocation5 + $0x348] sm:$0xf0]  ;;  %v6096_v46 = vor.u32 %v7058_v11, %v6093_v25 }
 0x5b6   :  { %v6170_v63 = vor.u32 %v7076_v51, %v6167_v54  ;;  %v7071_v54 = vld [vmem:[#allocation5 + $0x314] sm:$0xf0] }
 0x5ba   :  { %v2555_v12 = vpop.f32.mrf.mxu2 }
 0x5bb   :  { %v6010_v12 = vor.u32 %v7039_v36, %v6009_v62 }
 0x5bc   :  { %v2677_v10 = vpop.f32.mrf.mxu1 }
 0x5bd   :  { %v2681_v50 = vpack.c.bf16 %v2677_v10, %v2677_v10  ;;  %v6014_v10 = vor.u32 %v7038_v28, %v6011_v48  ;;  %3073 = vmatpush.bf16.msrb.mxu3 %v6010_v12  ;;  %v7054_v28 = vld [vmem:[#allocation5 + $0x294] sm:$0xf]  ;;  %v6077_v48 = vld [vmem:[#allocation5 + $0x298] sm:$0xf0]  ;;  %v7068_v12 = vld [vmem:[#allocation5 + $0x304] sm:$0xf] }
 0x5be   :  { %v6080_v51 = vor.u32 %v7054_v28, %v6077_v48 }
 0x5bf   :  { %2787 = vmatmul.bf16.vlgmr.msra.gmra.mxu2 %v2681_v50  ;;  %2800 = vmatmul.bf16.vlgmr.msra.gmra.mxu3 %v2681_v50  ;;  %v6001_v50 = vld [vmem:[#allocation5 + $0x200] sm:$0xf] }
 0x5c0   :  { %3080 = vmatpush.bf16.msra.mxu2 %v6062_v8 }
 0x5c4   :  { %v2679_v56 = vpop.f32.mrf.mxu1  ;;  %3081 = vmatpush.bf16.msra.mxu2 %v6054_v16  ;;  %v6181_v16 = vld [vmem:[#allocation5 + $0x360] sm:$0xf] }
 0x5c5   :  { %v7037_v56 = vld [vmem:[#allocation5 + $0x204] sm:$0xf0] }
 0x5c6   :  { %v6002_v5 = vor.u32 %v7037_v56, %v6001_v50 }
 0x5c8   :  { %3082 = vmatpush.bf16.msra.mxu2 %v6046_v23  ;;  %3074 = vmatpush.bf16.msrb.mxu3 %v6002_v5  ;;  %v7079_v23 = vld [vmem:[#allocation5 + $0x354] sm:$0xf0]  ;;  %v7069_v5 = vld [vmem:[#allocation5 + $0x304] sm:$0xf0] }
 0x5c9   :  { %v6174_v27 = vor.u32 %v7079_v23, %v6173_v22 }
 0x5cc   :  { %v2821_v57 = vpop.f32.mrf.mxu1  ;;  %3083 = vmatpush.bf16.msra.mxu2 %v6038_v33  ;;  %v7074_v33 = vld [vmem:[#allocation5 + $0x334] sm:$0xf] }
 0x5cd   :  { %v2825_v58 = vpack.c.bf16 %v2821_v57, %v2821_v57  ;;  %v7036_v57 = vld [vmem:[#allocation5 + $0x204] sm:$0xf] }
 0x5cf   :  { %2931 = vmatmul.bf16.vlgmr.msrb.gmra.mxu0 %v2825_v58  ;;  %2944 = vmatmul.bf16.vlgmr.msra.gmra.mxu1 %v2825_v58  ;;  %v6003_v58 = vld [vmem:[#allocation5 + $0x208] sm:$0xf0] }
 0x5d0   :  { %5998 = vmatmul.msk.bf16.vlgmr.msrb.gmra.mxu2 %vm2381_vm9, %v5997_v59  ;;  %3250 = vmatpush.bf16.msrb.mxu0 %v7778_v53  ;;  %v7066_v59 = vld [vmem:[#allocation5 + $0x2f4] sm:$0xf]  ;;  %v6006_v6 = vor.u32 %v7036_v57, %v6003_v58  ;;  %v6321_v57 = vld [vmem:[#allocation5 + $0x470] sm:$0xf]  ;;  %v7115_v58 = vld [vmem:[#allocation5 + $0x474] sm:$0xf0] }
 0x5d1   :  { %3394 = vmatpush.bf16.msra.mxu1 %v7778_v53  ;;  %3084 = vmatpush.bf16.msra.mxu2 %v6030_v34  ;;  %v6128_v8 = vor.u32 %v7066_v59, %v6125_v19  ;;  %v6151_v34 = vld [vmem:[#allocation5 + $0x328] sm:$0xf0]  ;;  %v6322_v59 = vor.u32 %v7115_v58, %v6321_v57  ;;  %v6223_v57 = vld [vmem:[#allocation5 + $0x3b0] sm:$0xf]  ;;  %v7091_v58 = vld [vmem:[#allocation5 + $0x3b4] sm:$0xf0] }
 0x5d2   :  { %v6154_v61 = vor.u32 %v7072_v40, %v6151_v34  ;;  %v6069_v19 = vld [vmem:[#allocation5 + $0x288] sm:$0xf0]  ;;  %v6255_v40 = vld [vmem:[#allocation5 + $0x3f0] sm:$0xf]  ;;  %v7099_v34 = vld [vmem:[#allocation5 + $0x3f4] sm:$0xf0] }
 0x5d3   :  { %3224 = vmatpush.bf16.msra.mxu3 %v6128_v8  ;;  %v7113_v8 = vld [vmem:[#allocation5 + $0x464] sm:$0xf0] }
 0x5d4   :  { %3251 = vmatpush.bf16.msrb.mxu0 %v7776_v38  ;;  %v2823_v18 = vpop.f32.mrf.mxu1 }
 0x5d5   :  { %3395 = vmatpush.bf16.msra.mxu1 %v7776_v38  ;;  %3085 = vmatpush.bf16.msra.mxu2 %v6022_v47  ;;  %v6182_v18 = vor.u32 %v7081_v9, %v6181_v16  ;;  %v6143_v47 = vld [vmem:[#allocation5 + $0x318] sm:$0xf0]  ;;  %v6306_v16 = vor.u32 %v7111_v14, %v6305_v13  ;;  %v6297_v9 = vld [vmem:[#allocation5 + $0x440] sm:$0xf]  ;;  %v7092_v14 = vld [vmem:[#allocation5 + $0x3c4] sm:$0xf] }
 0x5d6   :  { %v6146_v36 = vor.u32 %v7070_v60, %v6143_v47  ;;  %v6239_v47 = vld [vmem:[#allocation5 + $0x3d0] sm:$0xf] }
 0x5d7   :  { %3225 = vmatpush.bf16.msra.mxu3 %v6120_v17  ;;  %v7109_v17 = vld [vmem:[#allocation5 + $0x444] sm:$0xf0] }
 0x5d9   :  { %3086 = vmatpush.bf16.msra.mxu2 %v6014_v10  ;;  %v6135_v10 = vld [vmem:[#allocation5 + $0x308] sm:$0xf0] }
 0x5da   :  { %v6138_v56 = vor.u32 %v7068_v12, %v6135_v10  ;;  %v7098_v10 = vld [vmem:[#allocation5 + $0x3f4] sm:$0xf] }
 0x5db   :  { %3226 = vmatpush.bf16.msra.mxu3 %v6112_v26  ;;  %v6290_v26 = vor.u32 %v7107_v21, %v6289_v20  ;;  %v7114_v20 = vld [vmem:[#allocation5 + $0x474] sm:$0xf]  ;;  %v6323_v21 = vld [vmem:[#allocation5 + $0x478] sm:$0xf0] }
 0x5dd   :  { %3087 = vmatpush.bf16.msra.mxu2 %v6006_v6  ;;  %v6134_v6 = vor.u32 %v7069_v5, %v6133_v0  ;;  %v6224_v0 = vor.u32 %v7091_v58, %v6223_v57  ;;  %v6241_v5 = vld [vmem:[#allocation5 + $0x3d8] sm:$0xf0]  ;;  %v7106_v57 = vld [vmem:[#allocation5 + $0x434] sm:$0xf] }
 0x5de   :  { %v6291_v58 = vld [vmem:[#allocation5 + $0x438] sm:$0xf0] }
 0x5df   :  { %6064 = vmatmul.msk.bf16.vlgmr.msra.gmra.mxu0 %vm2381_vm9, %v6063_v37  ;;  %v6162_v37 = vor.u32 %v7074_v33, %v6159_v55  ;;  %3227 = vmatpush.bf16.msra.mxu3 %v6104_v39  ;;  %v6282_v39 = vor.u32 %v7105_v32, %v6281_v31  ;;  %v7103_v33 = vld [vmem:[#allocation5 + $0x414] sm:$0xf0]  ;;  %v7085_v31 = vld [vmem:[#allocation5 + $0x384] sm:$0xf0] }
 0x5e0   :  { %3368 = vmatpush.bf16.msra.mxu0 %v6194_v15  ;;  %v6157_v15 = vld [vmem:[#allocation5 + $0x330] sm:$0xf] }
 0x5e1   :  { %3355 = vmatpush.bf16.msrb.mxu2 %v6190_v4  ;;  %v6158_v42 = vor.u32 %v7075_v2, %v6157_v15  ;;  %v7101_v2 = vld [vmem:[#allocation5 + $0x404] sm:$0xf0] }
 0x5e3   :  { %3228 = vmatpush.bf16.msra.mxu3 %v6096_v46 }
 0x5e4   :  { %3369 = vmatpush.bf16.msra.mxu0 %v6186_v44  ;;  %v6149_v44 = vld [vmem:[#allocation5 + $0x320] sm:$0xf] }
 0x5e5   :  { %3356 = vmatpush.bf16.msrb.mxu2 %v6182_v18  ;;  %v6150_v62 = vor.u32 %v7073_v45, %v6149_v44  ;;  %v6298_v18 = vor.u32 %v7109_v17, %v6297_v9  ;;  %v7097_v45 = vld [vmem:[#allocation5 + $0x3e4] sm:$0xf0]  ;;  %v6207_v9 = vld [vmem:[#allocation5 + $0x390] sm:$0xf]  ;;  %v7087_v17 = vld [vmem:[#allocation5 + $0x394] sm:$0xf0] }
 0x5e7   :  { %3229 = vmatpush.bf16.msra.mxu3 %v6088_v3  ;;  %v6247_v3 = vld [vmem:[#allocation5 + $0x3e0] sm:$0xf] }
 0x5e8   :  { %3370 = vmatpush.bf16.msra.mxu0 %v6178_v24  ;;  %v6141_v24 = vld [vmem:[#allocation5 + $0x310] sm:$0xf]  ;;  %v6248_v60 = vor.u32 %v7097_v45, %v6247_v3  ;;  %v6299_v3 = vld [vmem:[#allocation5 + $0x448] sm:$0xf0]  ;;  %v7084_v45 = vld [vmem:[#allocation5 + $0x384] sm:$0xf] }
 0x5e9   :  { %3357 = vmatpush.bf16.msrb.mxu2 %v6174_v27  ;;  %v6142_v50 = vor.u32 %v7071_v54, %v6141_v24  ;;  %v6231_v24 = vld [vmem:[#allocation5 + $0x3c0] sm:$0xf] }
 0x5eb   :  { %3230 = vmatpush.bf16.msra.mxu3 %v6080_v51  ;;  %v7093_v51 = vld [vmem:[#allocation5 + $0x3c4] sm:$0xf0] }
 0x5ec   :  { %3371 = vmatpush.bf16.msra.mxu0 %v6170_v63  ;;  %v7052_v63 = vld [vmem:[#allocation5 + $0x284] sm:$0xf]  ;;  %v6232_v12 = vor.u32 %v7093_v51, %v6231_v24  ;;  %v6261_v24 = vld [vmem:[%s7963_s8 + $0x20] sm:$0xf] }
 0x5ed   :  { %3358 = vmatpush.bf16.msrb.mxu2 %v6166_v35  ;;  %v6072_v1 = vor.u32 %v7052_v63, %v6069_v19  ;;  %v6249_v63 = vld [vmem:[#allocation5 + $0x3e8] sm:$0xf0]  ;;  %v6379_v51 = vld [vmem:[#allocation5 + $0x4e0] sm:$0xf] }
 0x5ef   :  { %6130 = vmatmul.msk.bf16.vlgmr.msrb.gmra.mxu0 %vm2381_vm9, %v6129_v7  ;;  %v6313_v7 = vld [vmem:[#allocation5 + $0x460] sm:$0xf]  ;;  %3231 = vmatpush.bf16.msra.mxu3 %v6072_v1  ;;  %v7094_v1 = vld [vmem:[#allocation5 + $0x3d4] sm:$0xf] }
 0x5f0   :  { %3372 = vmatpush.bf16.msra.mxu0 %v6162_v37  ;;  %v6314_v4 = vor.u32 %v7113_v8, %v6313_v7  ;;  %v6274_v37 = vor.u32 %v7103_v33, %v6273_v29  ;;  %v6215_v7 = vld [vmem:[#allocation5 + $0x3a0] sm:$0xf]  ;;  %v7089_v8 = vld [vmem:[#allocation5 + $0x3a4] sm:$0xf0]  ;;  %v6326_v29 = vor.u32 %v7114_v20, %v6323_v21  ;;  %v6267_v21 = vld [vmem:[#allocation5 + $0x408] sm:$0xf0] }
 0x5f1   :  { %3359 = vmatpush.bf16.msrb.mxu2 %v6158_v42  ;;  %v6216_v13 = vor.u32 %v7089_v8, %v6215_v7  ;;  %v6355_v7 = vld [vmem:[#allocation5 + $0x4b0] sm:$0xf]  ;;  %v7123_v8 = vld [vmem:[#allocation5 + $0x4b4] sm:$0xf0] }
 0x5f4   :  { %3373 = vmatpush.bf16.msra.mxu0 %v6154_v61  ;;  %v6256_v61 = vor.u32 %v7099_v34, %v6255_v40  ;;  %v6307_v40 = vld [vmem:[#allocation5 + $0x458] sm:$0xf0]  ;;  %v7086_v34 = vld [vmem:[#allocation5 + $0x394] sm:$0xf] }
 0x5f5   :  { %3360 = vmatpush.bf16.msrb.mxu2 %v6150_v62  ;;  %v7095_v62 = vld [vmem:[#allocation5 + $0x3d4] sm:$0xf0] }
 0x5f8   :  { %3374 = vmatpush.bf16.msra.mxu0 %v6146_v36  ;;  %v6240_v36 = vor.u32 %v7095_v62, %v6239_v47  ;;  %v6387_v47 = vld [vmem:[#allocation5 + $0x4f0] sm:$0xf]  ;;  %v7131_v62 = vld [vmem:[#allocation5 + $0x4f4] sm:$0xf0] }
 0x5f9   :  { %3361 = vmatpush.bf16.msrb.mxu2 %v6142_v50  ;;  %v6257_v50 = vld [vmem:[#allocation5 + $0x3f8] sm:$0xf0] }
 0x5fc   :  { %3375 = vmatpush.bf16.msra.mxu0 %v6138_v56  ;;  %v7096_v56 = vld [vmem:[#allocation5 + $0x3e4] sm:$0xf] }
 0x5fd   :  { %3362 = vmatpush.bf16.msrb.mxu2 %v6134_v6  ;;  %v6252_v19 = vor.u32 %v7096_v56, %v6249_v63  ;;  %v6363_v63 = vld [vmem:[#allocation5 + $0x4c0] sm:$0xf] }
 0x600   :  { %3643 = vmatpush.bf16.msrb.mxu0 %v6322_v59  ;;  %v6260_v59 = vor.u32 %v7098_v10, %v6257_v50  ;;  %v6371_v10 = vld [vmem:[#allocation5 + $0x4d0] sm:$0xf]  ;;  %v7127_v50 = vld [vmem:[#allocation5 + $0x4d4] sm:$0xf0] }
 0x601   :  { %v6372_v56 = vor.u32 %v7127_v50, %v6371_v10  ;;  %v7133_v10 = vld [vmem:[#allocation5 + $0x504] sm:$0xf0] }
 0x604   :  { %3644 = vmatpush.bf16.msrb.mxu0 %v6314_v4  ;;  %v6244_v4 = vor.u32 %v7094_v1, %v6241_v5  ;;  %v6283_v5 = vld [vmem:[#allocation5 + $0x428] sm:$0xf0] }
 0x608   :  { %3645 = vmatpush.bf16.msrb.mxu0 %v6306_v16  ;;  %v6233_v16 = vld [vmem:[#allocation5 + $0x3c8] sm:$0xf0] }
 0x60c   :  { %3646 = vmatpush.bf16.msrb.mxu0 %v6298_v18  ;;  %v6236_v18 = vor.u32 %v7092_v14, %v6233_v16  ;;  %v6275_v14 = vld [vmem:[#allocation5 + $0x418] sm:$0xf0] }
 0x610   :  { %3647 = vmatpush.bf16.msrb.mxu0 %v6290_v26  ;;  %v6225_v26 = vld [vmem:[#allocation5 + $0x3b8] sm:$0xf0] }
 0x614   :  { %3648 = vmatpush.bf16.msrb.mxu0 %v6282_v39  ;;  %v6195_v39 = vld [vmem:[%s7963_s8 + $0x1c] sm:$0xf] }
 0x618   :  { %3649 = vmatpush.bf16.msrb.mxu0 %v6274_v37 }
 0x642   :  { %v2788_v22 = vpop.f32.mrf.mxu2  ;;  %v2801_v23 = vpop.f32.mrf.mxu3 }
 0x643   :  { %v2805_v27 = vadd.f32 %v2788_v22, %v7808_v49  ;;  %v2806_v30 = vadd.f32 %v2801_v23, %v7810_v52  ;;  %v6265_v49 = vld [vmem:[#allocation5 + $0x400] sm:$0xf]  ;;  %v6208_v22 = vor.u32 %v7087_v17, %v6207_v9  ;;  %v7090_v23 = vld [vmem:[#allocation5 + $0x3b4] sm:$0xf]  ;;  %v7121_v17 = vld [vmem:[#allocation5 + $0x4a4] sm:$0xf0] }
 0x644   :  { %v6266_v52 = vor.u32 %v7101_v2, %v6265_v49  ;;  %v6228_v33 = vor.u32 %v7090_v23, %v6225_v26  ;;  %v6347_v9 = vld [vmem:[#allocation5 + $0x4a0] sm:$0xf]  ;;  %v6453_v23 = vld [vmem:[#allocation5 + $0x570] sm:$0xf]  ;;  %v7147_v26 = vld [vmem:[#allocation5 + $0x574] sm:$0xf0] }
 0x645   :  { %v6348_v20 = vor.u32 %v7121_v17, %v6347_v9  ;;  %v7126_v17 = vld [vmem:[#allocation5 + $0x4d4] sm:$0xf] }
 0x646   :  { %3650 = vmatpush.bf16.msrb.mxu0 %v6266_v52  ;;  %v7110_v52 = vld [vmem:[#allocation5 + $0x454] sm:$0xf] }
 0x64a   :  { %v2790_v55 = vpop.f32.mrf.mxu2  ;;  %v2803_v35 = vpop.f32.mrf.mxu3 }
 0x64b   :  { %v7112_v55 = vld [vmem:[#allocation5 + $0x464] sm:$0xf]  ;;  %v6315_v35 = vld [vmem:[#allocation5 + $0x468] sm:$0xf0] }
 0x64c   :  { %v2932_v11 = vpop.f32.mrf.mxu0  ;;  %v2945_v25 = vpop.f32.mrf.mxu1  ;;  %v6318_v49 = vor.u32 %v7112_v55, %v6315_v35  ;;  %v6331_v55 = vld [vmem:[#allocation5 + $0x480] sm:$0xf]  ;;  %v7117_v35 = vld [vmem:[#allocation5 + $0x484] sm:$0xf0] }
 0x64d   :  { %v7830_v15 = vadd.f32 %v2932_v11, %v2805_v27  ;;  %v7832_v46 = vadd.f32 %v2945_v25, %v2806_v30  ;;  %v6199_v30 = vld [vmem:[#allocation5 + $0x380] sm:$0xf]  ;;  %v7088_v11 = vld [vmem:[#allocation5 + $0x3a4] sm:$0xf]  ;;  %v6217_v25 = vld [vmem:[#allocation5 + $0x3a8] sm:$0xf0] }
 0x64e   :  { %v6200_v37 = vor.u32 %v7085_v31, %v6199_v30  ;;  %v6220_v2 = vor.u32 %v7088_v11, %v6217_v25  ;;  %v6339_v30 = vld [vmem:[#allocation5 + $0x490] sm:$0xf]  ;;  %v7119_v31 = vld [vmem:[#allocation5 + $0x494] sm:$0xf0] }
 0x64f   :  { %v6437_v11 = vld [vmem:[#allocation5 + $0x550] sm:$0xf]  ;;  %v7143_v25 = vld [vmem:[#allocation5 + $0x554] sm:$0xf0] }
 0x653   :  { %v2965_v42 = vpop.f32.mrf.mxu2 }
 0x654   :  { %v2969_v41 = vpack.c.bf16 %v2965_v42, %v2965_v42  ;;  %v2934_v43 = vpop.f32.mrf.mxu0  ;;  %v2947_v44 = vpop.f32.mrf.mxu1  ;;  %v6209_v42 = vld [vmem:[#allocation5 + $0x398] sm:$0xf0] }
 0x655   :  { %v6212_v43 = vor.u32 %v7086_v34, %v6209_v42  ;;  %v7108_v44 = vld [vmem:[#allocation5 + $0x444] sm:$0xf]  ;;  %v6421_v34 = vld [vmem:[#allocation5 + $0x530] sm:$0xf]  ;;  %v7139_v42 = vld [vmem:[#allocation5 + $0x534] sm:$0xf0] }
 0x656   :  { %3075 = vmatmul.bf16.vlgmr.msrb.gmra.mxu3 %v2969_v41  ;;  %3088 = vmatmul.bf16.vlgmr.msra.gmra.mxu2 %v2969_v41  ;;  %v6310_v41 = vor.u32 %v7110_v52, %v6307_v40  ;;  %v7141_v52 = vld [vmem:[#allocation5 + $0x544] sm:$0xf0] }
 0x657   :  { %3499 = vmatpush.bf16.msrb.mxu3 %v6256_v61  ;;  %3538 = vmatpush.bf16.msra.mxu2 %v7778_v53 }
 0x65b   :  { %3500 = vmatpush.bf16.msrb.mxu3 %v6248_v60  ;;  %3539 = vmatpush.bf16.msra.mxu2 %v7776_v38  ;;  %v2967_v28 = vpop.f32.mrf.mxu2  ;;  %v6201_v60 = vld [vmem:[#allocation5 + $0x388] sm:$0xf0] }
 0x65c   :  { %v3109_v48 = vpop.f32.mrf.mxu0  ;;  %v6204_v28 = vor.u32 %v7084_v45, %v6201_v60  ;;  %v6413_v45 = vld [vmem:[#allocation5 + $0x520] sm:$0xf]  ;;  %v7137_v60 = vld [vmem:[#allocation5 + $0x524] sm:$0xf0] }
 0x65d   :  { %v3113_v54 = vpack.c.bf16 %v3109_v48, %v3109_v48  ;;  %v6388_v48 = vor.u32 %v7131_v62, %v6387_v47  ;;  %v6414_v47 = vor.u32 %v7137_v60, %v6413_v45  ;;  %v7116_v45 = vld [vmem:[#allocation5 + $0x484] sm:$0xf]  ;;  %v6333_v60 = vld [vmem:[#allocation5 + $0x488] sm:$0xf0] }
 0x65f   :  { %3501 = vmatpush.bf16.msrb.mxu3 %v6240_v36  ;;  %3219 = vmatmul.bf16.vlgmr.msrb.gmra.mxu1 %v3113_v54  ;;  %v6302_v36 = vor.u32 %v7108_v44, %v6299_v3 }
 0x660   :  { %3512 = vmatpush.bf16.msrb.mxu1 %v6260_v59  ;;  %v6294_v59 = vor.u32 %v7106_v57, %v6291_v58 }
 0x663   :  { %3502 = vmatpush.bf16.msrb.mxu3 %v6232_v12 }
 0x664   :  { %v3111_v6 = vpop.f32.mrf.mxu0  ;;  %3513 = vmatpush.bf16.msrb.mxu1 %v6252_v19  ;;  %v7125_v19 = vld [vmem:[#allocation5 + $0x4c4] sm:$0xf0] }
 0x665   :  { %v6364_v1 = vor.u32 %v7125_v19, %v6363_v63 }
 0x666   :  { %3232 = vmatmul.bf16.vlgmr.msra.gmra.mxu3 %v3113_v54  ;;  %v7129_v54 = vld [vmem:[#allocation5 + $0x4e4] sm:$0xf0] }
 0x667   :  { %3503 = vmatpush.bf16.msrb.mxu3 %v6224_v0  ;;  %v6380_v12 = vor.u32 %v7129_v54, %v6379_v51  ;;  %v7104_v0 = vld [vmem:[#allocation5 + $0x424] sm:$0xf] }
 0x668   :  { %3514 = vmatpush.bf16.msrb.mxu1 %v6244_v4  ;;  %v6286_v6 = vor.u32 %v7104_v0, %v6283_v5  ;;  %v7102_v4 = vld [vmem:[#allocation5 + $0x414] sm:$0xf] }
 0x669   :  { %v6278_v16 = vor.u32 %v7102_v4, %v6275_v14  ;;  %v6381_v14 = vld [vmem:[#allocation5 + $0x4e8] sm:$0xf0] }
 0x66b   :  { %3504 = vmatpush.bf16.msrb.mxu3 %v6216_v13  ;;  %v6356_v13 = vor.u32 %v7123_v8, %v6355_v7  ;;  %v6389_v7 = vld [vmem:[#allocation5 + $0x4f8] sm:$0xf0]  ;;  %v7128_v8 = vld [vmem:[#allocation5 + $0x4e4] sm:$0xf] }
 0x66c   :  { %v3253_v27 = vpop.f32.mrf.mxu0  ;;  %3515 = vmatpush.bf16.msrb.mxu1 %v6236_v18  ;;  %v7100_v18 = vld [vmem:[#allocation5 + $0x404] sm:$0xf] }
 0x66d   :  { %v3257_v32 = vpack.c.bf16 %v3253_v27, %v3253_v27  ;;  %v6454_v27 = vor.u32 %v7147_v26, %v6453_v23  ;;  %v6365_v23 = vld [vmem:[#allocation5 + $0x4c8] sm:$0xf0]  ;;  %v7146_v26 = vld [vmem:[#allocation5 + $0x574] sm:$0xf] }
 0x66f   :  { %3505 = vmatpush.bf16.msrb.mxu3 %v6208_v22  ;;  %3363 = vmatmul.bf16.vlgmr.msrb.gmra.mxu2 %v3257_v32  ;;  %v6270_v22 = vor.u32 %v7100_v18, %v6267_v21  ;;  %v6373_v18 = vld [vmem:[#allocation5 + $0x4d8] sm:$0xf0] }
 0x670   :  { %3376 = vmatmul.bf16.vlgmr.msra.gmra.mxu0 %v3257_v32  ;;  %6196 = vmatmul.msk.bf16.vlgmr.msra.gmra.mxu1 %vm2381_vm9, %v6195_v39  ;;  %v6340_v32 = vor.u32 %v7119_v31, %v6339_v30  ;;  %v6445_v39 = vld [vmem:[#allocation5 + $0x560] sm:$0xf]  ;;  %v6376_v21 = vor.u32 %v7126_v17, %v6373_v18  ;;  %v7155_v17 = vld [vmem:[#allocation5 + $0x5b4] sm:$0xf0]  ;;  %v6585_v18 = vld [vmem:[#allocation5 + $0x670] sm:$0xf] }
 0x671   :  { %3826 = vmatpush.bf16.msra.mxu0 %v7778_v53  ;;  %3656 = vmatpush.bf16.msrb.mxu2 %v6326_v29  ;;  %v7145_v29 = vld [vmem:[#allocation5 + $0x564] sm:$0xf0] }
 0x672   :  { %3516 = vmatpush.bf16.msrb.mxu1 %v6228_v33  ;;  %v6446_v33 = vor.u32 %v7145_v29, %v6445_v39  ;;  %v7122_v39 = vld [vmem:[#allocation5 + $0x4b4] sm:$0xf]  ;;  %v6357_v29 = vld [vmem:[#allocation5 + $0x4b8] sm:$0xf0] }
 0x673   :  { %3506 = vmatpush.bf16.msrb.mxu3 %v6200_v37  ;;  %v6332_v37 = vor.u32 %v7117_v35, %v6331_v55  ;;  %v7144_v55 = vld [vmem:[#allocation5 + $0x564] sm:$0xf]  ;;  %v6447_v35 = vld [vmem:[#allocation5 + $0x568] sm:$0xf0] }
 0x674   :  { %v3255_v61 = vpop.f32.mrf.mxu0 }
 0x675   :  { %3827 = vmatpush.bf16.msra.mxu0 %v7776_v38  ;;  %3657 = vmatpush.bf16.msrb.mxu2 %v6318_v49  ;;  %v6438_v49 = vor.u32 %v7143_v25, %v6437_v11  ;;  %v6422_v61 = vor.u32 %v7139_v42, %v6421_v34  ;;  %v7120_v11 = vld [vmem:[#allocation5 + $0x4a4] sm:$0xf]  ;;  %v6349_v25 = vld [vmem:[#allocation5 + $0x4a8] sm:$0xf0]  ;;  %v7118_v42 = vld [vmem:[#allocation5 + $0x494] sm:$0xf] }
 0x676   :  { %3517 = vmatpush.bf16.msrb.mxu1 %v6220_v2  ;;  %v6429_v2 = vld [vmem:[#allocation5 + $0x540] sm:$0xf] }
 0x677   :  { %3682 = vmatpush.bf16.msra.mxu3 %v7778_v53  ;;  %v6430_v40 = vor.u32 %v7141_v52, %v6429_v2  ;;  %v7142_v2 = vld [vmem:[#allocation5 + $0x554] sm:$0xf]  ;;  %v6439_v52 = vld [vmem:[#allocation5 + $0x558] sm:$0xf0] }
 0x679   :  { %3658 = vmatpush.bf16.msrb.mxu2 %v6310_v41 }
 0x67a   :  { %3518 = vmatpush.bf16.msrb.mxu1 %v6212_v43 }
 0x67b   :  { %3683 = vmatpush.bf16.msra.mxu3 %v7776_v38 }
 0x67d   :  { %3659 = vmatpush.bf16.msrb.mxu2 %v6302_v36 }
 0x67e   :  { %3519 = vmatpush.bf16.msrb.mxu1 %v6204_v28  ;;  %v6405_v28 = vld [vmem:[#allocation5 + $0x510] sm:$0xf] }
 0x67f   :  { %6262 = vmatmul.msk.bf16.vlgmr.msra.gmra.mxu2 %vm2381_vm9, %v6261_v24 }
 0x681   :  { %3660 = vmatpush.bf16.msrb.mxu2 %v6294_v59 }
 0x682   :  { %3787 = vmatpush.bf16.msra.mxu1 %v6388_v48  ;;  %v7135_v48 = vld [vmem:[#allocation5 + $0x514] sm:$0xf0] }
 0x683   :  { %v6406_v24 = vor.u32 %v7135_v48, %v6405_v28  ;;  %v7138_v28 = vld [vmem:[#allocation5 + $0x534] sm:$0xf]  ;;  %v6423_v48 = vld [vmem:[#allocation5 + $0x538] sm:$0xf0] }
 0x685   :  { %3661 = vmatpush.bf16.msrb.mxu2 %v6286_v6  ;;  %v7130_v6 = vld [vmem:[#allocation5 + $0x4f4] sm:$0xf] }
 0x686   :  { %3788 = vmatpush.bf16.msra.mxu1 %v6380_v12  ;;  %v6397_v12 = vld [vmem:[#allocation5 + $0x500] sm:$0xf] }
 0x689   :  { %3662 = vmatpush.bf16.msrb.mxu2 %v6278_v16  ;;  %v6384_v16 = vor.u32 %v7128_v8, %v6381_v14  ;;  %v7157_v8 = vld [vmem:[#allocation5 + $0x5c4] sm:$0xf0]  ;;  %v6399_v14 = vld [vmem:[#allocation5 + $0x508] sm:$0xf0] }
 0x68a   :  { %3789 = vmatpush.bf16.msra.mxu1 %v6372_v56  ;;  %v6398_v56 = vor.u32 %v7133_v10, %v6397_v12  ;;  %v6426_v12 = vor.u32 %v7138_v28, %v6423_v48  ;;  %v6511_v10 = vld [vmem:[#allocation5 + $0x5e0] sm:$0xf]  ;;  %v7165_v48 = vld [vmem:[#allocation5 + $0x604] sm:$0xf0] }
 0x68b   :  { %v6529_v28 = vld [vmem:[#allocation5 + $0x600] sm:$0xf] }
 0x68d   :  { %3663 = vmatpush.bf16.msrb.mxu2 %v6270_v22  ;;  %v7124_v22 = vld [vmem:[#allocation5 + $0x4c4] sm:$0xf] }
 0x68e   :  { %3790 = vmatpush.bf16.msra.mxu1 %v6364_v1  ;;  %v6368_v31 = vor.u32 %v7124_v22, %v6365_v23  ;;  %v6479_v23 = vld [vmem:[#allocation5 + $0x5a0] sm:$0xf] }
 0x691   :  { %3931 = vmatpush.bf16.msra.mxu2 %v6454_v27  ;;  %v6455_v27 = vld [vmem:[#allocation5 + $0x578] sm:$0xf0] }
 0x692   :  { %3791 = vmatpush.bf16.msra.mxu1 %v6356_v13  ;;  %v6392_v13 = vor.u32 %v7130_v6, %v6389_v7  ;;  %v6495_v7 = vld [vmem:[#allocation5 + $0x5c0] sm:$0xf] }
 0x695   :  { %3932 = vmatpush.bf16.msra.mxu2 %v6446_v33  ;;  %v6458_v33 = vor.u32 %v7146_v26, %v6455_v27  ;;  %v7153_v26 = vld [vmem:[#allocation5 + $0x5a4] sm:$0xf0]  ;;  %v6577_v27 = vld [vmem:[#allocation5 + $0x660] sm:$0xf] }
 0x696   :  { %3792 = vmatpush.bf16.msra.mxu1 %v6348_v20  ;;  %v6327_v20 = vld [vmem:[%s7963_s8 + $0x24] sm:$0xf] }
 0x699   :  { %3933 = vmatpush.bf16.msra.mxu2 %v6438_v49  ;;  %v6450_v49 = vor.u32 %v7144_v55, %v6447_v35  ;;  %v7175_v55 = vld [vmem:[#allocation5 + $0x654] sm:$0xf0] }
 0x69a   :  { %3793 = vmatpush.bf16.msra.mxu1 %v6340_v32 }
 0x69d   :  { %3934 = vmatpush.bf16.msra.mxu2 %v6430_v40  ;;  %v6352_v40 = vor.u32 %v7120_v11, %v6349_v25  ;;  %v6463_v11 = vld [vmem:[#allocation5 + $0x580] sm:$0xf]  ;;  %v7149_v25 = vld [vmem:[#allocation5 + $0x584] sm:$0xf0] }
 0x69e   :  { %3794 = vmatpush.bf16.msra.mxu1 %v6332_v37  ;;  %v6360_v37 = vor.u32 %v7122_v39, %v6357_v29  ;;  %v7151_v39 = vld [vmem:[#allocation5 + $0x594] sm:$0xf0] }
 0x6a1   :  { %3935 = vmatpush.bf16.msra.mxu2 %v6422_v61  ;;  %v6341_v61 = vld [vmem:[#allocation5 + $0x498] sm:$0xf0] }
 0x6a5   :  { %3936 = vmatpush.bf16.msra.mxu2 %v6414_v47 }
 0x6a9   :  { %3937 = vmatpush.bf16.msra.mxu2 %v6406_v24  ;;  %v6393_v24 = vld [vmem:[%s7963_s8 + $0x28] sm:$0xf] }
 0x6ad   :  { %3938 = vmatpush.bf16.msra.mxu2 %v6398_v56 }
 0x6d9   :  { %v3076_v41 = vpop.f32.mrf.mxu3  ;;  %v3089_v43 = vpop.f32.mrf.mxu2 }
 0x6da   :  { %v3093_v44 = vadd.f32 %v3076_v41, %v7830_v15  ;;  %v3094_v3 = vadd.f32 %v3089_v43, %v7832_v46  ;;  %v6442_v41 = vor.u32 %v7142_v2, %v6439_v52  ;;  %v7140_v43 = vld [vmem:[#allocation5 + $0x544] sm:$0xf]  ;;  %v6464_v2 = vor.u32 %v7149_v25, %v6463_v11  ;;  %v7173_v52 = vld [vmem:[#allocation5 + $0x644] sm:$0xf0] }
 0x6dc   :  { %v3220_v62 = vpop.f32.mrf.mxu1 }
 0x6dd   :  { %v3237_v36 = vadd.f32 %v3220_v62, %v3093_v44  ;;  %v6431_v44 = vld [vmem:[#allocation5 + $0x548] sm:$0xf0]  ;;  %v6519_v62 = vld [vmem:[#allocation5 + $0x5f0] sm:$0xf] }
 0x6de   :  { %v6434_v47 = vor.u32 %v7140_v43, %v6431_v44  ;;  %v7169_v43 = vld [vmem:[#allocation5 + $0x624] sm:$0xf0] }
 0x6e1   :  { %v3078_v51 = vpop.f32.mrf.mxu3  ;;  %v3091_v54 = vpop.f32.mrf.mxu2 }
 0x6e2   :  { %v6336_v51 = vor.u32 %v7116_v45, %v6333_v60  ;;  %v7167_v45 = vld [vmem:[#allocation5 + $0x614] sm:$0xf0] }
 0x6e4   :  { %v3222_v50 = vpop.f32.mrf.mxu1 }
 0x6e5   :  { %v7161_v50 = vld [vmem:[#allocation5 + $0x5e4] sm:$0xf0] }
 0x6e6   :  { %v6512_v56 = vor.u32 %v7161_v50, %v6511_v10 }
 0x6e9   :  { %v3233_v15 = vpop.f32.mrf.mxu3 }
 0x6ea   :  { %v3238_v46 = vadd.f32 %v3233_v15, %v3094_v3  ;;  %v6344_v3 = vor.u32 %v7118_v42, %v6341_v61  ;;  %v7136_v15 = vld [vmem:[#allocation5 + $0x524] sm:$0xf]  ;;  %v7171_v42 = vld [vmem:[#allocation5 + $0x634] sm:$0xf0] }
 0x6ed   :  { %v3377_v57 = vpop.f32.mrf.mxu0  ;;  %v3397_v58 = vpop.f32.mrf.mxu1 }
 0x6ee   :  { %v7850_v59 = vadd.f32 %v3377_v57, %v3238_v46  ;;  %v3401_v63 = vpack.c.bf16 %v3397_v58, %v3397_v58  ;;  %v6415_v46 = vld [vmem:[#allocation5 + $0x528] sm:$0xf0]  ;;  %v6503_v57 = vld [vmem:[#allocation5 + $0x5d0] sm:$0xf] }
 0x6ef   :  { %v6418_v58 = vor.u32 %v7136_v15, %v6415_v46  ;;  %v7162_v46 = vld [vmem:[#allocation5 + $0x5f4] sm:$0xf] }
 0x6f0   :  { %3507 = vmatmul.bf16.vlgmr.msrb.gmra.mxu3 %v3401_v63  ;;  %3520 = vmatmul.bf16.vlgmr.msrb.gmra.mxu1 %v3401_v63  ;;  %v7159_v63 = vld [vmem:[#allocation5 + $0x5d4] sm:$0xf0] }
 0x6f1   :  { %3970 = vmatpush.bf16.msrb.mxu1 %v7778_v53  ;;  %v3235_v19 = vpop.f32.mrf.mxu3  ;;  %3800 = vmatpush.bf16.msrb.mxu3 %v6392_v13  ;;  %v7132_v13 = vld [vmem:[#allocation5 + $0x504] sm:$0xf] }
 0x6f2   :  { %v3364_v0 = vpop.f32.mrf.mxu2  ;;  %v6504_v19 = vor.u32 %v7159_v63, %v6503_v57  ;;  %v6521_v57 = vld [vmem:[#allocation5 + $0x5f8] sm:$0xf0]  ;;  %v6513_v63 = vld [vmem:[#allocation5 + $0x5e8] sm:$0xf0] }
 0x6f3   :  { %v7853_v1 = vadd.f32 %v3364_v0, %v3237_v36  ;;  %v7163_v36 = vld [vmem:[#allocation5 + $0x5f4] sm:$0xf0]  ;;  %v7134_v0 = vld [vmem:[#allocation5 + $0x514] sm:$0xf] }
 0x6f4   :  { %v6520_v54 = vor.u32 %v7163_v36, %v6519_v62 }
 0x6f5   :  { %3971 = vmatpush.bf16.msrb.mxu1 %v7776_v38  ;;  %v3399_v5 = vpop.f32.mrf.mxu1  ;;  %v3379_v4 = vpop.f32.mrf.mxu0  ;;  %3801 = vmatpush.bf16.msrb.mxu3 %v6384_v16  ;;  %v6402_v16 = vor.u32 %v7132_v13, %v6399_v14  ;;  %v7156_v13 = vld [vmem:[#allocation5 + $0x5c4] sm:$0xf]  ;;  %v6497_v14 = vld [vmem:[#allocation5 + $0x5c8] sm:$0xf0] }
 0x6f6   :  { %v6407_v5 = vld [vmem:[#allocation5 + $0x518] sm:$0xf0]  ;;  %v6496_v4 = vor.u32 %v7157_v8, %v6495_v7 }
 0x6f7   :  { %v6410_v6 = vor.u32 %v7134_v0, %v6407_v5  ;;  %v7158_v5 = vld [vmem:[#allocation5 + $0x5d4] sm:$0xf] }
 0x6f9   :  { %3802 = vmatpush.bf16.msrb.mxu3 %v6376_v21  ;;  %v7179_v21 = vld [vmem:[#allocation5 + $0x674] sm:$0xf0] }
 0x6fa   :  { %v3366_v9 = vpop.f32.mrf.mxu2  ;;  %v6586_v22 = vor.u32 %v7179_v21, %v6585_v18  ;;  %v6489_v18 = vld [vmem:[#allocation5 + $0x5b8] sm:$0xf0] }
 0x6fb   :  { %v6487_v9 = vld [vmem:[#allocation5 + $0x5b0] sm:$0xf] }
 0x6fd   :  { %3803 = vmatpush.bf16.msrb.mxu3 %v6368_v31  ;;  %v7177_v31 = vld [vmem:[#allocation5 + $0x664] sm:$0xf0] }
 0x6fe   :  { %v6578_v29 = vor.u32 %v7177_v31, %v6577_v27  ;;  %v6481_v27 = vld [vmem:[#allocation5 + $0x5a8] sm:$0xf0]  ;;  %v7150_v31 = vld [vmem:[#allocation5 + $0x594] sm:$0xf] }
 0x700   :  { %6328 = vmatmul.msk.bf16.vlgmr.msra.gmra.mxu3 %vm2381_vm9, %v6327_v20  ;;  %v6488_v20 = vor.u32 %v7155_v17, %v6487_v9  ;;  %v7154_v17 = vld [vmem:[#allocation5 + $0x5b4] sm:$0xf] }
 0x701   :  { %3804 = vmatpush.bf16.msrb.mxu3 %v6360_v37 }
 0x702   :  { %v3541_v30 = vpop.f32.mrf.mxu2 }
 0x703   :  { %v3545_v32 = vpack.c.bf16 %v3541_v30, %v3541_v30  ;;  %v6480_v30 = vor.u32 %v7153_v26, %v6479_v23  ;;  %v6492_v23 = vor.u32 %v7154_v17, %v6489_v18  ;;  %v7152_v26 = vld [vmem:[#allocation5 + $0x5a4] sm:$0xf]  ;;  %v6539_v17 = vld [vmem:[#allocation5 + $0x618] sm:$0xf0] }
 0x705   :  { %3651 = vmatmul.bf16.vlgmr.msrb.gmra.mxu0 %v3545_v32  ;;  %3664 = vmatmul.bf16.vlgmr.msrb.gmra.mxu2 %v3545_v32  ;;  %v6471_v32 = vld [vmem:[#allocation5 + $0x590] sm:$0xf] }
 0x706   :  { %4114 = vmatpush.bf16.msrb.mxu2 %v7778_v53  ;;  %3944 = vmatpush.bf16.msrb.mxu0 %v6458_v33  ;;  %v6569_v33 = vld [vmem:[#allocation5 + $0x650] sm:$0xf]  ;;  %v6472_v35 = vor.u32 %v7151_v39, %v6471_v32  ;;  %v6473_v32 = vld [vmem:[#allocation5 + $0x598] sm:$0xf0] }
 0x707   :  { %3805 = vmatpush.bf16.msrb.mxu3 %v6352_v40  ;;  %v6570_v37 = vor.u32 %v7175_v55, %v6569_v33  ;;  %v7148_v33 = vld [vmem:[#allocation5 + $0x584] sm:$0xf]  ;;  %v6465_v55 = vld [vmem:[#allocation5 + $0x588] sm:$0xf0] }
 0x708   :  { %v6468_v11 = vor.u32 %v7148_v33, %v6465_v55 }
 0x70a   :  { %4115 = vmatpush.bf16.msrb.mxu2 %v7776_v38  ;;  %v3543_v34 = vpop.f32.mrf.mxu2  ;;  %3945 = vmatpush.bf16.msrb.mxu0 %v6450_v49  ;;  %v6561_v49 = vld [vmem:[#allocation5 + $0x640] sm:$0xf] }
 0x70b   :  { %3806 = vmatpush.bf16.msrb.mxu3 %v6344_v3  ;;  %v6562_v40 = vor.u32 %v7173_v52, %v6561_v49  ;;  %v6553_v34 = vld [vmem:[#allocation5 + $0x630] sm:$0xf]  ;;  %v7193_v52 = vld [vmem:[#allocation5 + $0x6e4] sm:$0xf0] }
 0x70c   :  { %v6554_v61 = vor.u32 %v7171_v42, %v6553_v34  ;;  %v6537_v3 = vld [vmem:[#allocation5 + $0x610] sm:$0xf]  ;;  %v7191_v42 = vld [vmem:[#allocation5 + $0x6d4] sm:$0xf0] }
 0x70d   :  { %v6538_v62 = vor.u32 %v7167_v45, %v6537_v3  ;;  %v6525_v49 = vld [vmem:[%s7963_s8 + $0x30] sm:$0xf]  ;;  %v7187_v45 = vld [vmem:[#allocation5 + $0x6b4] sm:$0xf0] }
 0x70e   :  { %3946 = vmatpush.bf16.msrb.mxu0 %v6442_v41  ;;  %v6545_v41 = vld [vmem:[#allocation5 + $0x620] sm:$0xf]  ;;  %v6635_v34 = vld [vmem:[#allocation5 + $0x6d0] sm:$0xf] }
 0x70f   :  { %3807 = vmatpush.bf16.msrb.mxu3 %v6336_v51  ;;  %v6546_v44 = vor.u32 %v7169_v43, %v6545_v41  ;;  %v6530_v51 = vor.u32 %v7165_v48, %v6529_v28  ;;  %v6627_v41 = vld [vmem:[#allocation5 + $0x6c0] sm:$0xf]  ;;  %v7189_v43 = vld [vmem:[#allocation5 + $0x6c4] sm:$0xf0]  ;;  %v6619_v3 = vld [vmem:[#allocation5 + $0x6b0] sm:$0xf] }
 0x710   :  { %v7185_v48 = vld [vmem:[#allocation5 + $0x6a4] sm:$0xf0] }
 0x712   :  { %3947 = vmatpush.bf16.msrb.mxu0 %v6434_v47 }
 0x713   :  { %4075 = vmatpush.bf16.msra.mxu3 %v6520_v54 }
 0x715   :  { %6394 = vmatmul.msk.bf16.vlgmr.msra.gmra.mxu0 %vm2381_vm9, %v6393_v24 }
 0x716   :  { %3948 = vmatpush.bf16.msrb.mxu0 %v6426_v12 }
 0x717   :  { %4076 = vmatpush.bf16.msra.mxu3 %v6512_v56 }
 0x71a   :  { %3949 = vmatpush.bf16.msrb.mxu0 %v6418_v58  ;;  %v6524_v58 = vor.u32 %v7162_v46, %v6521_v57  ;;  %v7174_v46 = vld [vmem:[#allocation5 + $0x654] sm:$0xf]  ;;  %v6571_v57 = vld [vmem:[#allocation5 + $0x658] sm:$0xf0] }
 0x71b   :  { %4077 = vmatpush.bf16.msra.mxu3 %v6504_v19 }
 0x71e   :  { %3950 = vmatpush.bf16.msrb.mxu0 %v6410_v6  ;;  %v6505_v6 = vld [vmem:[#allocation5 + $0x5d8] sm:$0xf0] }
 0x71f   :  { %4078 = vmatpush.bf16.msra.mxu3 %v6496_v4  ;;  %v6508_v4 = vor.u32 %v7158_v5, %v6505_v6  ;;  %v6563_v5 = vld [vmem:[#allocation5 + $0x648] sm:$0xf0] }
 0x722   :  { %3951 = vmatpush.bf16.msrb.mxu0 %v6402_v16  ;;  %v6500_v16 = vor.u32 %v7156_v13, %v6497_v14  ;;  %v7168_v13 = vld [vmem:[#allocation5 + $0x624] sm:$0xf]  ;;  %v6547_v14 = vld [vmem:[#allocation5 + $0x628] sm:$0xf0] }
 0x723   :  { %4079 = vmatpush.bf16.msra.mxu3 %v6488_v20 }
 0x726   :  { %4219 = vmatpush.bf16.msra.mxu0 %v6586_v22  ;;  %v6459_v22 = vld [vmem:[%s7963_s8 + $0x2c] sm:$0xf] }
 0x727   :  { %4080 = vmatpush.bf16.msra.mxu3 %v6480_v30  ;;  %v6484_v30 = vor.u32 %v7152_v26, %v6481_v27 }
 0x72a   :  { %4220 = vmatpush.bf16.msra.mxu0 %v6578_v29  ;;  %v6476_v29 = vor.u32 %v7150_v31, %v6473_v32 }
 0x72b   :  { %4081 = vmatpush.bf16.msra.mxu3 %v6472_v35  ;;  %v6651_v35 = vld [vmem:[#allocation5 + $0x6f0] sm:$0xf] }
 0x72e   :  { %4221 = vmatpush.bf16.msra.mxu0 %v6570_v37  ;;  %v7195_v37 = vld [vmem:[#allocation5 + $0x6f4] sm:$0xf0] }
 0x72f   :  { %4082 = vmatpush.bf16.msra.mxu3 %v6464_v2  ;;  %v6652_v25 = vor.u32 %v7195_v37, %v6651_v35  ;;  %v6643_v2 = vld [vmem:[#allocation5 + $0x6e0] sm:$0xf] }
 0x732   :  { %4222 = vmatpush.bf16.msra.mxu0 %v6562_v40  ;;  %v6644_v40 = vor.u32 %v7193_v52, %v6643_v2  ;;  %v6645_v52 = vld [vmem:[#allocation5 + $0x6e8] sm:$0xf0] }
 0x736   :  { %4223 = vmatpush.bf16.msra.mxu0 %v6554_v61  ;;  %v6636_v61 = vor.u32 %v7191_v42, %v6635_v34 }
 0x73a   :  { %4224 = vmatpush.bf16.msra.mxu0 %v6546_v44  ;;  %v6628_v44 = vor.u32 %v7189_v43, %v6627_v41  ;;  %v6657_v41 = vld [vmem:[%s7963_s8 + $0x38] sm:$0xf] }
 0x73b   :  { %v7190_v43 = vld [vmem:[#allocation5 + $0x6d4] sm:$0xf] }
 0x73e   :  { %4225 = vmatpush.bf16.msra.mxu0 %v6538_v62  ;;  %v6587_v62 = vld [vmem:[#allocation5 + $0x678] sm:$0xf0] }
 0x742   :  { %4226 = vmatpush.bf16.msra.mxu0 %v6530_v51  ;;  %v6579_v51 = vld [vmem:[#allocation5 + $0x668] sm:$0xf0] }
 0x76d   :  { %v3521_v60 = vpop.f32.mrf.mxu1 }
 0x76e   :  { %v3526_v47 = vadd.f32 %v3521_v60, %v7850_v59  ;;  %v7160_v59 = vld [vmem:[#allocation5 + $0x5e4] sm:$0xf]  ;;  %v6620_v60 = vor.u32 %v7187_v45, %v6619_v3 }
 0x76f   :  { %v7188_v45 = vld [vmem:[#allocation5 + $0x6c4] sm:$0xf] }
 0x773   :  { %v3508_v36 = vpop.f32.mrf.mxu3 }
 0x774   :  { %v3525_v24 = vadd.f32 %v3508_v36, %v7853_v1  ;;  %v6516_v1 = vor.u32 %v7160_v59, %v6513_v63  ;;  %v6611_v36 = vld [vmem:[#allocation5 + $0x6a0] sm:$0xf]  ;;  %v7181_v63 = vld [vmem:[#allocation5 + $0x684] sm:$0xf0] }
 0x775   :  { %v3523_v54 = vpop.f32.mrf.mxu1  ;;  %v6595_v59 = vld [vmem:[#allocation5 + $0x680] sm:$0xf] }
 0x776   :  { %v6612_v54 = vor.u32 %v7185_v48, %v6611_v36  ;;  %v6621_v36 = vld [vmem:[#allocation5 + $0x6b8] sm:$0xf0] }
 0x77b   :  { %v3510_v12 = vpop.f32.mrf.mxu3 }
 0x77c   :  { %v6603_v12 = vld [vmem:[#allocation5 + $0x690] sm:$0xf] }
 0x782   :  { %v3652_v10 = vpop.f32.mrf.mxu0 }
 0x783   :  { %v7868_v50 = vadd.f32 %v3652_v10, %v3525_v24  ;;  %v3685_v56 = vpop.f32.mrf.mxu3  ;;  %v7176_v24 = vld [vmem:[#allocation5 + $0x664] sm:$0xf]  ;;  %v7183_v10 = vld [vmem:[#allocation5 + $0x694] sm:$0xf0] }
 0x784   :  { %v3689_v15 = vpack.c.bf16 %v3685_v56, %v3685_v56  ;;  %v6582_v56 = vor.u32 %v7176_v24, %v6579_v51  ;;  %v7211_v24 = vld [vmem:[#allocation5 + $0x774] sm:$0xf0]  ;;  %v7210_v51 = vld [vmem:[#allocation5 + $0x774] sm:$0xf] }
 0x786   :  { %3795 = vmatmul.bf16.vlgmr.msra.gmra.mxu1 %v3689_v15  ;;  %3808 = vmatmul.bf16.vlgmr.msrb.gmra.mxu3 %v3689_v15  ;;  %v6604_v15 = vor.u32 %v7183_v10, %v6603_v12 }
 0x787   :  { %4258 = vmatpush.bf16.msrb.mxu3 %v7778_v53  ;;  %4088 = vmatpush.bf16.msra.mxu1 %v6524_v58  ;;  %v6574_v58 = vor.u32 %v7174_v46, %v6571_v57  ;;  %v6709_v46 = vld [vmem:[#allocation5 + $0x760] sm:$0xf] }
 0x788   :  { %v3665_v19 = vpop.f32.mrf.mxu2 }
 0x789   :  { %v7871_v0 = vadd.f32 %v3665_v19, %v3526_v47  ;;  %v7178_v47 = vld [vmem:[#allocation5 + $0x674] sm:$0xf]  ;;  %v6596_v19 = vor.u32 %v7181_v63, %v6595_v59  ;;  %v7209_v59 = vld [vmem:[#allocation5 + $0x764] sm:$0xf0]  ;;  %v6711_v63 = vld [vmem:[#allocation5 + $0x768] sm:$0xf0] }
 0x78a   :  { %v3654_v7 = vpop.f32.mrf.mxu0  ;;  %v6590_v28 = vor.u32 %v7178_v47, %v6587_v62  ;;  %v7186_v62 = vld [vmem:[#allocation5 + $0x6b4] sm:$0xf] }
 0x78b   :  { %4259 = vmatpush.bf16.msrb.mxu3 %v7776_v38  ;;  %v3687_v8 = vpop.f32.mrf.mxu3  ;;  %4089 = vmatpush.bf16.msra.mxu1 %v6516_v1  ;;  %v7172_v1 = vld [vmem:[#allocation5 + $0x644] sm:$0xf]  ;;  %v7170_v7 = vld [vmem:[#allocation5 + $0x634] sm:$0xf]  ;;  %v6624_v48 = vor.u32 %v7186_v62, %v6621_v36 }
 0x78c   :  { %v6566_v6 = vor.u32 %v7172_v1, %v6563_v5  ;;  %v6555_v8 = vld [vmem:[#allocation5 + $0x638] sm:$0xf0]  ;;  %v7182_v5 = vld [vmem:[#allocation5 + $0x694] sm:$0xf] }
 0x78f   :  { %4090 = vmatpush.bf16.msra.mxu1 %v6508_v4  ;;  %v6558_v4 = vor.u32 %v7170_v7, %v6555_v8  ;;  %v6701_v7 = vld [vmem:[#allocation5 + $0x750] sm:$0xf] }
 0x790   :  { %v3667_v9 = vpop.f32.mrf.mxu2 }
 0x791   :  { %v7166_v9 = vld [vmem:[#allocation5 + $0x614] sm:$0xf] }
 0x792   :  { %v3829_v20 = vpop.f32.mrf.mxu0  ;;  %v6542_v18 = vor.u32 %v7166_v9, %v6539_v17  ;;  %v7180_v17 = vld [vmem:[#allocation5 + $0x684] sm:$0xf] }
 0x793   :  { %v3833_v21 = vpack.c.bf16 %v3829_v20, %v3829_v20  ;;  %4091 = vmatpush.bf16.msra.mxu1 %v6500_v16  ;;  %v6550_v16 = vor.u32 %v7168_v13, %v6547_v14  ;;  %v7206_v13 = vld [vmem:[#allocation5 + $0x754] sm:$0xf]  ;;  %v6703_v14 = vld [vmem:[#allocation5 + $0x758] sm:$0xf0] }
 0x794   :  { %v6706_v9 = vor.u32 %v7206_v13, %v6703_v14  ;;  %v6769_v13 = vld [vmem:[#allocation5 + $0x7d8] sm:$0xf0] }
 0x795   :  { %3939 = vmatmul.bf16.vlgmr.msra.gmra.mxu2 %v3833_v21  ;;  %3952 = vmatmul.bf16.vlgmr.msrb.gmra.mxu0 %v3833_v21 }
 0x796   :  { %6460 = vmatmul.msk.bf16.vlgmr.msrb.gmra.mxu1 %vm2381_vm9, %v6459_v22  ;;  %4402 = vmatpush.bf16.msrb.mxu0 %v7778_v53  ;;  %v7164_v22 = vld [vmem:[#allocation5 + $0x604] sm:$0xf] }
 0x797   :  { %4092 = vmatpush.bf16.msra.mxu1 %v6492_v23  ;;  %4232 = vmatpush.bf16.msra.mxu2 %v6590_v28  ;;  %v6531_v23 = vld [vmem:[#allocation5 + $0x608] sm:$0xf0]  ;;  %v6717_v28 = vld [vmem:[#allocation5 + $0x770] sm:$0xf] }
 0x798   :  { %v6534_v26 = vor.u32 %v7164_v22, %v6531_v23  ;;  %v6718_v12 = vor.u32 %v7211_v24, %v6717_v28  ;;  %v7205_v22 = vld [vmem:[#allocation5 + $0x744] sm:$0xf0]  ;;  %v7204_v23 = vld [vmem:[#allocation5 + $0x744] sm:$0xf]  ;;  %v7227_v24 = vld [vmem:[#allocation5 + $0x7f4] sm:$0xf0] }
 0x79a   :  { %4403 = vmatpush.bf16.msrb.mxu0 %v7776_v38  ;;  %v3831_v39 = vpop.f32.mrf.mxu0 }
 0x79b   :  { %4093 = vmatpush.bf16.msra.mxu1 %v6484_v30  ;;  %4233 = vmatpush.bf16.msra.mxu2 %v6582_v56  ;;  %v7184_v56 = vld [vmem:[#allocation5 + $0x6a4] sm:$0xf] }
 0x79f   :  { %4094 = vmatpush.bf16.msra.mxu1 %v6476_v29  ;;  %4234 = vmatpush.bf16.msra.mxu2 %v6574_v58  ;;  %v7208_v58 = vld [vmem:[#allocation5 + $0x764] sm:$0xf] }
 0x7a0   :  { %v6714_v1 = vor.u32 %v7208_v58, %v6711_v63 }
 0x7a3   :  { %4095 = vmatpush.bf16.msra.mxu1 %v6468_v11  ;;  %4235 = vmatpush.bf16.msra.mxu2 %v6566_v6  ;;  %v6605_v6 = vld [vmem:[#allocation5 + $0x698] sm:$0xf0] }
 0x7a4   :  { %v6608_v8 = vor.u32 %v7182_v5, %v6605_v6  ;;  %v7224_v5 = vld [vmem:[#allocation5 + $0x7e4] sm:$0xf]  ;;  %v6777_v6 = vld [vmem:[#allocation5 + $0x7e8] sm:$0xf0] }
 0x7a5   :  { %6526 = vmatmul.msk.bf16.vlgmr.msrb.gmra.mxu2 %vm2381_vm9, %v6525_v49  ;;  %v7192_v49 = vld [vmem:[#allocation5 + $0x6e4] sm:$0xf] }
 0x7a7   :  { %4363 = vmatpush.bf16.msrb.mxu1 %v6652_v25  ;;  %4236 = vmatpush.bf16.msra.mxu2 %v6558_v4  ;;  %v6653_v25 = vld [vmem:[#allocation5 + $0x6f8] sm:$0xf0]  ;;  %v7207_v4 = vld [vmem:[#allocation5 + $0x754] sm:$0xf0] }
 0x7ab   :  { %4364 = vmatpush.bf16.msrb.mxu1 %v6644_v40  ;;  %4237 = vmatpush.bf16.msra.mxu2 %v6550_v16  ;;  %v6648_v40 = vor.u32 %v7192_v49, %v6645_v52  ;;  %v6702_v16 = vor.u32 %v7207_v4, %v6701_v7  ;;  %v6679_v49 = vld [vmem:[#allocation5 + $0x728] sm:$0xf0]  ;;  %v6669_v52 = vld [vmem:[#allocation5 + $0x710] sm:$0xf]  ;;  %v6780_v7 = vor.u32 %v7224_v5, %v6777_v6  ;;  %v7222_v4 = vld [vmem:[#allocation5 + $0x7d4] sm:$0xf] }
 0x7af   :  { %4365 = vmatpush.bf16.msrb.mxu1 %v6636_v61  ;;  %4238 = vmatpush.bf16.msra.mxu2 %v6542_v18  ;;  %v6597_v18 = vld [vmem:[#allocation5 + $0x688] sm:$0xf0] }
 0x7b3   :  { %4366 = vmatpush.bf16.msrb.mxu1 %v6628_v44  ;;  %4239 = vmatpush.bf16.msra.mxu2 %v6534_v26  ;;  %v6637_v44 = vld [vmem:[#allocation5 + $0x6d8] sm:$0xf0]  ;;  %v6695_v26 = vld [vmem:[#allocation5 + $0x748] sm:$0xf0] }
 0x7b4   :  { %v6640_v3 = vor.u32 %v7190_v43, %v6637_v44  ;;  %v6661_v43 = vld [vmem:[#allocation5 + $0x700] sm:$0xf]  ;;  %v7197_v44 = vld [vmem:[#allocation5 + $0x704] sm:$0xf0] }
 0x7b7   :  { %4367 = vmatpush.bf16.msrb.mxu1 %v6620_v60  ;;  %v6629_v60 = vld [vmem:[#allocation5 + $0x6c8] sm:$0xf0]  ;;  %4507 = vmatpush.bf16.msrb.mxu2 %v6718_v12  ;;  %v7225_v12 = vld [vmem:[#allocation5 + $0x7e4] sm:$0xf0] }
 0x7b8   :  { %v6632_v47 = vor.u32 %v7188_v45, %v6629_v60  ;;  %v6662_v45 = vor.u32 %v7197_v44, %v6661_v43  ;;  %v6663_v60 = vld [vmem:[#allocation5 + $0x708] sm:$0xf0]  ;;  %v6727_v44 = vld [vmem:[#allocation5 + $0x780] sm:$0xf] }
 0x7bb   :  { %4368 = vmatpush.bf16.msrb.mxu1 %v6612_v54  ;;  %v6719_v54 = vld [vmem:[#allocation5 + $0x778] sm:$0xf0] }
 0x7bc   :  { %v6722_v10 = vor.u32 %v7210_v51, %v6719_v54  ;;  %v6775_v54 = vld [vmem:[#allocation5 + $0x7e0] sm:$0xf] }
 0x7bf   :  { %4369 = vmatpush.bf16.msrb.mxu1 %v6604_v15  ;;  %v6613_v15 = vld [vmem:[#allocation5 + $0x6a8] sm:$0xf0] }
 0x7c0   :  { %v6616_v57 = vor.u32 %v7184_v56, %v6613_v15  ;;  %v7223_v56 = vld [vmem:[#allocation5 + $0x7d4] sm:$0xf0] }
 0x7c3   :  { %4370 = vmatpush.bf16.msrb.mxu1 %v6596_v19  ;;  %v6710_v19 = vor.u32 %v7209_v59, %v6709_v46  ;;  %v6785_v59 = vld [vmem:[#allocation5 + $0x7f8] sm:$0xf0] }
 0x7c5   :  { %4508 = vmatpush.bf16.msrb.mxu2 %v6710_v19 }
 0x7c9   :  { %4509 = vmatpush.bf16.msrb.mxu2 %v6702_v16 }
 0x803   :  { %v3796_v20 = vpop.f32.mrf.mxu1 }
 0x804   :  { %v3813_v21 = vadd.f32 %v3796_v20, %v7868_v50  ;;  %v6693_v20 = vld [vmem:[#allocation5 + $0x740] sm:$0xf] }
 0x809   :  { %v3809_v27 = vpop.f32.mrf.mxu3 }
 0x80a   :  { %v3814_v30 = vadd.f32 %v3809_v27, %v7871_v0  ;;  %v7194_v0 = vld [vmem:[#allocation5 + $0x6f4] sm:$0xf]  ;;  %v6694_v27 = vor.u32 %v7205_v22, %v6693_v20  ;;  %v6723_v22 = vld [vmem:[%s7963_s8 + $0x3c] sm:$0xf] }
 0x80b   :  { %v3798_v31 = vpop.f32.mrf.mxu1  ;;  %v6656_v2 = vor.u32 %v7194_v0, %v6653_v25  ;;  %v7200_v0 = vld [vmem:[#allocation5 + $0x724] sm:$0xf] }
 0x80c   :  { %4510 = vmatpush.bf16.msrb.mxu2 %v6694_v27  ;;  %v6685_v31 = vld [vmem:[#allocation5 + $0x730] sm:$0xf]  ;;  %v7221_v27 = vld [vmem:[#allocation5 + $0x7c4] sm:$0xf0] }
 0x811   :  { %v3811_v32 = vpop.f32.mrf.mxu3 }
 0x812   :  { %v3953_v39 = vpop.f32.mrf.mxu0  ;;  %v7203_v32 = vld [vmem:[#allocation5 + $0x734] sm:$0xf0] }
 0x813   :  { %v7886_v29 = vadd.f32 %v3953_v39, %v3814_v30  ;;  %v3973_v33 = vpop.f32.mrf.mxu1  ;;  %v6698_v30 = vor.u32 %v7204_v23, %v6695_v26  ;;  %v7202_v39 = vld [vmem:[#allocation5 + $0x734] sm:$0xf]  ;;  %v6759_v26 = vld [vmem:[#allocation5 + $0x7c0] sm:$0xf] }
 0x814   :  { %v3977_v55 = vpack.c.bf16 %v3973_v33, %v3973_v33  ;;  %v6686_v33 = vor.u32 %v7203_v32, %v6685_v31  ;;  %v6760_v31 = vor.u32 %v7221_v27, %v6759_v26  ;;  %v6761_v32 = vld [vmem:[#allocation5 + $0x7c8] sm:$0xf0] }
 0x816   :  { %4083 = vmatmul.bf16.vlgmr.msra.gmra.mxu3 %v3977_v55  ;;  %4096 = vmatmul.bf16.vlgmr.msra.gmra.mxu1 %v3977_v55  ;;  %v6687_v55 = vld [vmem:[#allocation5 + $0x738] sm:$0xf0] }
 0x817   :  { %4546 = vmatpush.bf16.msra.mxu1 %v7778_v53  ;;  %4376 = vmatpush.bf16.msra.mxu3 %v6656_v2  ;;  %v6591_v53 = vld [vmem:[%s7963_s8 + $0x34] sm:$0xf]  ;;  %v6682_v2 = vor.u32 %v7200_v0, %v6679_v49  ;;  %v7217_v49 = vld [vmem:[#allocation5 + $0x7a4] sm:$0xf0] }
 0x818   :  { %v3940_v50 = vpop.f32.mrf.mxu2  ;;  %4511 = vmatpush.bf16.msrb.mxu2 %v6686_v33  ;;  %v6751_v33 = vld [vmem:[#allocation5 + $0x7b0] sm:$0xf] }
 0x819   :  { %v7889_v35 = vadd.f32 %v3940_v50, %v3813_v21  ;;  %v6600_v21 = vor.u32 %v7180_v17, %v6597_v18  ;;  %v6690_v50 = vor.u32 %v7202_v39, %v6687_v55  ;;  %v6772_v17 = vor.u32 %v7222_v4, %v6769_v13  ;;  %v7219_v55 = vld [vmem:[#allocation5 + $0x7b4] sm:$0xf0] }
 0x81a   :  { %v3955_v37 = vpop.f32.mrf.mxu0 }
 0x81b   :  { %4547 = vmatpush.bf16.msra.mxu1 %v7776_v38  ;;  %v3975_v11 = vpop.f32.mrf.mxu1  ;;  %4377 = vmatpush.bf16.msra.mxu3 %v6648_v40  ;;  %v6677_v37 = vld [vmem:[#allocation5 + $0x720] sm:$0xf]  ;;  %v7199_v40 = vld [vmem:[#allocation5 + $0x714] sm:$0xf0] }
 0x81c   :  { %v7201_v11 = vld [vmem:[#allocation5 + $0x724] sm:$0xf0] }
 0x81d   :  { %v6678_v25 = vor.u32 %v7201_v11, %v6677_v37  ;;  %v6752_v37 = vor.u32 %v7219_v55, %v6751_v33  ;;  %v6753_v11 = vld [vmem:[#allocation5 + $0x7b8] sm:$0xf0] }
 0x81f   :  { %4378 = vmatpush.bf16.msra.mxu3 %v6640_v3  ;;  %4512 = vmatpush.bf16.msrb.mxu2 %v6678_v25  ;;  %v7196_v3 = vld [vmem:[#allocation5 + $0x704] sm:$0xf]  ;;  %v6743_v25 = vld [vmem:[#allocation5 + $0x7a0] sm:$0xf] }
 0x820   :  { %v3942_v34 = vpop.f32.mrf.mxu2  ;;  %v6666_v62 = vor.u32 %v7196_v3, %v6663_v60  ;;  %v7213_v3 = vld [vmem:[#allocation5 + $0x784] sm:$0xf0] }
 0x821   :  { %v7198_v34 = vld [vmem:[#allocation5 + $0x714] sm:$0xf]  ;;  %v6728_v60 = vor.u32 %v7213_v3, %v6727_v44 }
 0x823   :  { %4379 = vmatpush.bf16.msra.mxu3 %v6632_v47 }
 0x826   :  { %6592 = vmatmul.msk.bf16.vlgmr.msrb.gmra.mxu3 %vm2381_vm9, %v6591_v53  ;;  %v6671_v53 = vld [vmem:[#allocation5 + $0x718] sm:$0xf0] }
 0x827   :  { %4380 = vmatpush.bf16.msra.mxu3 %v6624_v48  ;;  %v6783_v48 = vld [vmem:[#allocation5 + $0x7f0] sm:$0xf] }
 0x828   :  { %v4117_v42 = vpop.f32.mrf.mxu2  ;;  %v6784_v51 = vor.u32 %v7227_v24, %v6783_v48 }
 0x829   :  { %v4121_v61 = vpack.c.bf16 %v4117_v42, %v4117_v42 }
 0x82b   :  { %4227 = vmatmul.bf16.vlgmr.msra.gmra.mxu0 %v4121_v61  ;;  %4240 = vmatmul.bf16.vlgmr.msra.gmra.mxu2 %v4121_v61  ;;  %v6670_v61 = vor.u32 %v7199_v40, %v6669_v52  ;;  %v6744_v52 = vor.u32 %v7217_v49, %v6743_v25  ;;  %v6745_v40 = vld [vmem:[#allocation5 + $0x7a8] sm:$0xf0] }
 0x82c   :  { %4520 = vmatpush.bf16.msra.mxu0 %v6722_v10  ;;  %4381 = vmatpush.bf16.msra.mxu3 %v6616_v57  ;;  %v6767_v10 = vld [vmem:[#allocation5 + $0x7d0] sm:$0xf]  ;;  %v7226_v57 = vld [vmem:[#allocation5 + $0x7f4] sm:$0xf] }
 0x82d   :  { %4513 = vmatpush.bf16.msrb.mxu2 %v6670_v61  ;;  %v6768_v46 = vor.u32 %v7223_v56, %v6767_v10  ;;  %v6788_v19 = vor.u32 %v7226_v57, %v6785_v59  ;;  %v7214_v61 = vld [vmem:[#allocation5 + $0x794] sm:$0xf] }
 0x830   :  { %v4119_v38 = vpop.f32.mrf.mxu2  ;;  %4521 = vmatpush.bf16.msra.mxu0 %v6714_v1  ;;  %4382 = vmatpush.bf16.msra.mxu3 %v6608_v8 }
 0x831   :  { %v6674_v38 = vor.u32 %v7198_v34, %v6671_v53  ;;  %4514 = vmatpush.bf16.msrb.mxu2 %v6662_v45  ;;  %v6735_v53 = vld [vmem:[#allocation5 + $0x790] sm:$0xf]  ;;  %v7212_v45 = vld [vmem:[#allocation5 + $0x784] sm:$0xf] }
 0x834   :  { %4522 = vmatpush.bf16.msra.mxu0 %v6706_v9  ;;  %4383 = vmatpush.bf16.msra.mxu3 %v6600_v21 }
 0x838   :  { %4523 = vmatpush.bf16.msra.mxu0 %v6698_v30  ;;  %4651 = vmatpush.bf16.msrb.mxu3 %v6784_v51  ;;  %v7220_v30 = vld [vmem:[#allocation5 + $0x7c4] sm:$0xf] }
 0x839   :  { %v6764_v39 = vor.u32 %v7220_v30, %v6761_v32 }
 0x83b   :  { %6658 = vmatmul.msk.bf16.vlgmr.msrb.gmra.mxu0 %vm2381_vm9, %v6657_v41 }
 0x83c   :  { %4524 = vmatpush.bf16.msra.mxu0 %v6690_v50  ;;  %v7218_v50 = vld [vmem:[#allocation5 + $0x7b4] sm:$0xf] }
 0x83d   :  { %v6756_v0 = vor.u32 %v7218_v50, %v6753_v11 }
 0x840   :  { %4525 = vmatpush.bf16.msra.mxu0 %v6682_v2  ;;  %v7216_v2 = vld [vmem:[#allocation5 + $0x7a4] sm:$0xf] }
 0x841   :  { %v6748_v34 = vor.u32 %v7216_v2, %v6745_v40 }
 0x844   :  { %4526 = vmatpush.bf16.msra.mxu0 %v6674_v38 }
 0x848   :  { %4527 = vmatpush.bf16.msra.mxu0 %v6666_v62 }
 0x893   :  { %v4097_v42 = vpop.f32.mrf.mxu1 }
 0x894   :  { %v4102_v41 = vadd.f32 %v4097_v42, %v7886_v29  ;;  %v6776_v29 = vor.u32 %v7225_v12, %v6775_v54  ;;  %v7215_v42 = vld [vmem:[#allocation5 + $0x794] sm:$0xf0] }
 0x895   :  { %v6736_v38 = vor.u32 %v7215_v42, %v6735_v53 }
 0x896   :  { %4652 = vmatpush.bf16.msrb.mxu3 %v6776_v29 }
 0x899   :  { %v4084_v47 = vpop.f32.mrf.mxu3 }
 0x89a   :  { %v4101_v36 = vadd.f32 %v4084_v47, %v7889_v35  ;;  %4653 = vmatpush.bf16.msrb.mxu3 %v6768_v46  ;;  %v6729_v47 = vld [vmem:[#allocation5 + $0x788] sm:$0xf0] }
 0x89b   :  { %v4099_v28 = vpop.f32.mrf.mxu1  ;;  %v6732_v62 = vor.u32 %v7212_v45, %v6729_v47 }
 0x89e   :  { %4654 = vmatpush.bf16.msrb.mxu3 %v6760_v31 }
 0x8a1   :  { %v4086_v15 = vpop.f32.mrf.mxu3 }
 0x8a2   :  { %4655 = vmatpush.bf16.msrb.mxu3 %v6752_v37 }
 0x8a6   :  { %4656 = vmatpush.bf16.msrb.mxu3 %v6744_v52 }
 0x8a8   :  { %v4228_v58 = vpop.f32.mrf.mxu0 }
 0x8a9   :  { %v7902_v35 = vadd.f32 %v4228_v58, %v4101_v36  ;;  %v4261_v63 = vpop.f32.mrf.mxu3 }
 0x8aa   :  { %v4265_v1 = vpack.c.bf16 %v4261_v63, %v4261_v63  ;;  %4657 = vmatpush.bf16.msrb.mxu3 %v6736_v38  ;;  %v7310_v63 = vmov 8.0  }
 0x8ab   :  { %7245 = vrcp.f32 %v7310_v63 }
 0x8ac   :  { %4371 = vmatmul.bf16.vlgmr.msrb.gmra.mxu1 %v4265_v1  ;;  %4384 = vmatmul.bf16.vlgmr.msra.gmra.mxu3 %v4265_v1 }
 0x8ad   :  { %4664 = vmatpush.bf16.msrb.mxu1 %v6788_v19 }
 0x8ae   :  { %v4241_v8 = vpop.f32.mrf.mxu2  ;;  %4658 = vmatpush.bf16.msrb.mxu3 %v6728_v60 }
 0x8af   :  { %v4246_v14 = vadd.f32 %v4241_v8, %v4102_v41  ;;  %v6737_v41 = vld [vmem:[#allocation5 + $0x798] sm:$0xf0] }
 0x8b0   :  { %v4230_v16 = vpop.f32.mrf.mxu0  ;;  %v6740_v43 = vor.u32 %v7214_v61, %v6737_v41 }
 0x8b1   :  { %v4263_v9 = vpop.f32.mrf.mxu3  ;;  %4665 = vmatpush.bf16.msrb.mxu1 %v6780_v7  ;;  %v7246_v19 = vpop.eup %7245 }
 0x8b2   :  { %v4702_v1 = vmul.f32 8.0, %v7246_v19  ;;  %vm4706_vm10 = vweird.f32 %v7246_v19 }
 0x8b4   :  { %v4703_v8 = vsub.f32 1.0, %v4702_v1 }
 0x8b5   :  { %4666 = vmatpush.bf16.msrb.mxu1 %v6772_v17 }
 0x8b6   :  { %v4243_v18 = vpop.f32.mrf.mxu2  ;;  %v4704_v16 = vmul.f32 %v7246_v19, %v4703_v8 }
 0x8b8   :  { %v4405_v20 = vpop.f32.mrf.mxu0 }
 0x8b9   :  { %v4409_v21 = vpack.c.bf16 %v4405_v20, %v4405_v20  ;;  %4667 = vmatpush.bf16.msrb.mxu1 %v6764_v39 }
 0x8bb   :  { %4515 = vmatmul.bf16.vlgmr.msrb.gmra.mxu2 %v4409_v21  ;;  %4528 = vmatmul.bf16.vlgmr.msra.gmra.mxu0 %v4409_v21 }
 0x8bc   :  { %6724 = vmatmul.msk.bf16.vlgmr.msra.gmra.mxu1 %vm2381_vm9, %v6723_v22 }
 0x8bd   :  { %4668 = vmatpush.bf16.msrb.mxu1 %v6756_v0 }
 0x8c0   :  { %v4407_v23 = vpop.f32.mrf.mxu0 }
 0x8c1   :  { %4669 = vmatpush.bf16.msrb.mxu1 %v6748_v34  ;;  %v4705_v23 = vadd.f32 %v7246_v19, %v4704_v16 }
 0x8c3   :  { %v4707_v32 = vsel %vm4706_vm10, %v7246_v19, %v4705_v23 }
 0x8c5   :  { %4670 = vmatpush.bf16.msrb.mxu1 %v6740_v43 }
 0x8c9   :  { %4671 = vmatpush.bf16.msrb.mxu1 %v6732_v62 }
 0x929   :  { %v4372_v36 = vpop.f32.mrf.mxu1 }
 0x92a   :  { %v4389_v28 = vadd.f32 %v4372_v36, %v7902_v35  ;;  %v4679_v35 = vld [vmem:[%s7965_s10] sm:$0x3] }
 0x92b   :  { %v4682_v5 = vperm.slane %v4679_v35, 1 }
 0x92f   :  { %v4385_v48 = vpop.f32.mrf.mxu3 }
 0x930   :  { %v4390_v24 = vadd.f32 %v4385_v48, %v4246_v14  ;;  %v4681_v14 = vperm.slane %v4679_v35, 0 }
 0x931   :  { %v4374_v51 = vpop.f32.mrf.mxu1 }
 0x937   :  { %v4387_v54 = vpop.f32.mrf.mxu3 }
 0x938   :  { %v4529_v12 = vpop.f32.mrf.mxu0 }
 0x939   :  { %v4534_v29 = vadd.f32 %v4529_v12, %v4390_v24  ;;  %v4549_v10 = vpop.f32.mrf.mxu1 }
 0x93a   :  { %v4553_v56 = vpack.c.bf16 %v4549_v10, %v4549_v10  ;;  %v4687_v10 = vld [vmem:[%s7966_s11] sm:$0x3] }
 0x93b   :  { %v4753_v8 = vperm.slane %v4687_v10, 0 }
 0x93c   :  { %4659 = vmatmul.bf16.vlgmr.msrb.gmra.mxu3 %v4553_v56  ;;  %4672 = vmatmul.bf16.vlgmr.msrb.gmra.mxu1 %v4553_v56 }
 0x93e   :  { %v4516_v15 = vpop.f32.mrf.mxu2 }
 0x93f   :  { %v4533_v46 = vadd.f32 %v4516_v15, %v4389_v28 }
 0x940   :  { %v4531_v57 = vpop.f32.mrf.mxu0 }
 0x941   :  { %v4551_v59 = vpop.f32.mrf.mxu1 }
 0x942   :  { %v4688_v59 = vld [vmem:[%s7967_s12] sm:$0x3] }
 0x943   :  { %v4761_v1 = vperm.slane %v4688_v59, 1 }
 0x946   :  { %v4518_v58 = vpop.f32.mrf.mxu2 }
 0x947   :  { %v4754_v58 = vperm.slane %v4687_v10, 1 }
 0x9b9   :  { %v4673_v6 = vpop.f32.mrf.mxu1 }
 0x9ba   :  { %v4678_v7 = vadd.f32 %v4673_v6, %v4534_v29 }
 0x9bc   :  { %v4686_v4 = vadd.f32 %v4682_v5, %v4678_v7 }
 0x9be   :  { %v4695_v13 = vrot.slane %v4686_v4, 4 }
 0x9bf   :  { %v4660_v9 = vpop.f32.mrf.mxu3 }
 0x9c0   :  { %v4696_v17 = vadd.f32 %v4695_v13, %v4686_v4  ;;  %v4677_v18 = vadd.f32 %v4660_v9, %v4533_v46  ;;  %v4760_v9 = vperm.slane %v4688_v59, 0 }
 0x9c1   :  { %v4675_v20 = vpop.f32.mrf.mxu1 }
 0x9c2   :  { %v4697_v21 = vrot.slane %v4696_v17, 2  ;;  %v4685_v22 = vadd.f32 %v4681_v14, %v4677_v18 }
 0x9c4   :  { %v4698_v26 = vadd.f32 %v4697_v21, %v4696_v17  ;;  %v4689_v27 = vrot.slane %v4685_v22, 4 }
 0x9c6   :  { %v4699_v30 = vrot.slane %v4698_v26, 1  ;;  %v4690_v31 = vadd.f32 %v4689_v27, %v4685_v22  ;;  %v6795_v27 = vld [vmem:[%s7968_s13 + $0x2] sm:$0x1] }
 0x9c7   :  { %v4662_v39 = vpop.f32.mrf.mxu3 }
 0x9c8   :  { %v4700_v33 = vadd.f32 %v4699_v30, %v4698_v26  ;;  %v4691_v55 = vrot.slane %v4690_v31, 2  ;;  %v6791_v26 = vld [vmem:[%s7968_s13 + $0x1] sm:$0x1] }
 0x9ca   :  { %v4709_v50 = vmul.f32 %v4707_v32, %v4700_v33  ;;  %v4692_v37 = vadd.f32 %v4691_v55, %v4690_v31  ;;  %v4774_v31 = vld [vmem:[%s7968_s13] sm:$0x1]  ;;  %v6799_v33 = vld [vmem:[%s7968_s13 + $0x3] sm:$0x1] }
 0x9cb   :  { %v4812_v55 = vld [vmem:[%s7969_s14] sm:$0x3] }
 0x9cc   :  { %v4711_v11 = vsub.f32 %v4686_v4, %v4709_v50  ;;  %v4693_v0 = vrot.slane %v4692_v37, 1  ;;  %v4813_v50 = vunpack.c.l.bf16 %v4812_v55 }
 0x9ce   :  { %v4713_v25 = vmul.f32 %v4711_v11, %v4711_v11  ;;  %v4694_v49 = vadd.f32 %v4693_v0, %v4692_v37  ;;  %v6798_v37 = vld [vmem:[%s7969_s14 + $0x4] sm:$0x3]  ;;  %v4816_v0 = vperm.slane %v4813_v50, 2 }
 0x9d0   :  { %v4720_v2 = vrot.slane %v4713_v25, 4  ;;  %v4708_v52 = vmul.f32 %v4707_v32, %v4694_v49 }
 0x9d2   :  { %v4721_v40 = vadd.f32 %v4720_v2, %v4713_v25  ;;  %v4710_v34 = vsub.f32 %v4685_v22, %v4708_v52  ;;  %v4912_v25 = vunpack.c.l.bf16 %v6798_v37  ;;  %v4815_v2 = vperm.slane %v4813_v50, 0  ;;  %v7240_v50 = vld [vmem:[#allocation2] ss:$0 sm:$0xff] }
 0x9d3   :  { %v4820_v52 = vperm.slane %v4816_v0, 0 }
 0x9d4   :  { %v4722_v53 = vrot.slane %v4721_v40, 2  ;;  %v4712_v42 = vmul.f32 %v4710_v34, %v4710_v34 }
 0x9d6   :  { %v4723_v61 = vadd.f32 %v4722_v53, %v4721_v40  ;;  %v4714_v38 = vrot.slane %v4712_v42, 4  ;;  %v4915_v40 = vperm.slane %v4912_v25, 2 }
 0x9d8   :  { %v4724_v41 = vrot.slane %v4723_v61, 1  ;;  %v4715_v43 = vadd.f32 %v4714_v38, %v4712_v42  ;;  %v4819_v42 = vperm.slane %v4815_v2, 0  ;;  %v6794_v38 = vld [vmem:[%s7969_s14 + $0x2] sm:$0x3] }
 0x9da   :  { %v4725_v44 = vadd.f32 %v4724_v41, %v4723_v61  ;;  %v4716_v3 = vrot.slane %v4715_v43, 2  ;;  %v4914_v41 = vperm.slane %v4912_v25, 0 }
 0x9dc   :  { %v4727_v45 = vmul.f32 %v4725_v44, %v4707_v32  ;;  %v4717_v60 = vadd.f32 %v4716_v3, %v4715_v43  ;;  %v4919_v43 = vperm.slane %v4915_v40, 0 }
 0x9de   :  { %v4729_v47 = vadd.f32 1e-05, %v4727_v45  ;;  %v4718_v62 = vrot.slane %v4717_v60, 1  ;;  %v4863_v45 = vunpack.c.l.bf16 %v6794_v38 }
 0x9e0   :  { %7247 = vrsqrt.f32 %v4729_v47  ;;  %v4719_v36 = vadd.f32 %v4718_v62, %v4717_v60  ;;  %vm4746_vm12 = vweird.f32 %v4729_v47  ;;  %v4918_v62 = vperm.slane %v4914_v41, 0 }
 0x9e2   :  { %v4726_v28 = vmul.f32 %v4719_v36, %v4707_v32 }
 0x9e4   :  { %v4728_v48 = vadd.f32 1e-05, %v4726_v28 }
 0x9e6   :  { %v7248_v24 = vpop.eup %7247  ;;  %7249 = vrsqrt.f32 %v4728_v48  ;;  %vm4736_vm15 = vweird.f32 %v4728_v48 }
 0x9e7   :  { %v4741_v51 = vmul.f32 %v7248_v24, %v4729_v47  ;;  %vm4747_vm11 = vweird.f32 %v7248_v24 }
 0x9e8   :  { %vm4748_vm13 = vmor %vm4746_vm12, %vm4747_vm11 }
 0x9e9   :  { %v4742_v54 = vmul.f32 %v7248_v24, %v4741_v51 }
 0x9eb   :  { %v4743_v12 = vmul.f32 0.5, %v4742_v54  ;;  %v4866_v54 = vperm.slane %v4863_v45, 2 }
 0x9ec   :  { %v7250_v29 = vpop.eup %7249 }
 0x9ed   :  { %v4744_v56 = vsub.f32 1.5, %v4743_v12  ;;  %v4731_v15 = vmul.f32 %v7250_v29, %v4728_v48  ;;  %vm4737_vm14 = vweird.f32 %v7250_v29 }
 0x9ee   :  { %vm4738_vm0 = vmor %vm4736_vm15, %vm4737_vm14 }
 0x9ef   :  { %v4745_v46 = vmul.f32 %v7248_v24, %v4744_v56  ;;  %v4732_v57 = vmul.f32 %v7250_v29, %v4731_v15 }
 0x9f1   :  { %v4749_v63 = vsel %vm4748_vm13, %v7248_v24, %v4745_v46  ;;  %v4733_v19 = vmul.f32 0.5, %v4732_v57  ;;  %v4865_v46 = vperm.slane %v4863_v45, 0  ;;  %v4870_v57 = vperm.slane %v4866_v54, 0 }
 0x9f2   :  { %v4751_v35 = vmul.f32 %v4749_v63, %v4711_v11 }
 0x9f3   :  { %v4734_v5 = vsub.f32 1.5, %v4733_v19  ;;  %v4869_v63 = vperm.slane %v4865_v46, 0 }
 0x9f4   :  { %v4758_v6 = vmul.f32 %v4754_v58, %v4751_v35  ;;  %v6802_v35 = vld [vmem:[%s7969_s14 + $0x6] sm:$0x3] }
 0x9f5   :  { %v4735_v7 = vmul.f32 %v7250_v29, %v4734_v5 }
 0x9f6   :  { %v4765_v4 = vadd.f32 %v4761_v1, %v4758_v6 }
 0x9f7   :  { %v4739_v13 = vsel %vm4738_vm0, %v7250_v29, %v4735_v7  ;;  %v4961_v7 = vunpack.c.l.bf16 %v6802_v35 }
 0x9f8   :  { %v4750_v14 = vmul.f32 %v4739_v13, %v4710_v34  ;;  %vm4767_vm1 = vcmp.gt.f32.partialorder %v4765_v4, 0.0  ;;  %v4769_v16 = vmul.f32 0.2, %v4765_v4 }
 0x9fa   :  { %v4757_v17 = vmul.f32 %v4753_v8, %v4750_v14  ;;  %v4771_v18 = vsel %vm4767_vm1, %v4765_v4, %v4769_v16  ;;  %v4964_v14 = vperm.slane %v4961_v7, 2 }
 0x9fb   :  { %v4773_v20 = vpack.c.bf16 %v4771_v18, %v4771_v18 }
 0x9fc   :  { %v4764_v21 = vadd.f32 %v4760_v9, %v4757_v17  ;;  %v4963_v9 = vperm.slane %v4961_v7, 0  ;;  %v4968_v17 = vperm.slane %v4964_v14, 0 }
 0x9fd   :  { %v4784_v22 = vsel %vm4779_vm2, %v4773_v20, 0 }
 0x9fe   :  { %4806 = vmatpush.bf16.msrb.mxu0 %v4784_v22  ;;  %4855 = vmatpush.bf16.msra.mxu3 %v4784_v22  ;;  %vm4766_vm3 = vcmp.gt.f32.partialorder %v4764_v21, 0.0  ;;  %v4768_v23 = vmul.f32 0.2, %v4764_v21  ;;  %v4967_v18 = vperm.slane %v4963_v9, 0 }
 0x9ff   :  { %4904 = vmatpush.bf16.msra.mxu1 %v4784_v22 }
 0xa00   :  { %v4770_v30 = vsel %vm4766_vm3, %v4764_v21, %v4768_v23 }
 0xa01   :  { %v4772_v32 = vpack.c.bf16 %v4770_v30, %v4770_v30  ;;  %6790 = vmatmul.msk.bf16.vlgmr.msrb.gmra.mxu0 %vm4775_vm4, %v4774_v31  ;;  %6793 = vmatmul.msk.bf16.vlgmr.msra.gmra.mxu3 %vm4775_vm4, %v6791_v26 }
 0xa02   :  { %4953 = vmatpush.bf16.msrb.mxu3 %v4784_v22  ;;  %6797 = vmatmul.msk.bf16.vlgmr.msra.gmra.mxu1 %vm4775_vm4, %v6795_v27 }
 0xa03   :  { %v4781_v39 = vsel %vm4779_vm2, %v4772_v32, 0 }
 0xa04   :  { %4793 = vmatpush.bf16.msra.mxu2 %v4781_v39  ;;  %4891 = vmatpush.bf16.msra.mxu0 %v4781_v39 }
 0xa07   :  { %6789 = vmatmul.msk.bf16.vlgmr.msra.gmra.mxu2 %vm4775_vm4, %v4774_v31 }
 0xa08   :  { %4842 = vmatpush.bf16.msrb.mxu2 %v4781_v39 }
 0xa0c   :  { %4940 = vmatpush.bf16.msra.mxu2 %v4781_v39 }
 0xa11   :  { %6796 = vmatmul.msk.bf16.vlgmr.msra.gmra.mxu0 %vm4775_vm4, %v6795_v27  ;;  %6801 = vmatmul.msk.bf16.vlgmr.msrb.gmra.mxu3 %vm4775_vm4, %v6799_v33 }
 0xa17   :  { %6792 = vmatmul.msk.bf16.vlgmr.msrb.gmra.mxu2 %vm4775_vm4, %v6791_v26 }
 0xa27   :  { %6800 = vmatmul.msk.bf16.vlgmr.msra.gmra.mxu2 %vm4775_vm4, %v6799_v33 }
 0xa7e   :  { %v4808_v11 = vpop.f32.mrf.mxu0 }
 0xa7f   :  { %v4906_v49 = vpop.f32.mrf.mxu1  ;;  %v4822_v61 = vmul.f32 %v4820_v52, %v4808_v11 }
 0xa80   :  { %v4921_v36 = vmul.f32 %v4919_v43, %v4906_v49 }
 0xa81   :  { %v4825_v47 = vsel %vm4823_vm5, %v4822_v61, 0.0 }
 0xa82   :  { %v4923_v29 = vsel %vm4823_vm5, %v4921_v36, 0.0 }
 0xa84   :  { %v4857_v34 = vpop.f32.mrf.mxu3 }
 0xa85   :  { %v4872_v19 = vmul.f32 %v4870_v57, %v4857_v34 }
 0xa86   :  { %v4810_v53 = vpop.f32.mrf.mxu0 }
 0xa87   :  { %v4908_v44 = vpop.f32.mrf.mxu1  ;;  %v4874_v6 = vsel %vm4823_vm5, %v4872_v19, 0.0 }
 0xa8a   :  { %v4795_v3 = vpop.f32.mrf.mxu2 }
 0xa8b   :  { %v4821_v60 = vmul.f32 %v4819_v42, %v4795_v3 }
 0xa8c   :  { %v4859_v28 = vpop.f32.mrf.mxu3 }
 0xa8d   :  { %v4824_v48 = vsel %vm4823_vm5, %v4821_v60, 0.0 }
 0xa8e   :  { %v4826_v24 = vadd.f32 %v4825_v47, %v4824_v48  ;;  %v4893_v51 = vpop.f32.mrf.mxu0 }
 0xa8f   :  { %v4920_v12 = vmul.f32 %v4918_v62, %v4893_v51 }
 0xa90   :  { %4827 = vadd.xlane.f32.xlu0 %v4826_v24 }
 0xa91   :  { %v4922_v10 = vsel %vm4823_vm5, %v4920_v12, 0.0 }
 0xa92   :  { %v4797_v56 = vpop.f32.mrf.mxu2  ;;  %v4924_v15 = vadd.f32 %v4923_v29, %v4922_v10 }
 0xa94   :  { %4925 = vadd.xlane.f32.xlu1 %v4924_v15  ;;  %v4955_v59 = vpop.f32.mrf.mxu3 }
 0xa95   :  { %v4970_v20 = vmul.f32 %v4968_v17, %v4955_v59 }
 0xa96   :  { %v4895_v58 = vpop.f32.mrf.mxu0 }
 0xa97   :  { %v4972_v23 = vsel %vm4823_vm5, %v4970_v20, 0.0 }
 0xa9a   :  { %v4844_v1 = vpop.f32.mrf.mxu2 }
 0xa9b   :  { %v4871_v5 = vmul.f32 %v4869_v63, %v4844_v1 }
 0xa9c   :  { %v4957_v8 = vpop.f32.mrf.mxu3 }
 0xa9d   :  { %v4873_v4 = vsel %vm4823_vm5, %v4871_v5, 0.0 }
 0xa9e   :  { %v4875_v13 = vadd.f32 %v4874_v6, %v4873_v4 }
 0xaa0   :  { %4876 = vadd.xlane.f32.xlu0 %v4875_v13 }
 0xaa2   :  { %v4846_v16 = vpop.f32.mrf.mxu2 }
 0xaaa   :  { %v4942_v21 = vpop.f32.mrf.mxu2 }
 0xaab   :  { %v4969_v22 = vmul.f32 %v4967_v18, %v4942_v21 }
 0xaad   :  { %v4971_v26 = vsel %vm4823_vm5, %v4969_v22, 0.0 }
 0xaae   :  { %v4973_v27 = vadd.f32 %v4972_v23, %v4971_v26 }
 0xab0   :  { %4974 = vadd.xlane.f32.xlu1 %v4973_v27 }
 0xab2   :  { %v4944_v30 = vpop.f32.mrf.mxu2 }
 0xb03   :  { %v4828_v31 = vpop.xlane.xlu0 %4827 }
 0xb07   :  { %v4926_v32 = vpop.xlane.xlu1 %4925 }
 0xb13   :  { %v4877_v39 = vpop.xlane.xlu0 %4876 }
 0xb14   :  { %v4878_v33 = vadd.f32 %v4877_v39, %v4828_v31 }
 0xb16   :  { %v4927_v55 = vadd.f32 %v4926_v32, %v4878_v33 }
 0xb23   :  { %v4975_v37 = vpop.xlane.xlu1 %4974 }
 0xb24   :  { %v4976_v11 = vadd.f32 %v4975_v37, %v4927_v55 }
 0xb26   :  { %v4981_v0 = vadd.f32 %v7240_v50, %v4976_v11 }
 0xb28   :  { %4983 = vst.msk [vmem:[%s7971_s16] sm:$0x3] %vm4982_vm6, %v4981_v0 }
 0xb29   :  { %4988 = vsyncpa [#allocation4], 1 }
 0xb2a   :  { %4989 = vsyncpa [#allocation6], 1 }

</bundles_post_ra>
